<compile_context>
chip_gen: v7x
topology: tpu7x:2x2x1
jax: 0.10.0
libtpu: 0.0.40
codegen_flags: <defaults>
</compile_context>

<pallas_src>
import functools

import jax
import jax.numpy as jnp
from jax import lax
from jax.experimental import pallas as pl
from jax.experimental.pallas import tpu as pltpu


def _round_up(x, m):
    return ((x + m - 1) // m) * m


# Contract the last dim of both operands: [M, K] x [N, K] -> [M, N].
_NT_DIMS = (((1,), (1,)), ((), ()))


def _xling_disc_kernel(x_ref, w1_ref, b1_ref, w2_ref, b2_ref, out_ref,
                       *, y, n_chunks, chunk):
    """One batch tile; the batch lives on the lane axis of the output.

    x_ref  : [TN, in_emb]       hid tile (pipelined per grid step, natural layout)
    w1_ref : [hid_emb, in_emb]  bf16 nn.Linear(in_emb, hid_emb).weight (resident)
    b1_ref : [hid_emb, 1]       f32 bias as a column (resident)
    w2_ref : [hid_emb, 1]       f32 nn.Linear(hid_emb, 1).weight^T column (resident)
    b2_ref : [1]                f32 SMEM scalar
    out_ref: [2, TN]            row 0 = loss_dis, row 1 = loss_enc
    """
    tn = x_ref.shape[0]
    # Cast the batch tile once to bf16 for the MXU (accumulation stays f32).
    x_bf = x_ref[...].astype(jnp.bfloat16)                       # [TN, in_emb]

    def body(c, o_acc):
        start = pl.multiple_of(c * chunk, chunk)
        # Linear 1 on a chunk of hid_emb rows (bf16 MXU, NT form):
        #   h[chunk, TN] = W1_chunk[chunk, K] . x[TN, K]^T       (K = in_emb)
        h = lax.dot_general(w1_ref[pl.ds(start, chunk), :], x_bf,
                            dimension_numbers=_NT_DIMS,
                            preferred_element_type=jnp.float32)  # [chunk, TN]
        h = h + b1_ref[pl.ds(start, chunk), :]
        h = jnp.maximum(h, 0.01 * h)                             # LeakyReLU(0.01)
        # Linear 2 partial sum off the MXU: VPU multiply + sublane reduce.
        return o_acc + jnp.sum(w2_ref[pl.ds(start, chunk), :] * h,
                               axis=0, keepdims=True)            # [1, TN]

    o = lax.fori_loop(0, n_chunks, body,
                      jnp.zeros((1, tn), jnp.float32), unroll=True)
    o = o + b2_ref[0]                                            # logits [1, TN]

    # BCEWithLogitsLoss (reduction='none'), numerically stable form:
    #   loss(o, t) = max(o, 0) - o*t + log1p(exp(-|o|))
    base = jnp.maximum(o, 0.0) + jnp.log1p(jnp.exp(-jnp.abs(o)))
    out_ref[0:1, :] = base - o * y                   # vs dis_label = y
    out_ref[1:2, :] = base - o * (1.0 - y)           # vs enc_label = 1 - y


def xling_discriminator(lang, hid, w1, b1, w2, b2, *,
                        block_n=512, hid_chunk=128):
    """Forward pass of XlingDiscriminator.

    Args (PyTorch parameter layouts):
      lang: Python string; 'en' -> dis_label = 1, else 0 (resolved at trace time).
      hid : [N, in_emb] float32 (or bf16)
      w1  : [hid_emb, in_emb]   (nn.Linear(in_emb, hid_emb).weight)
      b1  : [hid_emb]
      w2  : [1, hid_emb]        (nn.Linear(hid_emb, 1).weight)
      b2  : [1]
    Returns (loss_dis, loss_enc), each [N, 1] float32.
    """
    n, in_emb = hid.shape
    hid_emb = w1.shape[0]
    y = 1.0 if lang == 'en' else 0.0

    if hid_emb % hid_chunk:
        hid_chunk = hid_emb
    n_chunks = hid_emb // hid_chunk

    # Batch goes on the lane axis of the output.  Keep tiles wide (lane-dense
    # stores, amortized per-step overhead) while aiming for >= 2 grid steps so
    # both TensorCores on v7x get work.  No host-side transpose/pad: the last
    # tile may be partial; its out-of-range lanes compute garbage that is
    # sliced off after the kernel (never reduced over).
    n_pad128 = _round_up(max(n, 1), 128)
    if n_pad128 <= 128:
        tn = 128
    else:
        tn = min(block_n, _round_up((n_pad128 + 1) // 2, 128))
    n_pad = _round_up(n_pad128, tn)
    grid = (n_pad // tn,)

    # One-time parameter prep (tiny): bf16 W1 halves its resident footprint.
    w1_bf = w1.astype(jnp.bfloat16)
    b1_col = b1.reshape(hid_emb, 1).astype(jnp.float32)
    w2_col = w2.reshape(hid_emb, 1).astype(jnp.float32)
    b2_s = b2.reshape(1).astype(jnp.float32)

    kernel = functools.partial(_xling_disc_kernel, y=y,
                               n_chunks=n_chunks, chunk=hid_chunk)

    out = pl.pallas_call(
        kernel,
        out_shape=jax.ShapeDtypeStruct((2, n_pad), jnp.float32),
        grid=grid,
        in_specs=[
            pl.BlockSpec((tn, in_emb), lambda i: (i, 0)),         # hid tile
            # Constant index_map => fetched once, resident across grid steps.
            pl.BlockSpec((hid_emb, in_emb), lambda i: (0, 0)),    # W1 (bf16)
            pl.BlockSpec((hid_emb, 1), lambda i: (0, 0)),         # b1 column
            pl.BlockSpec((hid_emb, 1), lambda i: (0, 0)),         # w2 column
            pl.BlockSpec(memory_space=pltpu.MemorySpace.SMEM),    # b2 scalar
        ],
        out_specs=pl.BlockSpec((2, tn), lambda i: (0, i)),
        compiler_params=pltpu.CompilerParams(
            dimension_semantics=("parallel",)),
    )(hid, w1_bf, b1_col, w2_col, b2_s)

    loss_dis = out[0, :n].reshape(n, 1)
    loss_enc = out[1, :n].reshape(n, 1)
    return loss_dis, loss_enc


if __name__ == "__main__":
    # Module-implied sizes: in_emb = bidi * enc_hid_dim, hid_emb = 1024 (fixed).
    enc_hid_dim = 32
    bidi = 2
    in_emb = bidi * enc_hid_dim      # 64
    hid_emb = 1024

    key = jax.random.PRNGKey(0)
    k_x, k_w1, k_b1, k_w2, k_b2 = jax.random.split(key, 5)

    # Parameters in PyTorch nn.Linear layout (deterministic synthetic values).
    w1 = jax.random.uniform(k_w1, (hid_emb, in_emb), jnp.float32,
                            minval=-1.0, maxval=1.0) / jnp.sqrt(in_emb)
    b1 = jax.random.uniform(k_b1, (hid_emb,), jnp.float32,
                            minval=-1.0, maxval=1.0) / jnp.sqrt(in_emb)
    w2 = jax.random.uniform(k_w2, (1, hid_emb), jnp.float32,
                            minval=-1.0, maxval=1.0) / jnp.sqrt(hid_emb)
    b2 = jax.random.uniform(k_b2, (1,), jnp.float32,
                            minval=-1.0, maxval=1.0) / jnp.sqrt(hid_emb)

    def reference(lang, hid):
        # Matches the kernel's bf16 Linear1 operands with f32 accumulation.
        h = jnp.dot(hid.astype(jnp.bfloat16), w1.astype(jnp.bfloat16).T,
                    preferred_element_type=jnp.float32) + b1
        h = jnp.maximum(h, 0.01 * h)
        o = h @ w2.T + b2
        base = jnp.maximum(o, 0.0) + jnp.log1p(jnp.exp(-jnp.abs(o)))
        yy = 1.0 if lang == 'en' else 0.0
        return base - o * yy, base - o * (1.0 - yy)

    # Small batch (both label branches), a partial-tile batch, and a multi-tile
    # batch to exercise the grid / pipeline / partial-block paths.
    cases = [(8, 'en'), (8, 'de'), (260, 'en'), (1024, 'de')]
    for n, lang in cases:
        hid = jax.random.normal(jax.random.fold_in(k_x, n), (n, in_emb),
                                dtype=jnp.float32)
        loss_dis, loss_enc = xling_discriminator(lang, hid, w1, b1, w2, b2)
        jax.block_until_ready((loss_dis, loss_enc))
        ref_dis, ref_enc = reference(lang, hid)
        assert loss_dis.shape == (n, 1) and loss_enc.shape == (n, 1)
        assert jnp.allclose(loss_dis, ref_dis, atol=5e-3, rtol=5e-3), (n, lang)
        assert jnp.allclose(loss_enc, ref_enc, atol=5e-3, rtol=5e-3), (n, lang)

    print("KERNEL_OK")
</pallas_src>

<mosaic_0001>
module attributes {stable_mosaic.version = 11 : i64} {
  func.func @_xling_disc_kernel(%arg0: i32, %arg1: memref<128x64xf32, #tpu.memory_space<vmem>>, %arg2: memref<1024x64xbf16, #tpu.memory_space<vmem>>, %arg3: memref<1024x1xf32, #tpu.memory_space<vmem>>, %arg4: memref<1024x1xf32, #tpu.memory_space<vmem>>, %arg5: memref<1xf32, #tpu.memory_space<smem>>, %arg6: memref<2x128xf32, #tpu.memory_space<vmem>>) attributes {dimension_semantics = [#tpu.dimension_semantics<parallel>], iteration_bounds = array<i64: 1>, scalar_prefetch = 0 : i64, scratch_operands = 0 : i64, tpu.core_type = #tpu.core_type<tc>, window_params = [{transform_indices = @transform_0, window_bounds = array<i64: 128, 64>}, {pipeline_mode = #tpu.pipeline_mode<synchronous>, transform_indices = @transform_1, window_bounds = array<i64: 1024, 64>}, {pipeline_mode = #tpu.pipeline_mode<synchronous>, transform_indices = @transform_2, window_bounds = array<i64: 1024, 1>}, {pipeline_mode = #tpu.pipeline_mode<synchronous>, transform_indices = @transform_3, window_bounds = array<i64: 1024, 1>}, {transform_indices = @transform_4, window_bounds = array<i64: 1>}, {transform_indices = @transform_5, window_bounds = array<i64: 2, 128>}]} {
    %c0 = arith.constant 0 : index
    %c0_0 = arith.constant 0 : index
    %0 = vector.load %arg1[%c0, %c0_0] : memref<128x64xf32, #tpu.memory_space<vmem>>, vector<128x64xf32>
    %1 = arith.truncf %0 : vector<128x64xf32> to vector<128x64xbf16>
    %cst = arith.constant 0.000000e+00 : f32
    %2 = vector.broadcast %cst : f32 to vector<1x128xf32>
    %c0_i32 = arith.constant 0 : i32
    %c128_i32 = arith.constant 128 : i32
    %3 = arith.muli %c0_i32, %c128_i32 : i32
    %4 = tpu.assume_multiple %3, 128 : i32
    %5 = arith.index_cast %4 : i32 to index
    %c0_1 = arith.constant 0 : index
    %6 = vector.load %arg2[%5, %c0_1] : memref<1024x64xbf16, #tpu.memory_space<vmem>>, vector<128x64xbf16>
    %cst_2 = arith.constant dense<0.000000e+00> : vector<128x128xf32>
    %7 = tpu.matmul %6, %1, %cst_2 {dimension_numbers = #tpu.dot_dimension_numbers<[1], [1], [0], [0], [0, 0, 1, 0], [], []>} : vector<128x64xbf16>, vector<128x64xbf16>, vector<128x128xf32> -> vector<128x128xf32>
    %8 = arith.index_cast %4 : i32 to index
    %c0_3 = arith.constant 0 : index
    %9 = vector.load %arg3[%8, %c0_3] : memref<1024x1xf32, #tpu.memory_space<vmem>>, vector<128x1xf32>
    %10 = vector.broadcast %9 : vector<128x1xf32> to vector<128x128xf32>
    %11 = arith.addf %7, %10 : vector<128x128xf32>
    %cst_4 = arith.constant 0.00999999977 : f32
    %12 = vector.broadcast %cst_4 : f32 to vector<128x128xf32>
    %13 = arith.mulf %12, %11 : vector<128x128xf32>
    %14 = arith.maximumf %11, %13 : vector<128x128xf32>
    %15 = arith.index_cast %4 : i32 to index
    %c0_5 = arith.constant 0 : index
    %16 = vector.load %arg4[%15, %c0_5] : memref<1024x1xf32, #tpu.memory_space<vmem>>, vector<128x1xf32>
    %17 = vector.broadcast %16 : vector<128x1xf32> to vector<128x128xf32>
    %18 = arith.mulf %17, %14 : vector<128x128xf32>
    %cst_6 = arith.constant dense<0.000000e+00> : vector<128xf32>
    %19 = vector.multi_reduction <add>, %18, %cst_6 [0] : vector<128x128xf32> to vector<128xf32>
    %20 = vector.shape_cast %19 : vector<128xf32> to vector<1x128xf32>
    %21 = arith.addf %2, %20 : vector<1x128xf32>
    %c1_i32 = arith.constant 1 : i32
    %c128_i32_7 = arith.constant 128 : i32
    %22 = arith.muli %c1_i32, %c128_i32_7 : i32
    %23 = tpu.assume_multiple %22, 128 : i32
    %24 = arith.index_cast %23 : i32 to index
    %c0_8 = arith.constant 0 : index
    %25 = vector.load %arg2[%24, %c0_8] : memref<1024x64xbf16, #tpu.memory_space<vmem>>, vector<128x64xbf16>
    %cst_9 = arith.constant dense<0.000000e+00> : vector<128x128xf32>
    %26 = tpu.matmul %25, %1, %cst_9 {dimension_numbers = #tpu.dot_dimension_numbers<[1], [1], [0], [0], [0, 0, 1, 0], [], []>} : vector<128x64xbf16>, vector<128x64xbf16>, vector<128x128xf32> -> vector<128x128xf32>
    %27 = arith.index_cast %23 : i32 to index
    %c0_10 = arith.constant 0 : index
    %28 = vector.load %arg3[%27, %c0_10] : memref<1024x1xf32, #tpu.memory_space<vmem>>, vector<128x1xf32>
    %29 = vector.broadcast %28 : vector<128x1xf32> to vector<128x128xf32>
    %30 = arith.addf %26, %29 : vector<128x128xf32>
    %cst_11 = arith.constant 0.00999999977 : f32
    %31 = vector.broadcast %cst_11 : f32 to vector<128x128xf32>
    %32 = arith.mulf %31, %30 : vector<128x128xf32>
    %33 = arith.maximumf %30, %32 : vector<128x128xf32>
    %34 = arith.index_cast %23 : i32 to index
    %c0_12 = arith.constant 0 : index
    %35 = vector.load %arg4[%34, %c0_12] : memref<1024x1xf32, #tpu.memory_space<vmem>>, vector<128x1xf32>
    %36 = vector.broadcast %35 : vector<128x1xf32> to vector<128x128xf32>
    %37 = arith.mulf %36, %33 : vector<128x128xf32>
    %cst_13 = arith.constant dense<0.000000e+00> : vector<128xf32>
    %38 = vector.multi_reduction <add>, %37, %cst_13 [0] : vector<128x128xf32> to vector<128xf32>
    %39 = vector.shape_cast %38 : vector<128xf32> to vector<1x128xf32>
    %40 = arith.addf %21, %39 : vector<1x128xf32>
    %c2_i32 = arith.constant 2 : i32
    %c128_i32_14 = arith.constant 128 : i32
    %41 = arith.muli %c2_i32, %c128_i32_14 : i32
    %42 = tpu.assume_multiple %41, 128 : i32
    %43 = arith.index_cast %42 : i32 to index
    %c0_15 = arith.constant 0 : index
    %44 = vector.load %arg2[%43, %c0_15] : memref<1024x64xbf16, #tpu.memory_space<vmem>>, vector<128x64xbf16>
    %cst_16 = arith.constant dense<0.000000e+00> : vector<128x128xf32>
    %45 = tpu.matmul %44, %1, %cst_16 {dimension_numbers = #tpu.dot_dimension_numbers<[1], [1], [0], [0], [0, 0, 1, 0], [], []>} : vector<128x64xbf16>, vector<128x64xbf16>, vector<128x128xf32> -> vector<128x128xf32>
    %46 = arith.index_cast %42 : i32 to index
    %c0_17 = arith.constant 0 : index
    %47 = vector.load %arg3[%46, %c0_17] : memref<1024x1xf32, #tpu.memory_space<vmem>>, vector<128x1xf32>
    %48 = vector.broadcast %47 : vector<128x1xf32> to vector<128x128xf32>
    %49 = arith.addf %45, %48 : vector<128x128xf32>
    %cst_18 = arith.constant 0.00999999977 : f32
    %50 = vector.broadcast %cst_18 : f32 to vector<128x128xf32>
    %51 = arith.mulf %50, %49 : vector<128x128xf32>
    %52 = arith.maximumf %49, %51 : vector<128x128xf32>
    %53 = arith.index_cast %42 : i32 to index
    %c0_19 = arith.constant 0 : index
    %54 = vector.load %arg4[%53, %c0_19] : memref<1024x1xf32, #tpu.memory_space<vmem>>, vector<128x1xf32>
    %55 = vector.broadcast %54 : vector<128x1xf32> to vector<128x128xf32>
    %56 = arith.mulf %55, %52 : vector<128x128xf32>
    %cst_20 = arith.constant dense<0.000000e+00> : vector<128xf32>
    %57 = vector.multi_reduction <add>, %56, %cst_20 [0] : vector<128x128xf32> to vector<128xf32>
    %58 = vector.shape_cast %57 : vector<128xf32> to vector<1x128xf32>
    %59 = arith.addf %40, %58 : vector<1x128xf32>
    %c3_i32 = arith.constant 3 : i32
    %c128_i32_21 = arith.constant 128 : i32
    %60 = arith.muli %c3_i32, %c128_i32_21 : i32
    %61 = tpu.assume_multiple %60, 128 : i32
    %62 = arith.index_cast %61 : i32 to index
    %c0_22 = arith.constant 0 : index
    %63 = vector.load %arg2[%62, %c0_22] : memref<1024x64xbf16, #tpu.memory_space<vmem>>, vector<128x64xbf16>
    %cst_23 = arith.constant dense<0.000000e+00> : vector<128x128xf32>
    %64 = tpu.matmul %63, %1, %cst_23 {dimension_numbers = #tpu.dot_dimension_numbers<[1], [1], [0], [0], [0, 0, 1, 0], [], []>} : vector<128x64xbf16>, vector<128x64xbf16>, vector<128x128xf32> -> vector<128x128xf32>
    %65 = arith.index_cast %61 : i32 to index
    %c0_24 = arith.constant 0 : index
    %66 = vector.load %arg3[%65, %c0_24] : memref<1024x1xf32, #tpu.memory_space<vmem>>, vector<128x1xf32>
    %67 = vector.broadcast %66 : vector<128x1xf32> to vector<128x128xf32>
    %68 = arith.addf %64, %67 : vector<128x128xf32>
    %cst_25 = arith.constant 0.00999999977 : f32
    %69 = vector.broadcast %cst_25 : f32 to vector<128x128xf32>
    %70 = arith.mulf %69, %68 : vector<128x128xf32>
    %71 = arith.maximumf %68, %70 : vector<128x128xf32>
    %72 = arith.index_cast %61 : i32 to index
    %c0_26 = arith.constant 0 : index
    %73 = vector.load %arg4[%72, %c0_26] : memref<1024x1xf32, #tpu.memory_space<vmem>>, vector<128x1xf32>
    %74 = vector.broadcast %73 : vector<128x1xf32> to vector<128x128xf32>
    %75 = arith.mulf %74, %71 : vector<128x128xf32>
    %cst_27 = arith.constant dense<0.000000e+00> : vector<128xf32>
    %76 = vector.multi_reduction <add>, %75, %cst_27 [0] : vector<128x128xf32> to vector<128xf32>
    %77 = vector.shape_cast %76 : vector<128xf32> to vector<1x128xf32>
    %78 = arith.addf %59, %77 : vector<1x128xf32>
    %c4_i32 = arith.constant 4 : i32
    %c128_i32_28 = arith.constant 128 : i32
    %79 = arith.muli %c4_i32, %c128_i32_28 : i32
    %80 = tpu.assume_multiple %79, 128 : i32
    %81 = arith.index_cast %80 : i32 to index
    %c0_29 = arith.constant 0 : index
    %82 = vector.load %arg2[%81, %c0_29] : memref<1024x64xbf16, #tpu.memory_space<vmem>>, vector<128x64xbf16>
    %cst_30 = arith.constant dense<0.000000e+00> : vector<128x128xf32>
    %83 = tpu.matmul %82, %1, %cst_30 {dimension_numbers = #tpu.dot_dimension_numbers<[1], [1], [0], [0], [0, 0, 1, 0], [], []>} : vector<128x64xbf16>, vector<128x64xbf16>, vector<128x128xf32> -> vector<128x128xf32>
    %84 = arith.index_cast %80 : i32 to index
    %c0_31 = arith.constant 0 : index
    %85 = vector.load %arg3[%84, %c0_31] : memref<1024x1xf32, #tpu.memory_space<vmem>>, vector<128x1xf32>
    %86 = vector.broadcast %85 : vector<128x1xf32> to vector<128x128xf32>
    %87 = arith.addf %83, %86 : vector<128x128xf32>
    %cst_32 = arith.constant 0.00999999977 : f32
    %88 = vector.broadcast %cst_32 : f32 to vector<128x128xf32>
    %89 = arith.mulf %88, %87 : vector<128x128xf32>
    %90 = arith.maximumf %87, %89 : vector<128x128xf32>
    %91 = arith.index_cast %80 : i32 to index
    %c0_33 = arith.constant 0 : index
    %92 = vector.load %arg4[%91, %c0_33] : memref<1024x1xf32, #tpu.memory_space<vmem>>, vector<128x1xf32>
    %93 = vector.broadcast %92 : vector<128x1xf32> to vector<128x128xf32>
    %94 = arith.mulf %93, %90 : vector<128x128xf32>
    %cst_34 = arith.constant dense<0.000000e+00> : vector<128xf32>
    %95 = vector.multi_reduction <add>, %94, %cst_34 [0] : vector<128x128xf32> to vector<128xf32>
    %96 = vector.shape_cast %95 : vector<128xf32> to vector<1x128xf32>
    %97 = arith.addf %78, %96 : vector<1x128xf32>
    %c5_i32 = arith.constant 5 : i32
    %c128_i32_35 = arith.constant 128 : i32
    %98 = arith.muli %c5_i32, %c128_i32_35 : i32
    %99 = tpu.assume_multiple %98, 128 : i32
    %100 = arith.index_cast %99 : i32 to index
    %c0_36 = arith.constant 0 : index
    %101 = vector.load %arg2[%100, %c0_36] : memref<1024x64xbf16, #tpu.memory_space<vmem>>, vector<128x64xbf16>
    %cst_37 = arith.constant dense<0.000000e+00> : vector<128x128xf32>
    %102 = tpu.matmul %101, %1, %cst_37 {dimension_numbers = #tpu.dot_dimension_numbers<[1], [1], [0], [0], [0, 0, 1, 0], [], []>} : vector<128x64xbf16>, vector<128x64xbf16>, vector<128x128xf32> -> vector<128x128xf32>
    %103 = arith.index_cast %99 : i32 to index
    %c0_38 = arith.constant 0 : index
    %104 = vector.load %arg3[%103, %c0_38] : memref<1024x1xf32, #tpu.memory_space<vmem>>, vector<128x1xf32>
    %105 = vector.broadcast %104 : vector<128x1xf32> to vector<128x128xf32>
    %106 = arith.addf %102, %105 : vector<128x128xf32>
    %cst_39 = arith.constant 0.00999999977 : f32
    %107 = vector.broadcast %cst_39 : f32 to vector<128x128xf32>
    %108 = arith.mulf %107, %106 : vector<128x128xf32>
    %109 = arith.maximumf %106, %108 : vector<128x128xf32>
    %110 = arith.index_cast %99 : i32 to index
    %c0_40 = arith.constant 0 : index
    %111 = vector.load %arg4[%110, %c0_40] : memref<1024x1xf32, #tpu.memory_space<vmem>>, vector<128x1xf32>
    %112 = vector.broadcast %111 : vector<128x1xf32> to vector<128x128xf32>
    %113 = arith.mulf %112, %109 : vector<128x128xf32>
    %cst_41 = arith.constant dense<0.000000e+00> : vector<128xf32>
    %114 = vector.multi_reduction <add>, %113, %cst_41 [0] : vector<128x128xf32> to vector<128xf32>
    %115 = vector.shape_cast %114 : vector<128xf32> to vector<1x128xf32>
    %116 = arith.addf %97, %115 : vector<1x128xf32>
    %c6_i32 = arith.constant 6 : i32
    %c128_i32_42 = arith.constant 128 : i32
    %117 = arith.muli %c6_i32, %c128_i32_42 : i32
    %118 = tpu.assume_multiple %117, 128 : i32
    %119 = arith.index_cast %118 : i32 to index
    %c0_43 = arith.constant 0 : index
    %120 = vector.load %arg2[%119, %c0_43] : memref<1024x64xbf16, #tpu.memory_space<vmem>>, vector<128x64xbf16>
    %cst_44 = arith.constant dense<0.000000e+00> : vector<128x128xf32>
    %121 = tpu.matmul %120, %1, %cst_44 {dimension_numbers = #tpu.dot_dimension_numbers<[1], [1], [0], [0], [0, 0, 1, 0], [], []>} : vector<128x64xbf16>, vector<128x64xbf16>, vector<128x128xf32> -> vector<128x128xf32>
    %122 = arith.index_cast %118 : i32 to index
    %c0_45 = arith.constant 0 : index
    %123 = vector.load %arg3[%122, %c0_45] : memref<1024x1xf32, #tpu.memory_space<vmem>>, vector<128x1xf32>
    %124 = vector.broadcast %123 : vector<128x1xf32> to vector<128x128xf32>
    %125 = arith.addf %121, %124 : vector<128x128xf32>
    %cst_46 = arith.constant 0.00999999977 : f32
    %126 = vector.broadcast %cst_46 : f32 to vector<128x128xf32>
    %127 = arith.mulf %126, %125 : vector<128x128xf32>
    %128 = arith.maximumf %125, %127 : vector<128x128xf32>
    %129 = arith.index_cast %118 : i32 to index
    %c0_47 = arith.constant 0 : index
    %130 = vector.load %arg4[%129, %c0_47] : memref<1024x1xf32, #tpu.memory_space<vmem>>, vector<128x1xf32>
    %131 = vector.broadcast %130 : vector<128x1xf32> to vector<128x128xf32>
    %132 = arith.mulf %131, %128 : vector<128x128xf32>
    %cst_48 = arith.constant dense<0.000000e+00> : vector<128xf32>
    %133 = vector.multi_reduction <add>, %132, %cst_48 [0] : vector<128x128xf32> to vector<128xf32>
    %134 = vector.shape_cast %133 : vector<128xf32> to vector<1x128xf32>
    %135 = arith.addf %116, %134 : vector<1x128xf32>
    %c7_i32 = arith.constant 7 : i32
    %c128_i32_49 = arith.constant 128 : i32
    %136 = arith.muli %c7_i32, %c128_i32_49 : i32
    %137 = tpu.assume_multiple %136, 128 : i32
    %138 = arith.index_cast %137 : i32 to index
    %c0_50 = arith.constant 0 : index
    %139 = vector.load %arg2[%138, %c0_50] : memref<1024x64xbf16, #tpu.memory_space<vmem>>, vector<128x64xbf16>
    %cst_51 = arith.constant dense<0.000000e+00> : vector<128x128xf32>
    %140 = tpu.matmul %139, %1, %cst_51 {dimension_numbers = #tpu.dot_dimension_numbers<[1], [1], [0], [0], [0, 0, 1, 0], [], []>} : vector<128x64xbf16>, vector<128x64xbf16>, vector<128x128xf32> -> vector<128x128xf32>
    %141 = arith.index_cast %137 : i32 to index
    %c0_52 = arith.constant 0 : index
    %142 = vector.load %arg3[%141, %c0_52] : memref<1024x1xf32, #tpu.memory_space<vmem>>, vector<128x1xf32>
    %143 = vector.broadcast %142 : vector<128x1xf32> to vector<128x128xf32>
    %144 = arith.addf %140, %143 : vector<128x128xf32>
    %cst_53 = arith.constant 0.00999999977 : f32
    %145 = vector.broadcast %cst_53 : f32 to vector<128x128xf32>
    %146 = arith.mulf %145, %144 : vector<128x128xf32>
    %147 = arith.maximumf %144, %146 : vector<128x128xf32>
    %148 = arith.index_cast %137 : i32 to index
    %c0_54 = arith.constant 0 : index
    %149 = vector.load %arg4[%148, %c0_54] : memref<1024x1xf32, #tpu.memory_space<vmem>>, vector<128x1xf32>
    %150 = vector.broadcast %149 : vector<128x1xf32> to vector<128x128xf32>
    %151 = arith.mulf %150, %147 : vector<128x128xf32>
    %cst_55 = arith.constant dense<0.000000e+00> : vector<128xf32>
    %152 = vector.multi_reduction <add>, %151, %cst_55 [0] : vector<128x128xf32> to vector<128xf32>
    %153 = vector.shape_cast %152 : vector<128xf32> to vector<1x128xf32>
    %154 = arith.addf %135, %153 : vector<1x128xf32>
    %c8_i32 = arith.constant 8 : i32
    %c0_56 = arith.constant 0 : index
    %155 = memref.load %arg5[%c0_56] : memref<1xf32, #tpu.memory_space<smem>>
    %156 = vector.broadcast %155 : f32 to vector<1x128xf32>
    %157 = arith.addf %154, %156 : vector<1x128xf32>
    %cst_57 = arith.constant 0.000000e+00 : f32
    %158 = vector.broadcast %cst_57 : f32 to vector<1x128xf32>
    %159 = arith.maximumf %157, %158 : vector<1x128xf32>
    %160 = math.absf %157 : vector<1x128xf32>
    %cst_58 = arith.constant 0.000000e+00 : f32
    %161 = vector.broadcast %cst_58 : f32 to vector<1x128xf32>
    %162 = arith.subf %161, %160 : vector<1x128xf32>
    %163 = math.exp %162 : vector<1x128xf32>
    %164 = math.log1p %163 : vector<1x128xf32>
    %165 = arith.addf %159, %164 : vector<1x128xf32>
    %cst_59 = arith.constant 1.000000e+00 : f32
    %166 = vector.broadcast %cst_59 : f32 to vector<1x128xf32>
    %167 = arith.mulf %157, %166 : vector<1x128xf32>
    %168 = arith.subf %165, %167 : vector<1x128xf32>
    %c0_60 = arith.constant 0 : index
    %c0_61 = arith.constant 0 : index
    %169 = vector.load %arg6[%c0_60, %c0_61] : memref<2x128xf32, #tpu.memory_space<vmem>>, vector<1x128xf32>
    tpu.vector_store %arg6[%c0_60, %c0_61], %168 {strides = array<i32>} : memref<2x128xf32, #tpu.memory_space<vmem>>, vector<1x128xf32>,
    %cst_62 = arith.constant 0.000000e+00 : f32
    %170 = vector.broadcast %cst_62 : f32 to vector<1x128xf32>
    %171 = arith.mulf %157, %170 : vector<1x128xf32>
    %172 = arith.subf %165, %171 : vector<1x128xf32>
    %c1 = arith.constant 1 : index
    %c0_63 = arith.constant 0 : index
    %173 = vector.load %arg6[%c1, %c0_63] : memref<2x128xf32, #tpu.memory_space<vmem>>, vector<1x128xf32>
    tpu.vector_store %arg6[%c1, %c0_63], %172 {strides = array<i32>} : memref<2x128xf32, #tpu.memory_space<vmem>>, vector<1x128xf32>,
    return
  }
  func.func @transform_0(%arg0: i32) -> (i32, i32) {
    %c0_i32 = arith.constant 0 : i32
    %c0_i32_0 = arith.constant 0 : i32
    return %arg0, %c0_i32 : i32, i32
  }
  func.func @transform_1(%arg0: i32) -> (i32, i32) {
    %c0_i32 = arith.constant 0 : i32
    %c0_i32_0 = arith.constant 0 : i32
    %c0_i32_1 = arith.constant 0 : i32
    return %c0_i32, %c0_i32_0 : i32, i32
  }
  func.func @transform_2(%arg0: i32) -> (i32, i32) {
    %c0_i32 = arith.constant 0 : i32
    %c0_i32_0 = arith.constant 0 : i32
    %c0_i32_1 = arith.constant 0 : i32
    return %c0_i32, %c0_i32_0 : i32, i32
  }
  func.func @transform_3(%arg0: i32) -> (i32, i32) {
    %c0_i32 = arith.constant 0 : i32
    %c0_i32_0 = arith.constant 0 : i32
    %c0_i32_1 = arith.constant 0 : i32
    return %c0_i32, %c0_i32_0 : i32, i32
  }
  func.func @transform_4(%arg0: i32) -> i32 {
    %c0_i32 = arith.constant 0 : i32
    %c0_i32_0 = arith.constant 0 : i32
    return %c0_i32 : i32
  }
  func.func @transform_5(%arg0: i32) -> (i32, i32) {
    %c0_i32 = arith.constant 0 : i32
    %c0_i32_0 = arith.constant 0 : i32
    return %c0_i32, %arg0 : i32, i32
  }
}

</mosaic_0001>

<bundles_post_ra>
// kernel: tpu_custom_call.1
= control target key start
LH: loop header
LB: loop body
LE: loop exit
PB: predicated region body
PF: predicated region fallthrough
CT: control target
= control target key end

     0   :  { %v4650_v3 = vmov 0   ;;  %vm199_vm0 = vcmask 523264   ;;  %s6785_s0 = inlined_call_operand.vmem [shape: f32[8,64], index: 0, kind: input, shape index: {}]   ;;  %s6786_s1 = inlined_call_operand.vmem [shape: bf16[1024,64], index: 1, kind: input, shape index: {}]   ;;  %s6787_s2 = inlined_call_operand.vmem [shape: f32[1024,1], index: 2, kind: input, shape index: {}]   ;;  %s6788_s3 = inlined_call_operand.vmem [shape: f32[1024,1], index: 3, kind: input, shape index: {}]   ;;  %s6789_s4 = inlined_call_operand.<no memory space> [shape: f32[1], index: 4, kind: input, shape index: {}]   ;;  %s6790_s5 = inlined_call_operand.hbm [shape: f32[2,128], index: 5, kind: output, shape index: {}]  }
   0x1   :  { %v65_v0 = vld [vmem:[%s6787_s2 + $0x10] sm:$0xff]  ;;  %v63_v1 = vld [vmem:[%s6787_s2] sm:$0xff]  ;;  %4557 = vset.pattern.permute.xlu1 %v4650_v3  ;;  %4556 = vset.pattern.permute.xlu0 %v4650_v3  ;;  %v24_v4 = vld [vmem:[%s6785_s0 + $0x8] sm:$0xff] }
   0x2   :  { %v23_v2 = vld [vmem:[%s6785_s0] sm:$0xff]  ;;  %91 = vperm.xlu1 %4557, %v65_v0   ;;  %81 = vperm.xlu0 %4556, %v63_v1   ;;  %v25_v6 = vld [vmem:[%s6785_s0 + $0x10] sm:$0xff]  ;;  %v66_v7 = vld [vmem:[%s6787_s2 + $0x18] sm:$0xff] }
   0x3   :  { %v4694_v5 = vpack.c.bf16 %v24_v4, %v23_v2  ;;  %v64_v8 = vld [vmem:[%s6787_s2 + $0x8] sm:$0xff]  ;;  %v26_v9 = vld [vmem:[%s6785_s0 + $0x18] sm:$0xff]  ;;  %v67_v13 = vld [vmem:[%s6787_s2 + $0x20] sm:$0xff] }
   0x4   :  { %v4716_v11 = vpack.c.bf16 %v26_v9, %v25_v6  ;;  %v68_v12 = vld [vmem:[%s6787_s2 + $0x28] sm:$0xff]  ;;  %v27_v14 = vld [vmem:[%s6785_s0 + $0x20] sm:$0xff]  ;;  %v70_v17 = vld [vmem:[%s6787_s2 + $0x38] sm:$0xff] }
   0x5   :  { %4490 = vmatprep.subr.msk.bf16.mxu0 %vm199_vm0, %v4694_v5  ;;  %4498 = vmatprep.subr.msk.bf16.mxu1 %vm199_vm0, %v4694_v5  ;;  %v4714_v10 = vsel %vm199_vm0, %v4694_v5, 0  ;;  %v28_v15 = vld [vmem:[%s6785_s0 + $0x28] sm:$0xff]  ;;  %v69_v18 = vld [vmem:[%s6787_s2 + $0x30] sm:$0xff]  ;;  %v71_v21 = vld [vmem:[%s6787_s2 + $0x40] sm:$0xff] }
   0x6   :  { %4235 = vmatpush3.bf16.xpose.msra.mxu0 %v4714_v10  ;;  %4267 = vmatpush3.bf16.xpose.msra.mxu1 %v4714_v10  ;;  %v4738_v16 = vsel %vm199_vm0, %v4716_v11, 0  ;;  %v4746_v19 = vpack.c.bf16 %v28_v15, %v27_v14  ;;  %v72_v20 = vld [vmem:[%s6787_s2 + $0x48] sm:$0xff]  ;;  %v29_v22 = vld [vmem:[%s6785_s0 + $0x30] sm:$0xff]  ;;  %v30_v23 = vld [vmem:[%s6785_s0 + $0x38] sm:$0xff] }
   0x7   :  { %96 = vperm.xlu1 %4557, %v66_v7   ;;  %86 = vperm.xlu0 %4556, %v64_v8   ;;  %v4558_v24 = vld [vmem:[%s6786_s1 + $0x40] sm:$0xff]   ;;  %v74_v25 = vld [vmem:[%s6787_s2 + $0x58] sm:$0xff]  ;;  %v73_v28 = vld [vmem:[%s6787_s2 + $0x50] sm:$0xff]  ;;  %v4782_v29 = vpack.c.bf16 %v30_v23, %v29_v22 }
   0x8   :  { %4491 = vmatprep.subr.msk.bf16.mxu0 %vm199_vm0, %v4716_v11  ;;  %4499 = vmatprep.subr.msk.bf16.mxu1 %vm199_vm0, %v4716_v11  ;;  %v4774_v26 = vsel %vm199_vm0, %v4746_v19, 0  ;;  %v4559_v27 = vld [vmem:[%s6786_s1] sm:$0xff]   ;;  %v76_v30 = vld [vmem:[%s6787_s2 + $0x68] sm:$0xff]  ;;  %v78_v35 = vld [vmem:[%s6787_s2 + $0x78] sm:$0xff] }
   0x9   :  { %4282 = vmatprep.mubr.msk.bf16.mxu1 %vm199_vm0, %v4558_v24  ;;  %4250 = vmatprep.mubr.msk.bf16.mxu0 %vm199_vm0, %v4559_v27  ;;  %v75_v31 = vld [vmem:[%s6787_s2 + $0x60] sm:$0xff]  ;;  %v32_v33 = vld [vmem:[%s6785_s0 + $0x48] sm:$0xff]  ;;  %v4806_v34 = vsel %vm199_vm0, %v4782_v29, 0  ;;  %v77_v36 = vld [vmem:[%s6787_s2 + $0x70] sm:$0xff] }
   0xa   :  { %v31_v32 = vld [vmem:[%s6785_s0 + $0x40] sm:$0xff]  ;;  %v378_v38 = vld [vmem:[%s6788_s3 + $0x8] sm:$0xff]  ;;  %v33_v40 = vld [vmem:[%s6785_s0 + $0x50] sm:$0xff] }
   0xb   :  { %106 = vperm.xlu1 %4557, %v68_v12   ;;  %101 = vperm.xlu0 %4556, %v67_v13   ;;  %v4814_v37 = vpack.c.bf16 %v32_v33, %v31_v32  ;;  %v377_v39 = vld [vmem:[%s6788_s3] sm:$0xff]  ;;  %v34_v41 = vld [vmem:[%s6785_s0 + $0x58] sm:$0xff]  ;;  %v379_v44 = vld [vmem:[%s6788_s3 + $0x10] sm:$0xff] }
   0xc   :  { %v380_v43 = vld [vmem:[%s6788_s3 + $0x18] sm:$0xff]  ;;  %v4844_v45 = vpack.c.bf16 %v34_v41, %v33_v40  ;;  %v382_v46 = vld [vmem:[%s6788_s3 + $0x28] sm:$0xff]  ;;  %v381_v47 = vld [vmem:[%s6788_s3 + $0x20] sm:$0xff] }
   0xd   :  { %v4836_v42 = vsel %vm199_vm0, %v4814_v37, 0  ;;  %v35_v48 = vld [vmem:[%s6785_s0 + $0x60] sm:$0xff]  ;;  %v36_v49 = vld [vmem:[%s6785_s0 + $0x68] sm:$0xff]  ;;  %v384_v51 = vld [vmem:[%s6788_s3 + $0x38] sm:$0xff] }
   0xe   :  { %4237 = vmatpush3.bf16.xpose.msra.mxu0 %v4738_v16  ;;  %4269 = vmatpush3.bf16.xpose.msra.mxu1 %v4738_v16  ;;  %v4866_v50 = vsel %vm199_vm0, %v4844_v45, 0  ;;  %v383_v52 = vld [vmem:[%s6788_s3 + $0x30] sm:$0xff]  ;;  %v4874_v53 = vpack.c.bf16 %v36_v49, %v35_v48  ;;  %v386_v54 = vld [vmem:[%s6788_s3 + $0x48] sm:$0xff]  ;;  %v385_v55 = vld [vmem:[%s6788_s3 + $0x40] sm:$0xff] }
   0xf   :  { %116 = vperm.xlu1 %4557, %v70_v17   ;;  %111 = vperm.xlu0 %4556, %v69_v18   ;;  %v37_v56 = vld [vmem:[%s6785_s0 + $0x70] sm:$0xff]  ;;  %v38_v57 = vld [vmem:[%s6785_s0 + $0x78] sm:$0xff]  ;;  %v390_v62 = vld [vmem:[%s6788_s3 + $0x68] sm:$0xff] }
  0x10   :  { %4492 = vmatprep.subr.msk.bf16.mxu0 %vm199_vm0, %v4746_v19  ;;  %4500 = vmatprep.subr.msk.bf16.mxu1 %vm199_vm0, %v4746_v19  ;;  %v4896_v58 = vsel %vm199_vm0, %v4874_v53, 0  ;;  %v388_v59 = vld [vmem:[%s6788_s3 + $0x58] sm:$0xff]  ;;  %v387_v60 = vld [vmem:[%s6788_s3 + $0x50] sm:$0xff]  ;;  %v4904_v61 = vpack.c.bf16 %v38_v57, %v37_v56  ;;  %v389_v63 = vld [vmem:[%s6788_s3 + $0x60] sm:$0xff] }
  0x11   :  { %v392_v1 = vld [vmem:[%s6788_s3 + $0x78] sm:$0xff]  ;;  %v391_v2 = vld [vmem:[%s6788_s3 + $0x70] sm:$0xff]  ;;  %v3675_v3 = vld [vmem:[%s6787_s2 + $0x88] sm:$0xff] }
  0x12   :  { %v4920_v0 = vsel %vm199_vm0, %v4904_v61, 0  ;;  %v3674_v4 = vld [vmem:[%s6787_s2 + $0x80] sm:$0xff]  ;;  %v4560_v6 = vld [vmem:[%s6786_s1 + $0x8] sm:$0xff]   ;;  %v3677_v8 = vld [vmem:[%s6787_s2 + $0x98] sm:$0xff] }
  0x13   :  { %126 = vperm.xlu1 %4557, %v72_v20   ;;  %121 = vperm.xlu0 %4556, %v71_v21   ;;  %v4561_v7 = vld [vmem:[%s6786_s1 + $0x48] sm:$0xff]   ;;  %v3676_v9 = vld [vmem:[%s6787_s2 + $0x90] sm:$0xff]  ;;  %v3678_v15 = vld [vmem:[%s6787_s2 + $0xa0] sm:$0xff] }
  0x14   :  { %v4562_v12 = vld [vmem:[%s6786_s1 + $0x10] sm:$0xff]   ;;  %v3679_v14 = vld [vmem:[%s6787_s2 + $0xa8] sm:$0xff]  ;;  %v4564_v17 = vld [vmem:[%s6786_s1 + $0x18] sm:$0xff]  }
  0x15   :  { %v4563_v13 = vld [vmem:[%s6786_s1 + $0x50] sm:$0xff]   ;;  %v4565_v18 = vld [vmem:[%s6786_s1 + $0x58] sm:$0xff]   ;;  %v4566_v22 = vld [vmem:[%s6786_s1 + $0x20] sm:$0xff]  }
  0x16   :  { %4239 = vmatpush3.bf16.xpose.msra.mxu0 %v4774_v26  ;;  %4271 = vmatpush3.bf16.xpose.msra.mxu1 %v4774_v26  ;;  %v3681_v20 = vld [vmem:[%s6787_s2 + $0xb8] sm:$0xff]  ;;  %v3680_v21 = vld [vmem:[%s6787_s2 + $0xb0] sm:$0xff]  ;;  %v4567_v23 = vld [vmem:[%s6786_s1 + $0x60] sm:$0xff]  }
  0x17   :  { %136 = vperm.xlu1 %4557, %v74_v25   ;;  %131 = vperm.xlu0 %4556, %v73_v28   ;;  %v3683_v24 = vld [vmem:[%s6787_s2 + $0xc8] sm:$0xff]  ;;  %v3682_v25 = vld [vmem:[%s6787_s2 + $0xc0] sm:$0xff]  ;;  %v4570_v32 = vld [vmem:[%s6786_s1 + $0x30] sm:$0xff]  }
  0x18   :  { %4493 = vmatprep.subr.msk.bf16.mxu0 %vm199_vm0, %v4782_v29  ;;  %4501 = vmatprep.subr.msk.bf16.mxu1 %vm199_vm0, %v4782_v29  ;;  %v4568_v27 = vld [vmem:[%s6786_s1 + $0x28] sm:$0xff]   ;;  %v4571_v33 = vld [vmem:[%s6786_s1 + $0x70] sm:$0xff]   ;;  %v3689_v40 = vld [vmem:[%s6787_s2 + $0xf8] sm:$0xff] }
  0x19   :  { %v4569_v28 = vld [vmem:[%s6786_s1 + $0x68] sm:$0xff]   ;;  %v3688_v41 = vld [vmem:[%s6787_s2 + $0xf0] sm:$0xff]  ;;  %v3709_v48 = vld [vmem:[%s6788_s3 + $0x98] sm:$0xff] }
  0x1a   :  { %v3708_v49 = vld [vmem:[%s6788_s3 + $0x90] sm:$0xff] }
  0x1b   :  { %146 = vperm.xlu1 %4557, %v76_v30   ;;  %141 = vperm.xlu0 %4556, %v75_v31   ;;  %v3685_v30 = vld [vmem:[%s6787_s2 + $0xd8] sm:$0xff]  ;;  %v3684_v31 = vld [vmem:[%s6787_s2 + $0xd0] sm:$0xff] }
  0x1e   :  { %4241 = vmatpush3.bf16.xpose.msra.mxu0 %v4806_v34  ;;  %4273 = vmatpush3.bf16.xpose.msra.mxu1 %v4806_v34 }
  0x1f   :  { %156 = vperm.xlu1 %4557, %v78_v35   ;;  %151 = vperm.xlu0 %4556, %v77_v36   ;;  %v3687_v35 = vld [vmem:[%s6787_s2 + $0xe8] sm:$0xff]  ;;  %v3686_v36 = vld [vmem:[%s6787_s2 + $0xe0] sm:$0xff] }
  0x20   :  { %4494 = vmatprep.subr.msk.bf16.mxu0 %vm199_vm0, %v4814_v37  ;;  %4502 = vmatprep.subr.msk.bf16.mxu1 %vm199_vm0, %v4814_v37 }
  0x23   :  { %400 = vperm.xlu1 %4557, %v378_v38   ;;  %395 = vperm.xlu0 %4556, %v377_v39   ;;  %v4572_v38 = vld [vmem:[%s6786_s1 + $0x38] sm:$0xff]  }
  0x24   :  { %v4573_v39 = vld [vmem:[%s6786_s1 + $0x78] sm:$0xff]  }
  0x26   :  { %4243 = vmatpush3.bf16.xpose.msra.mxu0 %v4836_v42  ;;  %4275 = vmatpush3.bf16.xpose.msra.mxu1 %v4836_v42 }
  0x27   :  { %410 = vperm.xlu1 %4557, %v380_v43   ;;  %405 = vperm.xlu0 %4556, %v379_v44   ;;  %v4574_v43 = vld [vmem:[%s6786_s1 + $0x80] sm:$0xff]  }
  0x28   :  { %4495 = vmatprep.subr.msk.bf16.mxu0 %vm199_vm0, %v4844_v45  ;;  %4503 = vmatprep.subr.msk.bf16.mxu1 %vm199_vm0, %v4844_v45  ;;  %v4575_v44 = vld [vmem:[%s6786_s1 + $0xc0] sm:$0xff]  }
  0x2b   :  { %420 = vperm.xlu1 %4557, %v382_v46   ;;  %415 = vperm.xlu0 %4556, %v381_v47   ;;  %v3707_v46 = vld [vmem:[%s6788_s3 + $0x88] sm:$0xff]  ;;  %v3706_v47 = vld [vmem:[%s6788_s3 + $0x80] sm:$0xff] }
  0x2e   :  { %4245 = vmatpush3.bf16.xpose.msra.mxu0 %v4866_v50  ;;  %4277 = vmatpush3.bf16.xpose.msra.mxu1 %v4866_v50 }
  0x2f   :  { %430 = vperm.xlu1 %4557, %v384_v51   ;;  %425 = vperm.xlu0 %4556, %v383_v52  }
  0x30   :  { %4496 = vmatprep.subr.msk.bf16.mxu0 %vm199_vm0, %v4874_v53  ;;  %4504 = vmatprep.subr.msk.bf16.mxu1 %vm199_vm0, %v4874_v53 }
  0x33   :  { %440 = vperm.xlu1 %4557, %v386_v54   ;;  %435 = vperm.xlu0 %4556, %v385_v55  }
  0x36   :  { %4247 = vmatpush3.bf16.xpose.msra.mxu0 %v4896_v58  ;;  %4279 = vmatpush3.bf16.xpose.msra.mxu1 %v4896_v58 }
  0x37   :  { %450 = vperm.xlu1 %4557, %v388_v59   ;;  %445 = vperm.xlu0 %4556, %v387_v60  }
  0x38   :  { %4497 = vmatprep.subr.msk.bf16.mxu0 %vm199_vm0, %v4904_v61  ;;  %4505 = vmatprep.subr.msk.bf16.mxu1 %vm199_vm0, %v4904_v61 }
  0x3b   :  { %460 = vperm.xlu1 %4557, %v390_v62   ;;  %455 = vperm.xlu0 %4556, %v389_v63  }
  0x3e   :  { %4249 = vmatpush3.bf16.xpose.msra.mxu0 %v4920_v0  ;;  %4281 = vmatpush3.bf16.xpose.msra.mxu1 %v4920_v0 }
  0x3f   :  { %470 = vperm.xlu1 %4557, %v392_v1   ;;  %465 = vperm.xlu0 %4556, %v391_v2  }
  0x40   :  { %4506 = vmatprep.subr.msk.bf16.mxu0 %vm199_vm0, %v4694_v5  ;;  %4514 = vmatprep.subr.msk.bf16.mxu1 %vm199_vm0, %v4694_v5 }
  0x43   :  { %552 = vperm.xlu1 %4557, %v3675_v3   ;;  %547 = vperm.xlu0 %4556, %v3674_v4  }
  0x45   :  { %4251 = vmatmul.mubr.msk.bf16.vlgmr.msra.gmra.mrb[0].mxu0 %vm199_vm0, %v4560_v6  ;;  %4283 = vmatmul.mubr.msk.bf16.vlgmr.msra.gmra.mrb[0].mxu1 %vm199_vm0, %v4561_v7 }
  0x46   :  { %4299 = vmatpush3.bf16.xpose.msra.mxu0 %v4714_v10  ;;  %4331 = vmatpush3.bf16.xpose.msra.mxu1 %v4714_v10 }
  0x47   :  { %562 = vperm.xlu1 %4557, %v3677_v8   ;;  %557 = vperm.xlu0 %4556, %v3676_v9  }
  0x48   :  { %4254 = vmatprep.mubr.msk.bf16.mxu0 %vm199_vm0, %v4562_v12  ;;  %4286 = vmatprep.mubr.msk.bf16.mxu1 %vm199_vm0, %v4563_v13 }
  0x49   :  { %4507 = vmatprep.subr.msk.bf16.mxu0 %vm199_vm0, %v4716_v11  ;;  %4515 = vmatprep.subr.msk.bf16.mxu1 %vm199_vm0, %v4716_v11 }
  0x4b   :  { %572 = vperm.xlu1 %4557, %v3679_v14   ;;  %567 = vperm.xlu0 %4556, %v3678_v15  }
  0x4d   :  { %4255 = vmatmul.mubr.msk.bf16.gmra.mrb[4].mxu0 %vm199_vm0, %v4564_v17  ;;  %4287 = vmatmul.mubr.msk.bf16.gmra.mrb[4].mxu1 %vm199_vm0, %v4565_v18 }
  0x4e   :  { %4301 = vmatpush3.bf16.xpose.msra.mxu0 %v4738_v16  ;;  %4333 = vmatpush3.bf16.xpose.msra.mxu1 %v4738_v16 }
  0x4f   :  { %582 = vperm.xlu1 %4557, %v3681_v20   ;;  %577 = vperm.xlu0 %4556, %v3680_v21  }
  0x50   :  { %4258 = vmatprep.mubr.msk.bf16.mxu0 %vm199_vm0, %v4566_v22  ;;  %4290 = vmatprep.mubr.msk.bf16.mxu1 %vm199_vm0, %v4567_v23 }
  0x51   :  { %4508 = vmatprep.subr.msk.bf16.mxu0 %vm199_vm0, %v4746_v19  ;;  %4516 = vmatprep.subr.msk.bf16.mxu1 %vm199_vm0, %v4746_v19 }
  0x53   :  { %592 = vperm.xlu1 %4557, %v3683_v24   ;;  %587 = vperm.xlu0 %4556, %v3682_v25  }
  0x55   :  { %4259 = vmatmul.mubr.msk.bf16.gmra.mrb[8].mxu0 %vm199_vm0, %v4568_v27  ;;  %4291 = vmatmul.mubr.msk.bf16.gmra.mrb[8].mxu1 %vm199_vm0, %v4569_v28 }
  0x56   :  { %4303 = vmatpush3.bf16.xpose.msra.mxu0 %v4774_v26  ;;  %4335 = vmatpush3.bf16.xpose.msra.mxu1 %v4774_v26 }
  0x57   :  { %602 = vperm.xlu1 %4557, %v3685_v30   ;;  %597 = vperm.xlu0 %4556, %v3684_v31  }
  0x58   :  { %4262 = vmatprep.mubr.msk.bf16.mxu0 %vm199_vm0, %v4570_v32  ;;  %4294 = vmatprep.mubr.msk.bf16.mxu1 %vm199_vm0, %v4571_v33 }
  0x59   :  { %4509 = vmatprep.subr.msk.bf16.mxu0 %vm199_vm0, %v4782_v29  ;;  %4517 = vmatprep.subr.msk.bf16.mxu1 %vm199_vm0, %v4782_v29 }
  0x5b   :  { %612 = vperm.xlu1 %4557, %v3687_v35   ;;  %607 = vperm.xlu0 %4556, %v3686_v36  }
  0x5d   :  { %4263 = vmatmul.mubr.msk.bf16.gmra.mrb[12].mxu0 %vm199_vm0, %v4572_v38  ;;  %4295 = vmatmul.mubr.msk.bf16.gmra.mrb[12].mxu1 %vm199_vm0, %v4573_v39 }
  0x5e   :  { %4305 = vmatpush3.bf16.xpose.msra.mxu0 %v4806_v34  ;;  %4337 = vmatpush3.bf16.xpose.msra.mxu1 %v4806_v34 }
  0x5f   :  { %622 = vperm.xlu1 %4557, %v3689_v40   ;;  %617 = vperm.xlu0 %4556, %v3688_v41  }
  0x60   :  { %4510 = vmatprep.subr.msk.bf16.mxu0 %vm199_vm0, %v4814_v37  ;;  %4518 = vmatprep.subr.msk.bf16.mxu1 %vm199_vm0, %v4814_v37 }
  0x61   :  { %4314 = vmatprep.mubr.msk.bf16.mxu0 %vm199_vm0, %v4574_v43  ;;  %4346 = vmatprep.mubr.msk.bf16.mxu1 %vm199_vm0, %v4575_v44 }
  0x63   :  { %842 = vperm.xlu1 %4557, %v3707_v46   ;;  %837 = vperm.xlu0 %4556, %v3706_v47  }
  0x64   :  { %11 = vsyncpa [#allocation4], 0  ;;  %v3711_v51 = vld [vmem:[%s6788_s3 + $0xa8] sm:$0xff]  ;;  %v3710_v52 = vld [vmem:[%s6788_s3 + $0xa0] sm:$0xff]  ;;  %s4651_s9 = smov [#allocation3]  }
  0x65   :  { %v3713_v54 = vld [vmem:[%s6788_s3 + $0xb8] sm:$0xff]  ;;  %v3712_v55 = vld [vmem:[%s6788_s3 + $0xb0] sm:$0xff]  ;;  %v3715_v56 = vld [vmem:[%s6788_s3 + $0xc8] sm:$0xff] }
  0x66   :  { %4307 = vmatpush3.bf16.xpose.msra.mxu0 %v4836_v42  ;;  %4339 = vmatpush3.bf16.xpose.msra.mxu1 %v4836_v42  ;;  %v3714_v57 = vld [vmem:[%s6788_s3 + $0xc0] sm:$0xff]  ;;  %v3717_v59 = vld [vmem:[%s6788_s3 + $0xd8] sm:$0xff]  ;;  %v3716_v60 = vld [vmem:[%s6788_s3 + $0xd0] sm:$0xff] }
  0x67   :  { %852 = vperm.xlu1 %4557, %v3709_v48   ;;  %847 = vperm.xlu0 %4556, %v3708_v49   ;;  %v3719_v62 = vld [vmem:[%s6788_s3 + $0xe8] sm:$0xff]  ;;  %v3718_v63 = vld [vmem:[%s6788_s3 + $0xe0] sm:$0xff]  ;;  %v3721_v1 = vld [vmem:[%s6788_s3 + $0xf8] sm:$0xff] }
  0x68   :  { %4511 = vmatprep.subr.msk.bf16.mxu0 %vm199_vm0, %v4844_v45  ;;  %4519 = vmatprep.subr.msk.bf16.mxu1 %vm199_vm0, %v4844_v45  ;;  %v3720_v2 = vld [vmem:[%s6788_s3 + $0xf0] sm:$0xff]  ;;  %v3739_v3 = vld [vmem:[%s6787_s2 + $0x108] sm:$0xff]  ;;  %v3738_v4 = vld [vmem:[%s6787_s2 + $0x100] sm:$0xff] }
  0x69   :  { %v4576_v6 = vld [vmem:[%s6786_s1 + $0x88] sm:$0xff]   ;;  %v4578_v12 = vld [vmem:[%s6786_s1 + $0x90] sm:$0xff]   ;;  %v3741_v13 = vld [vmem:[%s6787_s2 + $0x118] sm:$0xff] }
  0x6a   :  { %v4577_v7 = vld [vmem:[%s6786_s1 + $0xc8] sm:$0xff]   ;;  %v3740_v14 = vld [vmem:[%s6787_s2 + $0x110] sm:$0xff]  ;;  %v3742_v21 = vld [vmem:[%s6787_s2 + $0x120] sm:$0xff] }
  0x6b   :  { %862 = vperm.xlu1 %4557, %v3711_v51   ;;  %857 = vperm.xlu0 %4556, %v3710_v52   ;;  %v4579_v15 = vld [vmem:[%s6786_s1 + $0xd0] sm:$0xff]   ;;  %v3743_v20 = vld [vmem:[%s6787_s2 + $0x128] sm:$0xff]  ;;  %v4580_v22 = vld [vmem:[%s6786_s1 + $0x98] sm:$0xff]  }
  0x6c   :  { %v4581_v23 = vld [vmem:[%s6786_s1 + $0xd8] sm:$0xff]   ;;  %v4582_v27 = vld [vmem:[%s6786_s1 + $0xa0] sm:$0xff]   ;;  %v3744_v30 = vld [vmem:[%s6787_s2 + $0x130] sm:$0xff] }
  0x6d   :  { %v3745_v28 = vld [vmem:[%s6787_s2 + $0x138] sm:$0xff]  ;;  %v4583_v31 = vld [vmem:[%s6786_s1 + $0xe0] sm:$0xff]   ;;  %v3747_v35 = vld [vmem:[%s6787_s2 + $0x148] sm:$0xff] }
  0x6e   :  { %4309 = vmatpush3.bf16.xpose.msra.mxu0 %v4866_v50  ;;  %4341 = vmatpush3.bf16.xpose.msra.mxu1 %v4866_v50  ;;  %v3746_v36 = vld [vmem:[%s6787_s2 + $0x140] sm:$0xff]  ;;  %v4584_v38 = vld [vmem:[%s6786_s1 + $0xa8] sm:$0xff]   ;;  %v4586_v43 = vld [vmem:[%s6786_s1 + $0xb0] sm:$0xff]  }
  0x6f   :  { %872 = vperm.xlu1 %4557, %v3713_v54   ;;  %867 = vperm.xlu0 %4556, %v3712_v55   ;;  %v4585_v39 = vld [vmem:[%s6786_s1 + $0xe8] sm:$0xff]   ;;  %v3749_v44 = vld [vmem:[%s6787_s2 + $0x158] sm:$0xff]  ;;  %v3748_v46 = vld [vmem:[%s6787_s2 + $0x150] sm:$0xff] }
  0x70   :  { %4512 = vmatprep.subr.msk.bf16.mxu0 %vm199_vm0, %v4874_v53  ;;  %4520 = vmatprep.subr.msk.bf16.mxu1 %vm199_vm0, %v4874_v53  ;;  %v4587_v47 = vld [vmem:[%s6786_s1 + $0xf0] sm:$0xff]   ;;  %v3751_v51 = vld [vmem:[%s6787_s2 + $0x168] sm:$0xff]  ;;  %v3750_v52 = vld [vmem:[%s6787_s2 + $0x160] sm:$0xff] }
  0x71   :  { %v4588_v54 = vld [vmem:[%s6786_s1 + $0xb8] sm:$0xff]  }
  0x72   :  { %v4589_v55 = vld [vmem:[%s6786_s1 + $0xf8] sm:$0xff]  }
  0x73   :  { %882 = vperm.xlu1 %4557, %v3715_v56   ;;  %877 = vperm.xlu0 %4556, %v3714_v57  }
  0x76   :  { %4311 = vmatpush3.bf16.xpose.msra.mxu0 %v4896_v58  ;;  %4343 = vmatpush3.bf16.xpose.msra.mxu1 %v4896_v58 }
  0x77   :  { %892 = vperm.xlu1 %4557, %v3717_v59   ;;  %887 = vperm.xlu0 %4556, %v3716_v60   ;;  %v4590_v59 = vld [vmem:[%s6786_s1 + $0x100] sm:$0xff]   ;;  %v3753_v60 = vld [vmem:[%s6787_s2 + $0x178] sm:$0xff] }
  0x78   :  { %4513 = vmatprep.subr.msk.bf16.mxu0 %vm199_vm0, %v4904_v61  ;;  %4521 = vmatprep.subr.msk.bf16.mxu1 %vm199_vm0, %v4904_v61 }
  0x7b   :  { %902 = vperm.xlu1 %4557, %v3719_v62   ;;  %897 = vperm.xlu0 %4556, %v3718_v63   ;;  %v3752_v62 = vld [vmem:[%s6787_s2 + $0x170] sm:$0xff]  ;;  %v4598_v63 = vld [vmem:[%s6786_s1 + $0x140] sm:$0xff]  }
  0x7e   :  { %4313 = vmatpush3.bf16.xpose.msra.mxu0 %v4920_v0  ;;  %4345 = vmatpush3.bf16.xpose.msra.mxu1 %v4920_v0 }
  0x7f   :  { %912 = vperm.xlu1 %4557, %v3721_v1   ;;  %907 = vperm.xlu0 %4556, %v3720_v2  }
  0x80   :  { %4522 = vmatprep.subr.msk.bf16.mxu0 %vm199_vm0, %v4694_v5  ;;  %4530 = vmatprep.subr.msk.bf16.mxu1 %vm199_vm0, %v4694_v5 }
  0x81   :  { %v5154_v8 = vpop.permute.xlu1 %91  ;;  %v5156_v9 = vpop.permute.xlu0 %81 }
  0x83   :  { %994 = vperm.xlu1 %4557, %v3739_v3   ;;  %989 = vperm.xlu0 %4556, %v3738_v4   ;;  %v3771_v3 = vld [vmem:[%s6788_s3 + $0x108] sm:$0xff]  ;;  %v3770_v4 = vld [vmem:[%s6788_s3 + $0x100] sm:$0xff] }
  0x85   :  { %4315 = vmatmul.mubr.msk.bf16.vlgmr.msra.gmra.mrb[16].mxu0 %vm199_vm0, %v4576_v6  ;;  %4347 = vmatmul.mubr.msk.bf16.vlgmr.msra.gmra.mrb[16].mxu1 %vm199_vm0, %v4577_v7 }
  0x86   :  { %4363 = vmatpush3.bf16.xpose.msra.mxu0 %v4714_v10  ;;  %v5173_v17 = vpop.permute.xlu1 %96  ;;  %v5175_v18 = vpop.permute.xlu0 %86  ;;  %4318 = vmatprep.mubr.msk.bf16.mxu0 %vm199_vm0, %v4578_v12  ;;  %v3773_v12 = vld [vmem:[%s6788_s3 + $0x118] sm:$0xff] }
  0x87   :  { %1004 = vperm.xlu1 %4557, %v3741_v13   ;;  %999 = vperm.xlu0 %4556, %v3740_v14   ;;  %v3772_v13 = vld [vmem:[%s6788_s3 + $0x110] sm:$0xff] }
  0x88   :  { %4350 = vmatprep.mubr.msk.bf16.mxu1 %vm199_vm0, %v4579_v15  ;;  %4523 = vmatprep.subr.msk.bf16.mxu0 %vm199_vm0, %v4716_v11 }
  0x89   :  { %4395 = vmatpush3.bf16.xpose.msra.mxu1 %v4714_v10 }
  0x8a   :  { %v5194_v24 = vpop.permute.xlu1 %106  ;;  %v5196_v25 = vpop.permute.xlu0 %101  ;;  %4531 = vmatprep.subr.msk.bf16.mxu1 %vm199_vm0, %v4716_v11 }
  0x8b   :  { %1014 = vperm.xlu1 %4557, %v3743_v20   ;;  %1009 = vperm.xlu0 %4556, %v3742_v21   ;;  %v3775_v20 = vld [vmem:[%s6788_s3 + $0x128] sm:$0xff]  ;;  %v3774_v21 = vld [vmem:[%s6788_s3 + $0x120] sm:$0xff] }
  0x8d   :  { %4319 = vmatmul.mubr.msk.bf16.gmra.mrb[20].mxu0 %vm199_vm0, %v4580_v22  ;;  %4351 = vmatmul.mubr.msk.bf16.gmra.mrb[20].mxu1 %vm199_vm0, %v4581_v23 }
  0x8e   :  { %4365 = vmatpush3.bf16.xpose.msra.mxu0 %v4738_v16  ;;  %v5215_v32 = vpop.permute.xlu1 %116  ;;  %v5217_v33 = vpop.permute.xlu0 %111  ;;  %4322 = vmatprep.mubr.msk.bf16.mxu0 %vm199_vm0, %v4582_v27  ;;  %v3777_v27 = vld [vmem:[%s6788_s3 + $0x138] sm:$0xff] }
  0x8f   :  { %1024 = vperm.xlu1 %4557, %v3745_v28   ;;  %1019 = vperm.xlu0 %4556, %v3744_v30   ;;  %v3776_v28 = vld [vmem:[%s6788_s3 + $0x130] sm:$0xff] }
  0x90   :  { %4354 = vmatprep.mubr.msk.bf16.mxu1 %vm199_vm0, %v4583_v31  ;;  %4524 = vmatprep.subr.msk.bf16.mxu0 %vm199_vm0, %v4746_v19 }
  0x91   :  { %4397 = vmatpush3.bf16.xpose.msra.mxu1 %v4738_v16 }
  0x92   :  { %v5236_v40 = vpop.permute.xlu1 %126  ;;  %v5238_v41 = vpop.permute.xlu0 %121  ;;  %4532 = vmatprep.subr.msk.bf16.mxu1 %vm199_vm0, %v4746_v19 }
  0x93   :  { %1034 = vperm.xlu1 %4557, %v3747_v35   ;;  %1029 = vperm.xlu0 %4556, %v3746_v36   ;;  %v3779_v35 = vld [vmem:[%s6788_s3 + $0x148] sm:$0xff]  ;;  %v3778_v36 = vld [vmem:[%s6788_s3 + $0x140] sm:$0xff] }
  0x95   :  { %4323 = vmatmul.mubr.msk.bf16.gmra.mrb[24].mxu0 %vm199_vm0, %v4584_v38  ;;  %4355 = vmatmul.mubr.msk.bf16.gmra.mrb[24].mxu1 %vm199_vm0, %v4585_v39 }
  0x96   :  { %4367 = vmatpush3.bf16.xpose.msra.mxu0 %v4774_v26  ;;  %v5257_v48 = vpop.permute.xlu1 %136  ;;  %v5259_v49 = vpop.permute.xlu0 %131  ;;  %4326 = vmatprep.mubr.msk.bf16.mxu0 %vm199_vm0, %v4586_v43  ;;  %v3781_v43 = vld [vmem:[%s6788_s3 + $0x158] sm:$0xff] }
  0x97   :  { %1044 = vperm.xlu1 %4557, %v3749_v44   ;;  %1039 = vperm.xlu0 %4556, %v3748_v46   ;;  %v3780_v44 = vld [vmem:[%s6788_s3 + $0x150] sm:$0xff] }
  0x98   :  { %4358 = vmatprep.mubr.msk.bf16.mxu1 %vm199_vm0, %v4587_v47  ;;  %4525 = vmatprep.subr.msk.bf16.mxu0 %vm199_vm0, %v4782_v29 }
  0x99   :  { %4399 = vmatpush3.bf16.xpose.msra.mxu1 %v4774_v26 }
  0x9a   :  { %v5278_v56 = vpop.permute.xlu1 %146  ;;  %v5280_v57 = vpop.permute.xlu0 %141  ;;  %4533 = vmatprep.subr.msk.bf16.mxu1 %vm199_vm0, %v4782_v29 }
  0x9b   :  { %6791 = vst [vmem:[#allocation6_spill] sm:$0xff] %v5278_v56  ;;  %6792 = vst [vmem:[#allocation7_spill] sm:$0xff] %v5280_v57  ;;  %1054 = vperm.xlu1 %4557, %v3751_v51   ;;  %1049 = vperm.xlu0 %4556, %v3750_v52   ;;  %v3783_v51 = vld [vmem:[%s6788_s3 + $0x168] sm:$0xff]  ;;  %v3782_v52 = vld [vmem:[%s6788_s3 + $0x160] sm:$0xff] }
  0x9d   :  { %4327 = vmatmul.mubr.msk.bf16.gmra.mrb[28].mxu0 %vm199_vm0, %v4588_v54  ;;  %4359 = vmatmul.mubr.msk.bf16.gmra.mrb[28].mxu1 %vm199_vm0, %v4589_v55 }
  0x9e   :  { %4369 = vmatpush3.bf16.xpose.msra.mxu0 %v4806_v34  ;;  %v5299_v1 = vpop.permute.xlu1 %156  ;;  %v5301_v2 = vpop.permute.xlu0 %151  ;;  %4378 = vmatprep.mubr.msk.bf16.mxu0 %vm199_vm0, %v4590_v59  ;;  %v3785_v59 = vld [vmem:[%s6788_s3 + $0x178] sm:$0xff] }
  0x9f   :  { %6793 = vst [vmem:[#allocation8_spill] sm:$0xff] %v5299_v1  ;;  %6794 = vst [vmem:[#allocation9_spill] sm:$0xff] %v5301_v2  ;;  %1064 = vperm.xlu1 %4557, %v3753_v60   ;;  %1059 = vperm.xlu0 %4556, %v3752_v62   ;;  %v3784_v60 = vld [vmem:[%s6788_s3 + $0x170] sm:$0xff]  ;;  %v3899_v2 = vld [vmem:[%s6788_s3 + $0x208] sm:$0xff] }
  0xa0   :  { %4526 = vmatprep.subr.msk.bf16.mxu0 %vm199_vm0, %v4814_v37  ;;  %4410 = vmatprep.mubr.msk.bf16.mxu1 %vm199_vm0, %v4598_v63 }
  0xa1   :  { %4401 = vmatpush3.bf16.xpose.msra.mxu1 %v4806_v34 }
  0xa2   :  { %v5314_v6 = vpop.permute.xlu1 %400  ;;  %v5316_v7 = vpop.permute.xlu0 %395  ;;  %4534 = vmatprep.subr.msk.bf16.mxu1 %vm199_vm0, %v4814_v37 }
  0xa3   :  { %1284 = vperm.xlu1 %4557, %v3771_v3   ;;  %1279 = vperm.xlu0 %4556, %v3770_v4   ;;  %v3803_v3 = vld [vmem:[%s6787_s2 + $0x188] sm:$0xff]  ;;  %v3802_v4 = vld [vmem:[%s6787_s2 + $0x180] sm:$0xff] }
  0xa6   :  { %4371 = vmatpush3.bf16.xpose.msra.mxu0 %v4836_v42  ;;  %v5327_v14 = vpop.permute.xlu1 %410  ;;  %v5329_v15 = vpop.permute.xlu0 %405 }
  0xa7   :  { %1294 = vperm.xlu1 %4557, %v3773_v12   ;;  %1289 = vperm.xlu0 %4556, %v3772_v13   ;;  %v4591_v12 = vld [vmem:[%s6786_s1 + $0x108] sm:$0xff]  }
  0xa8   :  { %4527 = vmatprep.subr.msk.bf16.mxu0 %vm199_vm0, %v4844_v45 }
  0xa9   :  { %4403 = vmatpush3.bf16.xpose.msra.mxu1 %v4836_v42 }
  0xaa   :  { %v5340_v22 = vpop.permute.xlu1 %420  ;;  %v5342_v23 = vpop.permute.xlu0 %415  ;;  %4535 = vmatprep.subr.msk.bf16.mxu1 %vm199_vm0, %v4844_v45 }
  0xab   :  { %1304 = vperm.xlu1 %4557, %v3775_v20   ;;  %1299 = vperm.xlu0 %4556, %v3774_v21   ;;  %v4592_v21 = vld [vmem:[%s6786_s1 + $0x110] sm:$0xff]  }
  0xae   :  { %4373 = vmatpush3.bf16.xpose.msra.mxu0 %v4866_v50  ;;  %v5353_v30 = vpop.permute.xlu1 %430  ;;  %v5355_v31 = vpop.permute.xlu0 %425 }
  0xaf   :  { %1314 = vperm.xlu1 %4557, %v3777_v27   ;;  %1309 = vperm.xlu0 %4556, %v3776_v28   ;;  %v3805_v27 = vld [vmem:[%s6787_s2 + $0x198] sm:$0xff]  ;;  %v3804_v28 = vld [vmem:[%s6787_s2 + $0x190] sm:$0xff] }
  0xb0   :  { %4528 = vmatprep.subr.msk.bf16.mxu0 %vm199_vm0, %v4874_v53 }
  0xb1   :  { %4405 = vmatpush3.bf16.xpose.msra.mxu1 %v4866_v50 }
  0xb2   :  { %v5366_v38 = vpop.permute.xlu1 %440  ;;  %v5368_v39 = vpop.permute.xlu0 %435  ;;  %4536 = vmatprep.subr.msk.bf16.mxu1 %vm199_vm0, %v4874_v53 }
  0xb3   :  { %6795 = vst [vmem:[#allocation10_spill] sm:$0xff] %v5366_v38  ;;  %1324 = vperm.xlu1 %4557, %v3779_v35   ;;  %1319 = vperm.xlu0 %4556, %v3778_v36   ;;  %v4599_v35 = vld [vmem:[%s6786_s1 + $0x148] sm:$0xff]  }
  0xb6   :  { %4375 = vmatpush3.bf16.xpose.msra.mxu0 %v4896_v58  ;;  %v5379_v46 = vpop.permute.xlu1 %450  ;;  %v5381_v47 = vpop.permute.xlu0 %445 }
  0xb7   :  { %6796 = vst [vmem:[#allocation11_spill] sm:$0xff] %v5379_v46  ;;  %1334 = vperm.xlu1 %4557, %v3781_v43   ;;  %1329 = vperm.xlu0 %4556, %v3780_v44   ;;  %v3807_v44 = vld [vmem:[%s6787_s2 + $0x1a8] sm:$0xff] }
  0xb8   :  { %4529 = vmatprep.subr.msk.bf16.mxu0 %vm199_vm0, %v4904_v61 }
  0xb9   :  { %4407 = vmatpush3.bf16.xpose.msra.mxu1 %v4896_v58 }
  0xba   :  { %v5392_v54 = vpop.permute.xlu1 %460  ;;  %v5394_v55 = vpop.permute.xlu0 %455  ;;  %4537 = vmatprep.subr.msk.bf16.mxu1 %vm199_vm0, %v4904_v61 }
  0xbb   :  { %6797 = vst [vmem:[#allocation12_spill] sm:$0xff] %v5392_v54  ;;  %6798 = vst [vmem:[#allocation13_spill] sm:$0xff] %v5394_v55  ;;  %1344 = vperm.xlu1 %4557, %v3783_v51   ;;  %1339 = vperm.xlu0 %4556, %v3782_v52   ;;  %v3806_v51 = vld [vmem:[%s6787_s2 + $0x1a0] sm:$0xff]  ;;  %v4593_v52 = vld [vmem:[%s6786_s1 + $0x118] sm:$0xff]  }
  0xbe   :  { %4377 = vmatpush3.bf16.xpose.msra.mxu0 %v4920_v0  ;;  %v5405_v62 = vpop.permute.xlu1 %470  ;;  %v5407_v63 = vpop.permute.xlu0 %465 }
  0xbf   :  { %6799 = vst [vmem:[#allocation14_spill] sm:$0xff] %v5405_v62  ;;  %6800 = vst [vmem:[#allocation15_spill] sm:$0xff] %v5407_v63  ;;  %1354 = vperm.xlu1 %4557, %v3785_v59   ;;  %1349 = vperm.xlu0 %4556, %v3784_v60  }
  0xc0   :  { %4538 = vmatprep.subr.msk.bf16.mxu0 %vm199_vm0, %v4694_v5 }
  0xc1   :  { %4409 = vmatpush3.bf16.xpose.msra.mxu1 %v4920_v0 }
  0xc2   :  { %v5421_v13 = vpop.permute.xlu1 %552  ;;  %v5423_v20 = vpop.permute.xlu0 %547  ;;  %4546 = vmatprep.subr.msk.bf16.mxu1 %vm199_vm0, %v4694_v5  ;;  %v4600_v5 = vld [vmem:[%s6786_s1 + $0x150] sm:$0xff]  }
  0xc3   :  { %1436 = vperm.xlu1 %4557, %v3803_v3   ;;  %1431 = vperm.xlu0 %4556, %v3802_v4   ;;  %v4594_v3 = vld [vmem:[%s6786_s1 + $0x120] sm:$0xff]   ;;  %v3809_v4 = vld [vmem:[%s6787_s2 + $0x1b8] sm:$0xff] }
  0xc5   :  { %4379 = vmatmul.mubr.msk.bf16.vlgmr.msra.gmra.mrb[32].mxu0 %vm199_vm0, %v4591_v12  ;;  %v4601_v12 = vld [vmem:[%s6786_s1 + $0x158] sm:$0xff]  }
  0xc6   :  { %v5443_v36 = vpop.permute.xlu1 %562  ;;  %v5445_v43 = vpop.permute.xlu0 %557  ;;  %4382 = vmatprep.mubr.msk.bf16.mxu0 %vm199_vm0, %v4592_v21  ;;  %4427 = vmatpush3.bf16.xpose.msra.mxu0 %v4714_v10 }
  0xc7   :  { %1446 = vperm.xlu1 %4557, %v3805_v27   ;;  %1441 = vperm.xlu0 %4556, %v3804_v28   ;;  %v3811_v28 = vld [vmem:[%s6787_s2 + $0x1c8] sm:$0xff] }
  0xc8   :  { %4411 = vmatmul.mubr.msk.bf16.vlgmr.msra.gmra.mrb[32].mxu1 %vm199_vm0, %v4599_v35  ;;  %4539 = vmatprep.subr.msk.bf16.mxu0 %vm199_vm0, %v4716_v11  ;;  %v3810_v35 = vld [vmem:[%s6787_s2 + $0x1c0] sm:$0xff] }
  0xc9   :  { %4414 = vmatprep.mubr.msk.bf16.mxu1 %vm199_vm0, %v4600_v5  ;;  %4459 = vmatpush3.bf16.xpose.msra.mxu1 %v4714_v10  ;;  %v3808_v10 = vld [vmem:[%s6787_s2 + $0x1b0] sm:$0xff]  ;;  %v4595_v5 = vld [vmem:[%s6786_s1 + $0x128] sm:$0xff]  }
  0xca   :  { %v5463_v59 = vpop.permute.xlu1 %572  ;;  %v5465_v60 = vpop.permute.xlu0 %567  ;;  %4547 = vmatprep.subr.msk.bf16.mxu1 %vm199_vm0, %v4716_v11  ;;  %v4602_v11 = vld [vmem:[%s6786_s1 + $0x160] sm:$0xff]  }
  0xcb   :  { %1456 = vperm.xlu1 %4557, %v3807_v44   ;;  %1451 = vperm.xlu0 %4556, %v3806_v51  }
  0xcd   :  { %4383 = vmatmul.mubr.msk.bf16.gmra.mrb[36].mxu0 %vm199_vm0, %v4593_v52  ;;  %v4596_v52 = vld [vmem:[%s6786_s1 + $0x130] sm:$0xff]  }
  0xce   :  { %v5485_v21 = vpop.permute.xlu1 %582  ;;  %v5487_v27 = vpop.permute.xlu0 %577  ;;  %4386 = vmatprep.mubr.msk.bf16.mxu0 %vm199_vm0, %v4594_v3  ;;  %4429 = vmatpush3.bf16.xpose.msra.mxu0 %v4738_v16  ;;  %v3813_v3 = vld [vmem:[%s6787_s2 + $0x1d8] sm:$0xff] }
  0xcf   :  { %1466 = vperm.xlu1 %4557, %v3809_v4   ;;  %1461 = vperm.xlu0 %4556, %v3808_v10   ;;  %v4603_v4 = vld [vmem:[%s6786_s1 + $0x168] sm:$0xff]  }
  0xd0   :  { %4415 = vmatmul.mubr.msk.bf16.gmra.mrb[36].mxu1 %vm199_vm0, %v4601_v12  ;;  %4540 = vmatprep.subr.msk.bf16.mxu0 %vm199_vm0, %v4746_v19 }
  0xd1   :  { %4418 = vmatprep.mubr.msk.bf16.mxu1 %vm199_vm0, %v4602_v11  ;;  %4461 = vmatpush3.bf16.xpose.msra.mxu1 %v4738_v16  ;;  %v3812_v16 = vld [vmem:[%s6787_s2 + $0x1d0] sm:$0xff]  ;;  %v3815_v11 = vld [vmem:[%s6787_s2 + $0x1e8] sm:$0xff] }
  0xd2   :  { %v5505_v44 = vpop.permute.xlu1 %592  ;;  %v5507_v51 = vpop.permute.xlu0 %587  ;;  %4548 = vmatprep.subr.msk.bf16.mxu1 %vm199_vm0, %v4746_v19  ;;  %v4604_v19 = vld [vmem:[%s6786_s1 + $0x170] sm:$0xff]  }
  0xd3   :  { %1476 = vperm.xlu1 %4557, %v3811_v28   ;;  %1471 = vperm.xlu0 %4556, %v3810_v35   ;;  %v3814_v28 = vld [vmem:[%s6787_s2 + $0x1e0] sm:$0xff]  ;;  %v4597_v35 = vld [vmem:[%s6786_s1 + $0x138] sm:$0xff]  }
  0xd5   :  { %4387 = vmatmul.mubr.msk.bf16.gmra.mrb[40].mxu0 %vm199_vm0, %v4595_v5 }
  0xd6   :  { %v5527_v10 = vpop.permute.xlu1 %602  ;;  %v5529_v12 = vpop.permute.xlu0 %597  ;;  %4390 = vmatprep.mubr.msk.bf16.mxu0 %vm199_vm0, %v4596_v52  ;;  %4431 = vmatpush3.bf16.xpose.msra.mxu0 %v4774_v26 }
  0xd7   :  { %1486 = vperm.xlu1 %4557, %v3813_v3   ;;  %1481 = vperm.xlu0 %4556, %v3812_v16   ;;  %v4606_v3 = vld [vmem:[%s6786_s1 + $0x180] sm:$0xff]   ;;  %v3817_v16 = vld [vmem:[%s6787_s2 + $0x1f8] sm:$0xff] }
  0xd8   :  { %4419 = vmatmul.mubr.msk.bf16.gmra.mrb[40].mxu1 %vm199_vm0, %v4603_v4  ;;  %4541 = vmatprep.subr.msk.bf16.mxu0 %vm199_vm0, %v4782_v29  ;;  %v4605_v4 = vld [vmem:[%s6786_s1 + $0x178] sm:$0xff]  }
  0xd9   :  { %4422 = vmatprep.mubr.msk.bf16.mxu1 %vm199_vm0, %v4604_v19  ;;  %4463 = vmatpush3.bf16.xpose.msra.mxu1 %v4774_v26  ;;  %v3816_v26 = vld [vmem:[%s6787_s2 + $0x1f0] sm:$0xff] }
  0xda   :  { %v5547_v5 = vpop.permute.xlu1 %612  ;;  %v5549_v52 = vpop.permute.xlu0 %607  ;;  %4549 = vmatprep.subr.msk.bf16.mxu1 %vm199_vm0, %v4782_v29  ;;  %v3835_v29 = vld [vmem:[%s6788_s3 + $0x188] sm:$0xff] }
  0xdb   :  { %6801 = vst [vmem:[#allocation16_spill] sm:$0xff] %v5547_v5  ;;  %6802 = vst [vmem:[#allocation17_spill] sm:$0xff] %v5549_v52  ;;  %1496 = vperm.xlu1 %4557, %v3815_v11   ;;  %1491 = vperm.xlu0 %4556, %v3814_v28   ;;  %v3834_v11 = vld [vmem:[%s6788_s3 + $0x180] sm:$0xff] }
  0xdd   :  { %4391 = vmatmul.mubr.msk.bf16.gmra.mrb[44].mxu0 %vm199_vm0, %v4597_v35 }
  0xde   :  { %v5566_v19 = vpop.permute.xlu1 %622  ;;  %v5568_v62 = vpop.permute.xlu0 %617  ;;  %4433 = vmatpush3.bf16.xpose.msra.mxu0 %v4806_v34  ;;  %4442 = vmatprep.mubr.msk.bf16.mxu0 %vm199_vm0, %v4606_v3  ;;  %v4614_v3 = vld [vmem:[%s6786_s1 + $0x1c0] sm:$0xff]  }
  0xdf   :  { %6803 = vst [vmem:[#allocation18_spill] sm:$0xff] %v5566_v19  ;;  %6804 = vst [vmem:[#allocation19_spill] sm:$0xff] %v5568_v62  ;;  %1506 = vperm.xlu1 %4557, %v3817_v16   ;;  %1501 = vperm.xlu0 %4556, %v3816_v26   ;;  %v3837_v16 = vld [vmem:[%s6788_s3 + $0x198] sm:$0xff]  ;;  %v3879_v19 = vld [vmem:[%s6787_s2 + $0x268] sm:$0xff] }
  0xe0   :  { %4423 = vmatmul.mubr.msk.bf16.gmra.mrb[44].mxu1 %vm199_vm0, %v4605_v4  ;;  %4542 = vmatprep.subr.msk.bf16.mxu0 %vm199_vm0, %v4814_v37 }
  0xe1   :  { %4465 = vmatpush3.bf16.xpose.msra.mxu1 %v4806_v34  ;;  %v3836_v34 = vld [vmem:[%s6788_s3 + $0x190] sm:$0xff]  ;;  %4474 = vmatprep.mubr.msk.bf16.mxu1 %vm199_vm0, %v4614_v3 }
  0xe2   :  { %v5582_v28 = vpop.permute.xlu1 %842  ;;  %v5584_v35 = vpop.permute.xlu0 %837  ;;  %4550 = vmatprep.subr.msk.bf16.mxu1 %vm199_vm0, %v4814_v37  ;;  %v3839_v37 = vld [vmem:[%s6788_s3 + $0x1a8] sm:$0xff] }
  0xe3   :  { %1726 = vperm.xlu1 %4557, %v3835_v29   ;;  %1721 = vperm.xlu0 %4556, %v3834_v11   ;;  %v3838_v29 = vld [vmem:[%s6788_s3 + $0x1a0] sm:$0xff] }
  0xe6   :  { %v5598_v26 = vpop.permute.xlu1 %852  ;;  %v5600_v4 = vpop.permute.xlu0 %847  ;;  %4435 = vmatpush3.bf16.xpose.msra.mxu0 %v4836_v42 }
  0xe7   :  { %1736 = vperm.xlu1 %4557, %v3837_v16   ;;  %1731 = vperm.xlu0 %4556, %v3836_v34   ;;  %v3841_v16 = vld [vmem:[%s6788_s3 + $0x1b8] sm:$0xff]  ;;  %v3840_v34 = vld [vmem:[%s6788_s3 + $0x1b0] sm:$0xff] }
  0xe8   :  { %4543 = vmatprep.subr.msk.bf16.mxu0 %vm199_vm0, %v4844_v45 }
  0xe9   :  { %4467 = vmatpush3.bf16.xpose.msra.mxu1 %v4836_v42 }
  0xea   :  { %v5612_v11 = vpop.permute.xlu1 %862  ;;  %v5614_v3 = vpop.permute.xlu0 %857  ;;  %4551 = vmatprep.subr.msk.bf16.mxu1 %vm199_vm0, %v4844_v45  ;;  %v3843_v45 = vld [vmem:[%s6788_s3 + $0x1c8] sm:$0xff] }
  0xeb   :  { %1746 = vperm.xlu1 %4557, %v3839_v37   ;;  %1741 = vperm.xlu0 %4556, %v3838_v29   ;;  %v3842_v37 = vld [vmem:[%s6788_s3 + $0x1c0] sm:$0xff] }
  0xee   :  { %v5624_v63 = vpop.permute.xlu1 %872  ;;  %v5626_v42 = vpop.permute.xlu0 %867  ;;  %4437 = vmatpush3.bf16.xpose.msra.mxu0 %v4866_v50 }
  0xef   :  { %1756 = vperm.xlu1 %4557, %v3841_v16   ;;  %1751 = vperm.xlu0 %4556, %v3840_v34   ;;  %v3845_v16 = vld [vmem:[%s6788_s3 + $0x1d8] sm:$0xff]  ;;  %v3844_v34 = vld [vmem:[%s6788_s3 + $0x1d0] sm:$0xff] }
  0xf0   :  { %4544 = vmatprep.subr.msk.bf16.mxu0 %vm199_vm0, %v4874_v53 }
  0xf1   :  { %4469 = vmatpush3.bf16.xpose.msra.mxu1 %v4866_v50 }
  0xf2   :  { %v5638_v29 = vpop.permute.xlu1 %882  ;;  %v5640_v54 = vpop.permute.xlu0 %877  ;;  %4552 = vmatprep.subr.msk.bf16.mxu1 %vm199_vm0, %v4874_v53  ;;  %v3847_v53 = vld [vmem:[%s6788_s3 + $0x1e8] sm:$0xff] }
  0xf3   :  { %6805 = vst [vmem:[#allocation20_spill] sm:$0xff] %v5638_v29  ;;  %1766 = vperm.xlu1 %4557, %v3843_v45   ;;  %1761 = vperm.xlu0 %4556, %v3842_v37   ;;  %v3846_v45 = vld [vmem:[%s6788_s3 + $0x1e0] sm:$0xff] }
  0xf6   :  { %v5650_v55 = vpop.permute.xlu1 %892  ;;  %v5652_v50 = vpop.permute.xlu0 %887  ;;  %4439 = vmatpush3.bf16.xpose.msra.mxu0 %v4896_v58 }
  0xf7   :  { %6806 = vst [vmem:[#allocation21_spill] sm:$0xff] %v5650_v55  ;;  %1776 = vperm.xlu1 %4557, %v3845_v16   ;;  %1771 = vperm.xlu0 %4556, %v3844_v34   ;;  %v3849_v16 = vld [vmem:[%s6788_s3 + $0x1f8] sm:$0xff]  ;;  %v3848_v34 = vld [vmem:[%s6788_s3 + $0x1f0] sm:$0xff] }
  0xf8   :  { %4545 = vmatprep.subr.msk.bf16.mxu0 %vm199_vm0, %v4904_v61 }
  0xf9   :  { %4471 = vmatpush3.bf16.xpose.msra.mxu1 %v4896_v58 }
  0xfa   :  { %v5664_v37 = vpop.permute.xlu1 %902  ;;  %v5666_v5 = vpop.permute.xlu0 %897  ;;  %4553 = vmatprep.subr.msk.bf16.mxu1 %vm199_vm0, %v4904_v61  ;;  %v3867_v61 = vld [vmem:[%s6787_s2 + $0x208] sm:$0xff] }
  0xfb   :  { %6807 = vst [vmem:[#allocation22_spill] sm:$0xff] %v5664_v37  ;;  %6808 = vst [vmem:[#allocation23_spill] sm:$0xff] %v5666_v5  ;;  %1786 = vperm.xlu1 %4557, %v3847_v53   ;;  %1781 = vperm.xlu0 %4556, %v3846_v45   ;;  %v3866_v53 = vld [vmem:[%s6787_s2 + $0x200] sm:$0xff]  ;;  %v4607_v45 = vld [vmem:[%s6786_s1 + $0x188] sm:$0xff]  }
  0xfc   :  { %v3868_v37 = vld [vmem:[%s6787_s2 + $0x210] sm:$0xff] }
  0xfe   :  { %v5676_v56 = vpop.permute.xlu1 %912  ;;  %v5678_v58 = vpop.permute.xlu0 %907  ;;  %4441 = vmatpush3.bf16.xpose.msra.mxu0 %v4920_v0 }
  0xff   :  { %6809 = vst [vmem:[#allocation24_spill] sm:$0xff] %v5676_v56  ;;  %6810 = vst [vmem:[#allocation25_spill] sm:$0xff] %v5678_v58  ;;  %1796 = vperm.xlu1 %4557, %v3849_v16   ;;  %1791 = vperm.xlu0 %4556, %v3848_v34   ;;  %v4608_v16 = vld [vmem:[%s6786_s1 + $0x190] sm:$0xff]   ;;  %v3869_v34 = vld [vmem:[%s6787_s2 + $0x218] sm:$0xff] }
 0x101   :  { %4473 = vmatpush3.bf16.xpose.msra.mxu1 %v4920_v0  ;;  %v4615_v0 = vld [vmem:[%s6786_s1 + $0x1c8] sm:$0xff]  }
 0x102   :  { %v5691_v56 = vpop.permute.xlu1 %994  ;;  %v5693_v58 = vpop.permute.xlu0 %989 }
 0x103   :  { %6811 = vst [vmem:[#allocation26_spill] sm:$0xff] %v5691_v56  ;;  %6812 = vst [vmem:[#allocation27_spill] sm:$0xff] %v5693_v58  ;;  %1878 = vperm.xlu1 %4557, %v3867_v61   ;;  %1873 = vperm.xlu0 %4556, %v3866_v53   ;;  %v4616_v56 = vld [vmem:[%s6786_s1 + $0x1d0] sm:$0xff]   ;;  %v3871_v58 = vld [vmem:[%s6787_s2 + $0x228] sm:$0xff] }
 0x105   :  { %4443 = vmatmul.mubr.msk.bf16.vlgmr.msra.gmra.mrb[48].mxu0 %vm199_vm0, %v4607_v45  ;;  %v3870_v45 = vld [vmem:[%s6787_s2 + $0x220] sm:$0xff] }
 0x106   :  { %v5711_v61 = vpop.permute.xlu1 %1004  ;;  %v5713_v53 = vpop.permute.xlu0 %999  ;;  %4446 = vmatprep.mubr.msk.bf16.mxu0 %vm199_vm0, %v4608_v16 }
 0x107   :  { %6813 = vst [vmem:[#allocation28_spill] sm:$0xff] %v5711_v61  ;;  %6814 = vst [vmem:[#allocation29_spill] sm:$0xff] %v5713_v53  ;;  %1888 = vperm.xlu1 %4557, %v3869_v34   ;;  %1883 = vperm.xlu0 %4556, %v3868_v37   ;;  %v4609_v61 = vld [vmem:[%s6786_s1 + $0x198] sm:$0xff]   ;;  %v4610_v37 = vld [vmem:[%s6786_s1 + $0x1a0] sm:$0xff]  }
 0x108   :  { %4475 = vmatmul.mubr.msk.bf16.vlgmr.msra.gmra.mrb[48].mxu1 %vm199_vm0, %v4615_v0  ;;  %v3873_v34 = vld [vmem:[%s6787_s2 + $0x238] sm:$0xff]  ;;  %v3872_v0 = vld [vmem:[%s6787_s2 + $0x230] sm:$0xff] }
 0x109   :  { %4478 = vmatprep.mubr.msk.bf16.mxu1 %vm199_vm0, %v4616_v56  ;;  %v4617_v56 = vld [vmem:[%s6786_s1 + $0x1d8] sm:$0xff]  }
 0x10a   :  { %v5727_v53 = vpop.permute.xlu1 %1014  ;;  %v5729_v16 = vpop.permute.xlu0 %1009 }
 0x10b   :  { %6815 = vst [vmem:[#allocation30_spill] sm:$0xff] %v5727_v53  ;;  %6816 = vst [vmem:[#allocation31_spill] sm:$0xff] %v5729_v16  ;;  %1898 = vperm.xlu1 %4557, %v3871_v58   ;;  %1893 = vperm.xlu0 %4556, %v3870_v45   ;;  %v4618_v53 = vld [vmem:[%s6786_s1 + $0x1e0] sm:$0xff]   ;;  %v3875_v16 = vld [vmem:[%s6787_s2 + $0x248] sm:$0xff] }
 0x10d   :  { %4447 = vmatmul.mubr.msk.bf16.gmra.mrb[52].mxu0 %vm199_vm0, %v4609_v61  ;;  %v3874_v61 = vld [vmem:[%s6787_s2 + $0x240] sm:$0xff] }
 0x10e   :  { %v5747_v58 = vpop.permute.xlu1 %1024  ;;  %v5749_v45 = vpop.permute.xlu0 %1019  ;;  %4450 = vmatprep.mubr.msk.bf16.mxu0 %vm199_vm0, %v4610_v37 }
 0x10f   :  { %6817 = vst [vmem:[#allocation32_spill] sm:$0xff] %v5747_v58  ;;  %6818 = vst [vmem:[#allocation33_spill] sm:$0xff] %v5749_v45  ;;  %1908 = vperm.xlu1 %4557, %v3873_v34   ;;  %1903 = vperm.xlu0 %4556, %v3872_v0   ;;  %v4611_v58 = vld [vmem:[%s6786_s1 + $0x1a8] sm:$0xff]   ;;  %v4612_v34 = vld [vmem:[%s6786_s1 + $0x1b0] sm:$0xff]  }
 0x110   :  { %4479 = vmatmul.mubr.msk.bf16.gmra.mrb[52].mxu1 %vm199_vm0, %v4617_v56  ;;  %v3877_v0 = vld [vmem:[%s6787_s2 + $0x258] sm:$0xff]  ;;  %v3876_v56 = vld [vmem:[%s6787_s2 + $0x250] sm:$0xff] }
 0x111   :  { %4482 = vmatprep.mubr.msk.bf16.mxu1 %vm199_vm0, %v4618_v53  ;;  %v4619_v53 = vld [vmem:[%s6786_s1 + $0x1e8] sm:$0xff]  }
 0x112   :  { %v5763_v45 = vpop.permute.xlu1 %1034  ;;  %v5765_v37 = vpop.permute.xlu0 %1029 }
 0x113   :  { %6819 = vst [vmem:[#allocation34_spill] sm:$0xff] %v5763_v45  ;;  %6820 = vst [vmem:[#allocation35_spill] sm:$0xff] %v5765_v37  ;;  %1918 = vperm.xlu1 %4557, %v3875_v16   ;;  %1913 = vperm.xlu0 %4556, %v3874_v61   ;;  %v4620_v45 = vld [vmem:[%s6786_s1 + $0x1f0] sm:$0xff]  }
 0x115   :  { %4451 = vmatmul.mubr.msk.bf16.gmra.mrb[56].mxu0 %vm199_vm0, %v4611_v58  ;;  %v3878_v58 = vld [vmem:[%s6787_s2 + $0x260] sm:$0xff] }
 0x116   :  { %v5783_v16 = vpop.permute.xlu1 %1044  ;;  %v5785_v61 = vpop.permute.xlu0 %1039  ;;  %4454 = vmatprep.mubr.msk.bf16.mxu0 %vm199_vm0, %v4612_v34 }
 0x117   :  { %6821 = vst [vmem:[#allocation36_spill] sm:$0xff] %v5783_v16  ;;  %6822 = vst [vmem:[#allocation37_spill] sm:$0xff] %v5785_v61  ;;  %1928 = vperm.xlu1 %4557, %v3877_v0   ;;  %1923 = vperm.xlu0 %4556, %v3876_v56   ;;  %v4613_v56 = vld [vmem:[%s6786_s1 + $0x1b8] sm:$0xff]  }
 0x118   :  { %v4252_v37 = vpop.f32.mrb[0].mxu0  ;;  %v4284_v5 = vpop.f32.mrb[0].mxu1  ;;  %4483 = vmatmul.mubr.msk.bf16.gmra.mrb[56].mxu1 %vm199_vm0, %v4619_v53 }
 0x119   :  { %v5796_v16 = vadd.f32 %v4252_v37, %v5154_v8  ;;  %v5799_v61 = vadd.f32 %v4284_v5, %v5445_v43  ;;  %v282_v34 = vpop.f32.mrb[1].mxu0  ;;  %v723_v0 = vpop.f32.mrb[1].mxu1  ;;  %4486 = vmatprep.mubr.msk.bf16.mxu1 %vm199_vm0, %v4620_v45 }
 0x11a   :  { %v283_v1 = vadd.f32 %v282_v34, %v5156_v9  ;;  %v724_v55 = vadd.f32 %v723_v0, %v5423_v20  ;;  %v4253_v29 = vpop.f32.mrb[2].mxu0  ;;  %v4285_v53 = vpop.f32.mrb[2].mxu1  ;;  %v3881_v9 = vld [vmem:[%s6787_s2 + $0x278] sm:$0xff] }
 0x11b   :  { %v5808_v8 = vmul.f32 0.01, %v5796_v16  ;;  %v5811_v43 = vmul.f32 0.01, %v5799_v61  ;;  %v5814_v5 = vadd.f32 %v4253_v29, %v5173_v17  ;;  %v5817_v37 = vadd.f32 %v4285_v53, %v5443_v36  ;;  %v5819_v38 = vpop.permute.xlu1 %1054  ;;  %v5821_v45 = vpop.permute.xlu0 %1049  ;;  %1938 = vperm.xlu1 %4557, %v3879_v19   ;;  %1933 = vperm.xlu0 %4556, %v3878_v58   ;;  %v4621_v20 = vld [vmem:[%s6786_s1 + $0x1f8] sm:$0xff]   ;;  %v3880_v19 = vld [vmem:[%s6787_s2 + $0x270] sm:$0xff] }
 0x11c   :  { %6823 = vst [vmem:[#allocation38_spill] sm:$0xff] %v5819_v38  ;;  %6824 = vst [vmem:[#allocation39_spill] sm:$0xff] %v5821_v45  ;;  %v345_v34 = vmul.f32 0.01, %v283_v1  ;;  %v786_v17 = vmul.f32 0.01, %v724_v55 }
 0x11d   :  { %v285_v29 = vpop.f32.mrb[3].mxu0  ;;  %v726_v0 = vpop.f32.mrb[3].mxu1  ;;  %v348_v36 = vmul.f32 0.01, %v5814_v5  ;;  %v789_v53 = vmul.f32 0.01, %v5817_v37  ;;  %4455 = vmatmul.mubr.msk.bf16.gmra.mrb[60].mxu0 %vm199_vm0, %v4613_v56  ;;  %v363_v62 = vmax.f32 %v5796_v16, %v5808_v8 }
 0x11e   :  { %v361_v58 = vmax.f32 %v283_v1, %v345_v34  ;;  %v286_v38 = vadd.f32 %v285_v29, %v5175_v18  ;;  %v727_v45 = vadd.f32 %v726_v0, %v5421_v13  ;;  %v802_v46 = vmax.f32 %v724_v55, %v786_v17 }
 0x11f   :  { %v5839_v52 = vpop.permute.xlu1 %1064  ;;  %v5841_v57 = vpop.permute.xlu0 %1059  ;;  %1948 = vperm.xlu1 %4557, %v3881_v9   ;;  %v804_v1 = vmax.f32 %v5799_v61, %v5811_v43  ;;  %v364_v18 = vmax.f32 %v5814_v5, %v348_v36  ;;  %1943 = vperm.xlu0 %4556, %v3880_v19   ;;  %v805_v8 = vmax.f32 %v5817_v37, %v789_v53  ;;  %v3898_v5 = vld [vmem:[%s6788_s3 + $0x200] sm:$0xff] }
 0x120   :  { %v346_v56 = vmul.f32 0.01, %v286_v38  ;;  %v787_v13 = vmul.f32 0.01, %v727_v45  ;;  %v4256_v34 = vpop.f32.mrb[4].mxu0  ;;  %v4288_v16 = vpop.f32.mrb[4].mxu1  ;;  %4487 = vmatmul.mubr.msk.bf16.gmra.mrb[60].mxu1 %vm199_vm0, %v4621_v20  ;;  %v473_v55 = vmul.f32 %v5316_v7, %v361_v58 }
 0x121   :  { %v5853_v9 = vadd.f32 %v4256_v34, %v5217_v33  ;;  %v5856_v17 = vadd.f32 %v4288_v16, %v5487_v27  ;;  %v298_v61 = vpop.f32.mrb[5].mxu0  ;;  %v739_v43 = vpop.f32.mrb[5].mxu1  ;;  %v915_v33 = vmul.f32 %v5584_v35, %v802_v46  ;;  %v917_v34 = vmul.f32 %v5600_v4, %v804_v1 }
 0x122   :  { %v362_v29 = vmax.f32 %v286_v38, %v346_v56  ;;  %v803_v0 = vmax.f32 %v727_v45, %v787_v13  ;;  %v299_v20 = vadd.f32 %v298_v61, %v5196_v25  ;;  %v740_v7 = vadd.f32 %v739_v43, %v5465_v60  ;;  %v4257_v36 = vpop.f32.mrb[6].mxu0  ;;  %v4289_v37 = vpop.f32.mrb[6].mxu1  ;;  %v3901_v25 = vld [vmem:[%s6788_s3 + $0x218] sm:$0xff] }
 0x123   :  { %v5865_v53 = vmul.f32 0.01, %v5853_v9  ;;  %v5868_v27 = vmul.f32 0.01, %v5856_v17  ;;  %v5871_v19 = vadd.f32 %v4257_v36, %v5215_v32  ;;  %v5873_v58 = vpop.permute.xlu1 %1284  ;;  %v5875_v38 = vpop.permute.xlu0 %1279  ;;  %2168 = vperm.xlu1 %4557, %v3899_v2   ;;  %2163 = vperm.xlu0 %4556, %v3898_v5   ;;  %v475_v32 = vmul.f32 %v5329_v15, %v363_v62 }
 0x124   :  { %v474_v46 = vmul.f32 %v5314_v6, %v362_v29  ;;  %v916_v60 = vmul.f32 %v5582_v28, %v803_v0  ;;  %v349_v35 = vmul.f32 0.01, %v299_v20  ;;  %v790_v45 = vmul.f32 0.01, %v740_v7  ;;  %v301_v56 = vpop.f32.mrb[7].mxu0  ;;  %v742_v13 = vpop.f32.mrb[7].mxu1 }
 0x125   :  { %v5885_v16 = vmul.f32 0.01, %v5871_v19  ;;  %v5888_v2 = vadd.f32 %v4289_v37, %v5485_v21  ;;  %v3900_v6 = vld [vmem:[%s6788_s3 + $0x210] sm:$0xff]  ;;  %v476_v5 = vmul.f32 %v5327_v14, %v364_v18  ;;  %v918_v15 = vmul.f32 %v5598_v26, %v805_v8  ;;  %v3903_v18 = vld [vmem:[%s6788_s3 + $0x228] sm:$0xff] }
 0x126   :  { %v489_v28 = vadd.f32 %v474_v46, %v473_v55  ;;  %v931_v61 = vadd.f32 %v916_v60, %v915_v33  ;;  %v365_v43 = vmax.f32 %v299_v20, %v349_v35  ;;  %v806_v29 = vmax.f32 %v740_v7, %v790_v45 }
 0x127   :  { %v367_v62 = vmax.f32 %v5853_v9, %v5865_v53  ;;  %v808_v4 = vmax.f32 %v5856_v17, %v5868_v27  ;;  %v5899_v21 = vpop.permute.xlu1 %1294  ;;  %v5901_v1 = vpop.permute.xlu0 %1289  ;;  %2178 = vperm.xlu1 %4557, %v3901_v25   ;;  %2173 = vperm.xlu0 %4556, %v3900_v6   ;;  %v368_v8 = vmax.f32 %v5871_v19, %v5885_v16  ;;  %v793_v9 = vmul.f32 0.01, %v5888_v2 }
 0x128   :  { %v490_v0 = vadd.f32 %v489_v28, %v475_v32  ;;  %v932_v55 = vadd.f32 %v931_v61, %v917_v34  ;;  %v477_v20 = vmul.f32 %v5342_v23, %v365_v43  ;;  %v919_v7 = vmul.f32 %v5614_v3, %v806_v29  ;;  %v4260_v14 = vpop.f32.mrb[8].mxu0  ;;  %v4292_v26 = vpop.f32.mrb[8].mxu1  ;;  %v3902_v3 = vld [vmem:[%s6788_s3 + $0x220] sm:$0xff]  ;;  %v3904_v43 = vld [vmem:[%s6788_s3 + $0x230] sm:$0xff] }
 0x129   :  { %v302_v17 = vadd.f32 %v301_v56, %v5194_v24  ;;  %v743_v36 = vadd.f32 %v742_v13, %v5463_v59  ;;  %v314_v37 = vpop.f32.mrb[9].mxu0  ;;  %v755_v23 = vpop.f32.mrb[9].mxu1  ;;  %v5917_v27 = vadd.f32 %v4260_v14, %v5259_v49  ;;  %v5920_v25 = vadd.f32 %v4292_v26, %v5529_v12  ;;  %v3905_v49 = vld [vmem:[%s6788_s3 + $0x238] sm:$0xff] }
 0x12a   :  { %v491_v33 = vadd.f32 %v490_v0, %v476_v5  ;;  %v933_v53 = vadd.f32 %v932_v55, %v918_v15  ;;  %v4261_v19 = vpop.f32.mrb[10].mxu0  ;;  %v4293_v46 = vpop.f32.mrb[10].mxu1  ;;  %v315_v59 = vadd.f32 %v314_v37, %v5238_v41  ;;  %v756_v35 = vadd.f32 %v755_v23, %v5507_v51 }
 0x12b   :  { %v350_v60 = vmul.f32 0.01, %v302_v17  ;;  %v791_v24 = vmul.f32 0.01, %v743_v36  ;;  %v5924_v45 = vpop.permute.xlu1 %1304  ;;  %v5926_v56 = vpop.permute.xlu0 %1299  ;;  %2188 = vperm.xlu1 %4557, %v3903_v18   ;;  %v355_v32 = vmul.f32 0.01, %v5917_v27  ;;  %2183 = vperm.xlu0 %4556, %v3902_v3   ;;  %v479_v29 = vmul.f32 %v5355_v31, %v367_v62 }
 0x12c   :  { %v492_v13 = vadd.f32 %v491_v33, %v477_v20  ;;  %v934_v12 = vadd.f32 %v933_v53, %v919_v7  ;;  %v796_v34 = vmul.f32 0.01, %v5920_v25  ;;  %v317_v16 = vpop.f32.mrb[11].mxu0  ;;  %v758_v6 = vpop.f32.mrb[11].mxu1  ;;  %v353_v28 = vmul.f32 0.01, %v315_v59 }
 0x12d   :  { %v366_v41 = vmax.f32 %v302_v17, %v350_v60  ;;  %v807_v51 = vmax.f32 %v743_v36, %v791_v24  ;;  %v794_v61 = vmul.f32 0.01, %v756_v35  ;;  %v809_v5 = vmax.f32 %v5888_v2, %v793_v9 }
 0x12e   :  { %v326_v15 = vadd.f32 %v4261_v19, %v5257_v48  ;;  %v5940_v0 = vadd.f32 %v4293_v46, %v5527_v10  ;;  %v369_v7 = vmax.f32 %v315_v59, %v353_v28  ;;  %v921_v31 = vmul.f32 %v5626_v42, %v808_v4  ;;  %v3906_v4 = vld [vmem:[%s6788_s3 + $0x240] sm:$0xff] }
 0x12f   :  { %v478_v55 = vmul.f32 %v5340_v22, %v366_v41  ;;  %v920_v20 = vmul.f32 %v5612_v11, %v807_v51  ;;  %v810_v14 = vmax.f32 %v756_v35, %v794_v61  ;;  %v5944_v26 = vpop.permute.xlu1 %1314  ;;  %v5946_v18 = vpop.permute.xlu0 %1309  ;;  %2198 = vperm.xlu1 %4557, %v3905_v49   ;;  %v371_v2 = vmax.f32 %v5917_v27, %v355_v32  ;;  %v3907_v22 = vld [vmem:[%s6788_s3 + $0x248] sm:$0xff]  ;;  %v6827_v28 = vld [vmem:[#allocation17_spill] sm:$0xff] }
 0x130   :  { %v812_v48 = vmax.f32 %v5920_v25, %v796_v34  ;;  %v356_v62 = vmul.f32 0.01, %v326_v15  ;;  %2193 = vperm.xlu0 %4556, %v3904_v43   ;;  %v4264_v10 = vpop.f32.mrb[12].mxu0  ;;  %v4296_v9 = vpop.f32.mrb[12].mxu1  ;;  %v480_v11 = vmul.f32 %v5353_v30, %v368_v8  ;;  %v797_v37 = vmul.f32 0.01, %v5940_v0 }
 0x131   :  { %v493_v17 = vadd.f32 %v492_v13, %v478_v55  ;;  %v935_v36 = vadd.f32 %v934_v12, %v920_v20  ;;  %v330_v23 = vpop.f32.mrb[13].mxu0  ;;  %v771_v42 = vpop.f32.mrb[13].mxu1  ;;  %v922_v3 = vmul.f32 %v5624_v63, %v809_v5  ;;  %v481_v33 = vmul.f32 %v5368_v39, %v369_v7  ;;  %v3909_v39 = vld [vmem:[%s6788_s3 + $0x258] sm:$0xff]  ;;  %v6826_v51 = vld [vmem:[#allocation7_spill] sm:$0xff] }
 0x132   :  { %v318_v53 = vadd.f32 %v317_v16, %v5236_v40  ;;  %v759_v27 = vadd.f32 %v758_v6, %v5505_v44  ;;  %v4265_v25 = vpop.f32.mrb[14].mxu0  ;;  %v4297_v30 = vpop.f32.mrb[14].mxu1  ;;  %v923_v46 = vmul.f32 %v5640_v54, %v810_v14  ;;  %v372_v60 = vmax.f32 %v326_v15, %v356_v62  ;;  %v6825_v34 = vld [vmem:[#allocation9_spill] sm:$0xff]  ;;  %v3908_v6 = vld [vmem:[%s6788_s3 + $0x250] sm:$0xff]  ;;  %v6830_v14 = vld [vmem:[#allocation10_spill] sm:$0xff] }
 0x133   :  { %v494_v8 = vadd.f32 %v493_v17, %v479_v29  ;;  %v936_v19 = vadd.f32 %v935_v36, %v921_v31  ;;  %v5964_v24 = vpop.permute.xlu1 %1324  ;;  %v5966_v59 = vpop.permute.xlu0 %1319  ;;  %2208 = vperm.xlu1 %4557, %v3907_v22   ;;  %v483_v40 = vmul.f32 %v5381_v47, %v371_v2  ;;  %v925_v63 = vmul.f32 %v5652_v50, %v812_v48  ;;  %v6828_v5 = vld [vmem:[#allocation11_spill] sm:$0xff]  ;;  %v6831_v2 = vld [vmem:[#allocation20_spill] sm:$0xff] }
 0x134   :  { %v354_v44 = vmul.f32 0.01, %v318_v53  ;;  %v795_v35 = vmul.f32 0.01, %v759_v27  ;;  %v333_v49 = vpop.f32.mrb[15].mxu0  ;;  %v774_v13 = vpop.f32.mrb[15].mxu1  ;;  %2203 = vperm.xlu0 %4556, %v3906_v4   ;;  %v813_v32 = vmax.f32 %v5940_v0, %v797_v37  ;;  %v5975_v16 = vadd.f32 %v4264_v10, %v6825_v34 }
 0x135   :  { %v495_v54 = vadd.f32 %v494_v8, %v480_v11  ;;  %v937_v12 = vadd.f32 %v936_v19, %v922_v3  ;;  %v331_v50 = vadd.f32 %v330_v23, %v6826_v51  ;;  %v772_v61 = vadd.f32 %v771_v42, %v6827_v28  ;;  %v6829_v55 = vld [vmem:[#allocation19_spill] sm:$0xff]  ;;  %v6832_v11 = vld [vmem:[#allocation21_spill] sm:$0xff]  ;;  %v6833_v36 = vld [vmem:[#allocation8_spill] sm:$0xff] }
 0x136   :  { %v370_v41 = vmax.f32 %v318_v53, %v354_v44  ;;  %v811_v47 = vmax.f32 %v759_v27, %v795_v35  ;;  %v484_v15 = vmul.f32 %v6828_v5, %v372_v60  ;;  %v780_v20 = vadd.f32 %v4296_v9, %v6829_v55  ;;  %v3911_v22 = vld [vmem:[%s6788_s3 + $0x268] sm:$0xff]  ;;  %v3910_v4 = vld [vmem:[%s6788_s3 + $0x260] sm:$0xff] }
 0x137   :  { %v496_v43 = vadd.f32 %v495_v54, %v481_v33  ;;  %v938_v29 = vadd.f32 %v937_v12, %v923_v46  ;;  %v5984_v0 = vpop.permute.xlu1 %1334  ;;  %v5986_v7 = vpop.permute.xlu0 %1329  ;;  %2218 = vperm.xlu1 %4557, %v3909_v39   ;;  %v357_v62 = vmul.f32 0.01, %v331_v50  ;;  %v798_v10 = vmul.f32 0.01, %v772_v61  ;;  %v6834_v23 = vld [vmem:[#allocation18_spill] sm:$0xff]  ;;  %v6836_v39 = vld [vmem:[#allocation16_spill] sm:$0xff] }
 0x138   :  { %v482_v31 = vmul.f32 %v6830_v14, %v370_v41  ;;  %v924_v48 = vmul.f32 %v6831_v2, %v811_v47  ;;  %2213 = vperm.xlu0 %4556, %v3908_v6   ;;  %v926_v17 = vmul.f32 %v6832_v11, %v813_v32  ;;  %v359_v9 = vmul.f32 0.01, %v5975_v16  ;;  %v6835_v46 = vld [vmem:[#allocation6_spill] sm:$0xff]  ;;  %v6837_v12 = vld [vmem:[#allocation13_spill] sm:$0xff]  ;;  %v6838_v34 = vld [vmem:[#allocation23_spill] sm:$0xff] }
 0x139   :  { %v342_v37 = vadd.f32 %v4265_v25, %v6833_v36  ;;  %v783_v42 = vadd.f32 %v4297_v30, %v6834_v23  ;;  %v373_v53 = vmax.f32 %v331_v50, %v357_v62  ;;  %v814_v27 = vmax.f32 %v772_v61, %v798_v10  ;;  %v3913_v41 = vld [vmem:[%s6788_s3 + $0x278] sm:$0xff]  ;;  %v3930_v10 = vld [vmem:[%s6787_s2 + $0x280] sm:$0xff] }
 0x13a   :  { %v497_v3 = vadd.f32 %v496_v43, %v482_v31  ;;  %v939_v33 = vadd.f32 %v938_v29, %v924_v48  ;;  %v800_v8 = vmul.f32 0.01, %v780_v20  ;;  %v334_v60 = vadd.f32 %v333_v49, %v6835_v46  ;;  %v3912_v49 = vld [vmem:[%s6788_s3 + $0x270] sm:$0xff]  ;;  %v3931_v31 = vld [vmem:[%s6787_s2 + $0x288] sm:$0xff] }
 0x13b   :  { %v360_v19 = vmul.f32 0.01, %v342_v37  ;;  %v775_v44 = vadd.f32 %v774_v13, %v6836_v39  ;;  %v6002_v35 = vpop.permute.xlu1 %1344  ;;  %v6004_v54 = vpop.permute.xlu0 %1339  ;;  %2228 = vperm.xlu1 %4557, %v3911_v22   ;;  %v485_v32 = vmul.f32 %v6837_v12, %v373_v53  ;;  %v927_v6 = vmul.f32 %v6838_v34, %v814_v27  ;;  %v6839_v48 = vld [vmem:[#allocation12_spill] sm:$0xff]  ;;  %v6841_v22 = vld [vmem:[#allocation15_spill] sm:$0xff]  ;;  %v3934_v34 = vld [vmem:[%s6787_s2 + $0x2a0] sm:$0xff] }
 0x13c   :  { %v498_v25 = vadd.f32 %v497_v3, %v483_v40  ;;  %v940_v30 = vadd.f32 %v939_v33, %v925_v63  ;;  %2223 = vperm.xlu0 %4556, %v3910_v4   ;;  %v801_v13 = vmul.f32 0.01, %v783_v42  ;;  %v358_v47 = vmul.f32 0.01, %v334_v60  ;;  %v6844_v53 = vld [vmem:[#allocation24_spill] sm:$0xff] }
 0x13d   :  { %v799_v51 = vmul.f32 0.01, %v775_v44  ;;  %v375_v40 = vmax.f32 %v5975_v16, %v359_v9  ;;  %v816_v63 = vmax.f32 %v780_v20, %v800_v8  ;;  %v376_v2 = vmax.f32 %v342_v37, %v360_v19  ;;  %v6840_v16 = vld [vmem:[#allocation22_spill] sm:$0xff]  ;;  %v3933_v37 = vld [vmem:[%s6787_s2 + $0x298] sm:$0xff]  ;;  %v3932_v46 = vld [vmem:[%s6787_s2 + $0x290] sm:$0xff] }
 0x13e   :  { %v499_v50 = vadd.f32 %v498_v25, %v484_v15  ;;  %v941_v28 = vadd.f32 %v940_v30, %v926_v17  ;;  %v374_v61 = vmax.f32 %v334_v60, %v358_v47  ;;  %v817_v15 = vmax.f32 %v783_v42, %v801_v13  ;;  %v6842_v17 = vld [vmem:[#allocation25_spill] sm:$0xff]  ;;  %v6843_v42 = vld [vmem:[#allocation14_spill] sm:$0xff] }
 0x13f   :  { %v815_v43 = vmax.f32 %v775_v44, %v799_v51  ;;  %v6015_v29 = vpop.permute.xlu1 %1354  ;;  %v6017_v5 = vpop.permute.xlu0 %1349  ;;  %2238 = vperm.xlu1 %4557, %v3913_v41   ;;  %v487_v11 = vmul.f32 %v6841_v22, %v375_v40  ;;  %v929_v9 = vmul.f32 %v6842_v17, %v816_v63  ;;  %v488_v33 = vmul.f32 %v6843_v42, %v376_v2  ;;  %v3935_v30 = vld [vmem:[%s6787_s2 + $0x2a8] sm:$0xff]  ;;  %v3937_v47 = vld [vmem:[%s6787_s2 + $0x2b8] sm:$0xff]  ;;  %v3938_v2 = vld [vmem:[%s6787_s2 + $0x2c0] sm:$0xff] }
 0x140   :  { %v500_v55 = vadd.f32 %v499_v50, %v485_v32  ;;  %v942_v14 = vadd.f32 %v941_v28, %v927_v6  ;;  %2233 = vperm.xlu0 %4556, %v3912_v49   ;;  %v486_v62 = vmul.f32 %v6839_v48, %v374_v61  ;;  %v930_v27 = vmul.f32 %v6844_v53, %v817_v15  ;;  %v3936_v28 = vld [vmem:[%s6787_s2 + $0x2b0] sm:$0xff] }
 0x141   :  { %v928_v20 = vmul.f32 %v6840_v16, %v815_v43 }
 0x142   :  { %v501_v36 = vadd.f32 %v500_v55, %v486_v62  ;;  %v3939_v55 = vld [vmem:[%s6787_s2 + $0x2c8] sm:$0xff] }
 0x143   :  { %v943_v23 = vadd.f32 %v942_v14, %v928_v20  ;;  %v6029_v4 = vpop.permute.xlu1 %1436  ;;  %v6031_v3 = vpop.permute.xlu0 %1431  ;;  %2320 = vperm.xlu1 %4557, %v3931_v31   ;;  %v3941_v20 = vld [vmem:[%s6787_s2 + $0x2d8] sm:$0xff] }
 0x144   :  { %2315 = vperm.xlu0 %4556, %v3930_v10   ;;  %v502_v8 = vadd.f32 %v501_v36, %v487_v11  ;;  %v3940_v10 = vld [vmem:[%s6787_s2 + $0x2d0] sm:$0xff] }
 0x145   :  { %v944_v19 = vadd.f32 %v943_v23, %v929_v9  ;;  %v3943_v23 = vld [vmem:[%s6787_s2 + $0x2e8] sm:$0xff] }
 0x146   :  { %v503_v60 = vadd.f32 %v502_v8, %v488_v33  ;;  %v6846_v8 = vld [vmem:[#allocation27_spill] sm:$0xff] }
 0x147   :  { %v945_v39 = vadd.f32 %v944_v19, %v930_v27  ;;  %v1447_v44 = vpop.permute.xlu1 %1446  ;;  %v1442_v25 = vpop.permute.xlu0 %1441  ;;  %2330 = vperm.xlu1 %4557, %v3933_v37   ;;  %v6845_v37 = vld [vmem:[#allocation29_spill] sm:$0xff] }
 0x148   :  { %2325 = vperm.xlu0 %4556, %v3932_v46   ;;  %v504_v12 = vrot.slane %v503_v60, 4  ;;  %v3942_v27 = vld [vmem:[%s6787_s2 + $0x2e0] sm:$0xff] }
 0x149   :  { %v946_v32 = vrot.slane %v945_v39, 4 }
 0x14a   :  { %v505_v6 = vadd.f32 %v504_v12, %v503_v60  ;;  %v6847_v12 = vld [vmem:[#allocation28_spill] sm:$0xff] }
 0x14b   :  { %v947_v41 = vadd.f32 %v946_v32, %v945_v39  ;;  %v6047_v49 = vpop.permute.xlu1 %1456  ;;  %v6049_v13 = vpop.permute.xlu0 %1451  ;;  %2340 = vperm.xlu1 %4557, %v3935_v30  }
 0x14c   :  { %2335 = vperm.xlu0 %4556, %v3934_v34   ;;  %v506_v51 = vrot.slane %v505_v6, 2 }
 0x14d   :  { %v948_v50 = vrot.slane %v947_v41, 2 }
 0x14e   :  { %v507_v40 = vadd.f32 %v506_v51, %v505_v6 }
 0x14f   :  { %v949_v63 = vadd.f32 %v948_v50, %v947_v41  ;;  %v6057_v61 = vpop.permute.xlu1 %1466  ;;  %v6059_v43 = vpop.permute.xlu0 %1461  ;;  %2350 = vperm.xlu1 %4557, %v3937_v47  }
 0x150   :  { %2345 = vperm.xlu0 %4556, %v3936_v28   ;;  %v508_v14 = vrot.slane %v507_v40, 1 }
 0x151   :  { %v950_v31 = vrot.slane %v949_v63, 1 }
 0x152   :  { %v509_v15 = vadd.f32 %v508_v14, %v507_v40  ;;  %v6848_v40 = vld [vmem:[#allocation26_spill] sm:$0xff] }
 0x153   :  { %v951_v48 = vadd.f32 %v950_v31, %v949_v63  ;;  %v6067_v62 = vpop.permute.xlu1 %1476  ;;  %v6069_v16 = vpop.permute.xlu0 %1471  ;;  %2360 = vperm.xlu1 %4557, %v3939_v55  }
 0x154   :  { %2355 = vperm.xlu0 %4556, %v3938_v2  }
 0x155   :  { %v6077_v22 = vadd.f32 %v951_v48, %v509_v15 }
 0x157   :  { %v6079_v11 = vpop.permute.xlu1 %1486  ;;  %v6081_v17 = vpop.permute.xlu0 %1481  ;;  %2370 = vperm.xlu1 %4557, %v3941_v20   ;;  %v3963_v20 = vld [vmem:[%s6788_s3 + $0x288] sm:$0xff] }
 0x158   :  { %2365 = vperm.xlu0 %4556, %v3940_v10   ;;  %v4316_v9 = vpop.f32.mrb[16].mxu0  ;;  %v4348_v36 = vpop.f32.mrb[16].mxu1 }
 0x159   :  { %v6087_v42 = vadd.f32 %v4316_v9, %v6845_v37  ;;  %v1165_v33 = vpop.f32.mrb[17].mxu0  ;;  %v1607_v53 = vpop.f32.mrb[17].mxu1  ;;  %v6093_v39 = vadd.f32 %v4348_v36, %v1442_v25  ;;  %v3945_v25 = vld [vmem:[%s6787_s2 + $0x2f8] sm:$0xff] }
 0x15a   :  { %v1166_v19 = vadd.f32 %v1165_v33, %v6846_v8  ;;  %v4317_v46 = vpop.f32.mrb[18].mxu0  ;;  %v4349_v60 = vpop.f32.mrb[18].mxu1  ;;  %v6096_v30 = vadd.f32 %v1607_v53, %v6031_v3 }
 0x15b   :  { %v1177_v32 = vadd.f32 %v4317_v46, %v6847_v12  ;;  %v6099_v34 = vadd.f32 %v4349_v60, %v1447_v44  ;;  %v6101_v6 = vpop.permute.xlu1 %1496  ;;  %v6103_v41 = vpop.permute.xlu0 %1491  ;;  %2380 = vperm.xlu1 %4557, %v3943_v23   ;;  %v1230_v3 = vmul.f32 0.01, %v6087_v42  ;;  %v3944_v44 = vld [vmem:[%s6787_s2 + $0x2f0] sm:$0xff]  ;;  %v6115_v14 = vmul.f32 0.01, %v6093_v39 }
 0x15c   :  { %v1228_v47 = vmul.f32 0.01, %v1166_v19  ;;  %v1168_v51 = vpop.f32.mrb[19].mxu0  ;;  %v1610_v50 = vpop.f32.mrb[19].mxu1  ;;  %2375 = vperm.xlu0 %4556, %v3942_v27   ;;  %v1670_v31 = vmul.f32 0.01, %v6096_v30 }
 0x15d   :  { %v1231_v28 = vmul.f32 0.01, %v1177_v32  ;;  %v1169_v63 = vadd.f32 %v1168_v51, %v6848_v40  ;;  %v1611_v55 = vadd.f32 %v1610_v50, %v6029_v4  ;;  %v1246_v37 = vmax.f32 %v6087_v42, %v1230_v3  ;;  %v6849_v27 = vld [vmem:[#allocation33_spill] sm:$0xff]  ;;  %v6850_v42 = vld [vmem:[#allocation31_spill] sm:$0xff] }
 0x15e   :  { %v1244_v10 = vmax.f32 %v1166_v19, %v1228_v47  ;;  %v6128_v53 = vmul.f32 0.01, %v6099_v34  ;;  %v3962_v19 = vld [vmem:[%s6788_s3 + $0x280] sm:$0xff] }
 0x15f   :  { %v1247_v2 = vmax.f32 %v1177_v32, %v1231_v28  ;;  %v6118_v15 = vpop.permute.xlu1 %1506  ;;  %v6120_v48 = vpop.permute.xlu0 %1501  ;;  %2390 = vperm.xlu1 %4557, %v3945_v25   ;;  %v1229_v9 = vmul.f32 0.01, %v1169_v63  ;;  %v1671_v36 = vmul.f32 0.01, %v1611_v55  ;;  %v1686_v25 = vmax.f32 %v6096_v30, %v1670_v31  ;;  %v6851_v28 = vld [vmem:[#allocation32_spill] sm:$0xff] }
 0x160   :  { %2385 = vperm.xlu0 %4556, %v3944_v44   ;;  %v4320_v4 = vpop.f32.mrb[20].mxu0  ;;  %v4352_v23 = vpop.f32.mrb[20].mxu1  ;;  %v1359_v30 = vmul.f32 %v5901_v1, %v1246_v37 }
 0x161   :  { %v1360_v33 = vmul.f32 %v5899_v21, %v1247_v2  ;;  %v6131_v8 = vadd.f32 %v4320_v4, %v6849_v27  ;;  %v1181_v46 = vpop.f32.mrb[21].mxu0  ;;  %v1623_v60 = vpop.f32.mrb[21].mxu1  ;;  %v1245_v12 = vmax.f32 %v1169_v63, %v1229_v9  ;;  %v1687_v32 = vmax.f32 %v1611_v55, %v1671_v36 }
 0x162   :  { %v6137_v47 = vadd.f32 %v4352_v23, %v6059_v43  ;;  %v1182_v51 = vadd.f32 %v1181_v46, %v6850_v42  ;;  %v4321_v21 = vpop.f32.mrb[22].mxu0  ;;  %v4353_v50 = vpop.f32.mrb[22].mxu1  ;;  %v6142_v3 = vadd.f32 %v1623_v60, %v6049_v13  ;;  %v1357_v43 = vmul.f32 %v5875_v38, %v1244_v10  ;;  %v3965_v13 = vld [vmem:[%s6788_s3 + $0x298] sm:$0xff] }
 0x163   :  { %v1193_v44 = vadd.f32 %v4321_v21, %v6851_v28  ;;  %v6146_v40 = vadd.f32 %v4353_v50, %v6057_v61  ;;  %v1727_v2 = vpop.permute.xlu1 %1726  ;;  %v1722_v63 = vpop.permute.xlu0 %1721  ;;  %2610 = vperm.xlu1 %4557, %v3963_v20   ;;  %v1358_v55 = vmul.f32 %v5873_v58, %v1245_v12  ;;  %v1688_v61 = vmax.f32 %v6093_v39, %v6115_v14  ;;  %v3964_v58 = vld [vmem:[%s6788_s3 + $0x290] sm:$0xff]  ;;  %v6852_v39 = vld [vmem:[#allocation30_spill] sm:$0xff] }
 0x164   :  { %v1232_v9 = vmul.f32 0.01, %v1182_v51  ;;  %v1800_v36 = vmul.f32 %v1727_v2, %v1687_v32  ;;  %v1184_v4 = vpop.f32.mrb[23].mxu0  ;;  %v1626_v23 = vpop.f32.mrb[23].mxu1  ;;  %2605 = vperm.xlu0 %4556, %v3962_v19   ;;  %v1234_v31 = vmul.f32 0.01, %v6131_v8  ;;  %v1799_v46 = vmul.f32 %v1722_v63, %v1686_v25 }
 0x165   :  { %v1235_v20 = vmul.f32 0.01, %v1193_v44  ;;  %v1373_v38 = vadd.f32 %v1358_v55, %v1357_v43  ;;  %v6161_v10 = vmul.f32 0.01, %v6137_v47  ;;  %v1689_v60 = vmax.f32 %v6099_v34, %v6128_v53  ;;  %v3967_v34 = vld [vmem:[%s6788_s3 + $0x2a8] sm:$0xff] }
 0x166   :  { %v1248_v27 = vmax.f32 %v1182_v51, %v1232_v9  ;;  %v1674_v1 = vmul.f32 0.01, %v6142_v3  ;;  %v1185_v14 = vadd.f32 %v1184_v4, %v6852_v39  ;;  %v1815_v21 = vadd.f32 %v1800_v36, %v1799_v46  ;;  %v6853_v36 = vld [vmem:[#allocation37_spill] sm:$0xff] }
 0x167   :  { %v1251_v37 = vmax.f32 %v1193_v44, %v1235_v20  ;;  %v1737_v19 = vpop.permute.xlu1 %1736  ;;  %v1732_v12 = vpop.permute.xlu0 %1731  ;;  %2620 = vperm.xlu1 %4557, %v3965_v13   ;;  %v1374_v32 = vadd.f32 %v1373_v38, %v1359_v30  ;;  %v6169_v50 = vadd.f32 %v1626_v23, %v6047_v49  ;;  %v1250_v53 = vmax.f32 %v6131_v8, %v1234_v31  ;;  %v3966_v49 = vld [vmem:[%s6788_s3 + $0x2a0] sm:$0xff] }
 0x168   :  { %v1361_v42 = vmul.f32 %v5926_v56, %v1248_v27  ;;  %2615 = vperm.xlu0 %4556, %v3964_v58   ;;  %v4324_v51 = vpop.f32.mrb[24].mxu0  ;;  %v4356_v25 = vpop.f32.mrb[24].mxu1  ;;  %v1233_v44 = vmul.f32 0.01, %v1185_v14  ;;  %v1801_v2 = vmul.f32 %v1732_v12, %v1688_v61  ;;  %v1692_v43 = vmax.f32 %v6137_v47, %v6161_v10  ;;  %v6854_v61 = vld [vmem:[#allocation35_spill] sm:$0xff] }
 0x169   :  { %v6176_v28 = vmul.f32 %v5944_v26, %v1251_v37  ;;  %v1197_v63 = vpop.f32.mrb[25].mxu0  ;;  %v1639_v56 = vpop.f32.mrb[25].mxu1  ;;  %v1375_v55 = vadd.f32 %v1374_v32, %v1360_v33  ;;  %v6184_v9 = vmul.f32 0.01, %v6146_v40  ;;  %v6187_v8 = vadd.f32 %v4324_v51, %v6853_v36  ;;  %v3969_v37 = vld [vmem:[%s6788_s3 + $0x2b8] sm:$0xff]  ;;  %v6856_v36 = vld [vmem:[#allocation34_spill] sm:$0xff] }
 0x16a   :  { %v4325_v26 = vpop.f32.mrb[26].mxu0  ;;  %v4357_v4 = vpop.f32.mrb[26].mxu1  ;;  %v1249_v23 = vmax.f32 %v1185_v14, %v1233_v44  ;;  %v1675_v13 = vmul.f32 0.01, %v6169_v50  ;;  %v1816_v30 = vadd.f32 %v1815_v21, %v1801_v2  ;;  %v1198_v31 = vadd.f32 %v1197_v63, %v6854_v61  ;;  %v6855_v32 = vld [vmem:[#allocation36_spill] sm:$0xff]  ;;  %v3971_v44 = vld [vmem:[%s6788_s3 + $0x2c8] sm:$0xff] }
 0x16b   :  { %v1747_v20 = vpop.permute.xlu1 %1746  ;;  %v1742_v58 = vpop.permute.xlu0 %1741  ;;  %2630 = vperm.xlu1 %4557, %v3967_v34   ;;  %v1376_v38 = vadd.f32 %v1375_v55, %v1361_v42  ;;  %v1690_v33 = vmax.f32 %v6142_v3, %v1674_v1  ;;  %v6193_v47 = vadd.f32 %v4356_v25, %v6081_v17  ;;  %v6196_v10 = vadd.f32 %v1639_v56, %v6069_v16  ;;  %v3968_v17 = vld [vmem:[%s6788_s3 + $0x2b0] sm:$0xff] }
 0x16c   :  { %v1200_v27 = vpop.f32.mrb[27].mxu0  ;;  %v1642_v46 = vpop.f32.mrb[27].mxu1  ;;  %2625 = vperm.xlu0 %4556, %v3966_v49   ;;  %v1363_v39 = vmul.f32 %v5946_v18, %v1250_v53  ;;  %v1362_v14 = vmul.f32 %v5924_v45, %v1249_v23  ;;  %v1236_v12 = vmul.f32 0.01, %v1198_v31  ;;  %v1209_v3 = vadd.f32 %v4325_v26, %v6855_v32  ;;  %v3973_v32 = vld [vmem:[%s6788_s3 + $0x2d8] sm:$0xff] }
 0x16d   :  { %v1693_v16 = vmax.f32 %v6146_v40, %v6184_v9  ;;  %v1802_v1 = vmul.f32 %v1737_v19, %v1689_v60  ;;  %v1238_v42 = vmul.f32 0.01, %v6187_v8  ;;  %v6211_v21 = vadd.f32 %v4357_v4, %v6079_v11 }
 0x16e   :  { %v1377_v51 = vadd.f32 %v1376_v38, %v1362_v14  ;;  %v1691_v18 = vmax.f32 %v6169_v50, %v1675_v13  ;;  %v1252_v45 = vmax.f32 %v1198_v31, %v1236_v12  ;;  %v1239_v25 = vmul.f32 0.01, %v1209_v3  ;;  %v3970_v13 = vld [vmem:[%s6788_s3 + $0x2c0] sm:$0xff] }
 0x16f   :  { %v1757_v34 = vpop.permute.xlu1 %1756  ;;  %v1752_v53 = vpop.permute.xlu0 %1751  ;;  %2640 = vperm.xlu1 %4557, %v3969_v37   ;;  %v6218_v2 = vmul.f32 0.01, %v6193_v47  ;;  %v6221_v60 = vmul.f32 0.01, %v6196_v10  ;;  %v1803_v11 = vmul.f32 %v1742_v58, %v1690_v33  ;;  %v1817_v19 = vadd.f32 %v1816_v30, %v1802_v1  ;;  %v6857_v1 = vld [vmem:[#allocation39_spill] sm:$0xff] }
 0x170   :  { %2635 = vperm.xlu0 %4556, %v3968_v17   ;;  %v4328_v63 = vpop.f32.mrb[28].mxu0  ;;  %v4360_v50 = vpop.f32.mrb[28].mxu1  ;;  %v1378_v56 = vadd.f32 %v1377_v51, %v1363_v39  ;;  %v1365_v49 = vmul.f32 %v5966_v59, %v1252_v45  ;;  %v1255_v55 = vmax.f32 %v1209_v3, %v1239_v25  ;;  %v1201_v26 = vadd.f32 %v1200_v27, %v6856_v36  ;;  %v3972_v51 = vld [vmem:[%s6788_s3 + $0x2d0] sm:$0xff] }
 0x171   :  { %v1213_v4 = vpop.f32.mrb[29].mxu0  ;;  %v1655_v23 = vpop.f32.mrb[29].mxu1  ;;  %v1254_v61 = vmax.f32 %v6187_v8, %v1238_v42  ;;  %v1804_v31 = vmul.f32 %v1747_v20, %v1691_v18  ;;  %v1818_v58 = vadd.f32 %v1817_v19, %v1803_v11  ;;  %v1643_v30 = vadd.f32 %v1642_v46, %v6067_v62 }
 0x172   :  { %v4329_v38 = vpop.f32.mrb[30].mxu0  ;;  %v4361_v33 = vpop.f32.mrb[30].mxu1  ;;  %v1379_v37 = vadd.f32 %v1378_v56, %v6176_v28  ;;  %v1368_v59 = vmul.f32 %v5984_v0, %v1255_v55  ;;  %v1237_v39 = vmul.f32 0.01, %v1201_v26  ;;  %v1805_v27 = vmul.f32 %v1752_v53, %v1692_v43 }
 0x173   :  { %v1767_v14 = vpop.permute.xlu1 %1766  ;;  %v1762_v12 = vpop.permute.xlu0 %1761  ;;  %2650 = vperm.xlu1 %4557, %v3971_v44   ;;  %v1696_v8 = vmax.f32 %v6193_v47, %v6218_v2  ;;  %v1681_v62 = vmul.f32 0.01, %v6211_v21  ;;  %v1679_v20 = vmul.f32 0.01, %v1643_v30  ;;  %v1819_v46 = vadd.f32 %v1818_v58, %v1804_v31  ;;  %v3977_v31 = vld [vmem:[%s6788_s3 + $0x2f8] sm:$0xff] }
 0x174   :  { %v1216_v3 = vpop.f32.mrb[31].mxu0  ;;  %v1658_v28 = vpop.f32.mrb[31].mxu1  ;;  %2645 = vperm.xlu0 %4556, %v3970_v13   ;;  %v1380_v0 = vadd.f32 %v1379_v37, %v1365_v49  ;;  %v1694_v43 = vmax.f32 %v6196_v10, %v6221_v60  ;;  %v1253_v17 = vmax.f32 %v1201_v26, %v1237_v39  ;;  %v1214_v42 = vadd.f32 %v1213_v4, %v6857_v1  ;;  %v6858_v26 = vld [vmem:[#allocation38_spill] sm:$0xff] }
 0x175   :  { %v1695_v18 = vmax.f32 %v1643_v30, %v1679_v20  ;;  %v1820_v47 = vadd.f32 %v1819_v46, %v1805_v27  ;;  %v6245_v45 = vadd.f32 %v4328_v63, %v5841_v57  ;;  %v1656_v25 = vadd.f32 %v1655_v23, %v6103_v41 }
 0x176   :  { %v1367_v53 = vmul.f32 %v5986_v7, %v1254_v61  ;;  %v1366_v44 = vmul.f32 %v5964_v24, %v1253_v17  ;;  %v1240_v2 = vmul.f32 0.01, %v1214_v42  ;;  %v1225_v10 = vadd.f32 %v4329_v38, %v5839_v52  ;;  %v3975_v24 = vld [vmem:[%s6788_s3 + $0x2e8] sm:$0xff] }
 0x177   :  { %v1777_v60 = vpop.permute.xlu1 %1776  ;;  %v1772_v11 = vpop.permute.xlu0 %1771  ;;  %2660 = vperm.xlu1 %4557, %v3973_v32   ;;  %v1697_v19 = vmax.f32 %v6211_v21, %v1681_v62  ;;  %v1806_v56 = vmul.f32 %v1757_v34, %v1693_v16  ;;  %v6256_v57 = vadd.f32 %v4361_v33, %v6118_v15  ;;  %v1808_v41 = vmul.f32 %v1767_v14, %v1695_v18  ;;  %v3974_v21 = vld [vmem:[%s6788_s3 + $0x2e0] sm:$0xff]  ;;  %v3976_v33 = vld [vmem:[%s6788_s3 + $0x2f0] sm:$0xff] }
 0x178   :  { %2655 = vperm.xlu0 %4556, %v3972_v51   ;;  %v1381_v7 = vadd.f32 %v1380_v0, %v1366_v44  ;;  %v1664_v52 = vadd.f32 %v4360_v50, %v6120_v48  ;;  %v1256_v63 = vmax.f32 %v1214_v42, %v1240_v2  ;;  %v1243_v49 = vmul.f32 0.01, %v1225_v10  ;;  %v3996_v44 = vld [vmem:[%s6787_s2 + $0x310] sm:$0xff] }
 0x179   :  { %v1242_v40 = vmul.f32 0.01, %v6245_v45  ;;  %v1682_v9 = vmul.f32 0.01, %v1656_v25  ;;  %v1807_v15 = vmul.f32 %v1762_v12, %v1694_v43  ;;  %v1821_v16 = vadd.f32 %v1820_v47, %v1806_v56 }
 0x17a   :  { %v1382_v34 = vadd.f32 %v1381_v7, %v1367_v53  ;;  %v1369_v55 = vmul.f32 %v6004_v54, %v1256_v63  ;;  %v1259_v36 = vmax.f32 %v1225_v10, %v1243_v49  ;;  %v1217_v4 = vadd.f32 %v1216_v3, %v6858_v26  ;;  %v3998_v7 = vld [vmem:[%s6787_s2 + $0x320] sm:$0xff] }
 0x17b   :  { %v1787_v23 = vpop.permute.xlu1 %1786  ;;  %v1782_v13 = vpop.permute.xlu0 %1781  ;;  %2670 = vperm.xlu1 %4557, %v3975_v24   ;;  %v1822_v48 = vadd.f32 %v1821_v16, %v1807_v15  ;;  %v1659_v50 = vadd.f32 %v1658_v28, %v6101_v6  ;;  %v1810_v61 = vmul.f32 %v1777_v60, %v1697_v19  ;;  %v1809_v54 = vmul.f32 %v1772_v11, %v1696_v8  ;;  %v3995_v8 = vld [vmem:[%s6787_s2 + $0x308] sm:$0xff]  ;;  %v3994_v28 = vld [vmem:[%s6787_s2 + $0x300] sm:$0xff]  ;;  %v4000_v15 = vld [vmem:[%s6787_s2 + $0x330] sm:$0xff] }
 0x17c   :  { %2665 = vperm.xlu0 %4556, %v3974_v21   ;;  %v1383_v58 = vadd.f32 %v1382_v34, %v1368_v59  ;;  %v1372_v30 = vmul.f32 %v6015_v29, %v1259_v36  ;;  %v1241_v38 = vmul.f32 0.01, %v1217_v4  ;;  %v1684_v37 = vmul.f32 0.01, %v1664_v52 }
 0x17d   :  { %v1698_v39 = vmax.f32 %v1656_v25, %v1682_v9  ;;  %v1683_v27 = vmul.f32 0.01, %v1659_v50  ;;  %v1823_v14 = vadd.f32 %v1822_v48, %v1808_v41  ;;  %v1258_v6 = vmax.f32 %v6245_v45, %v1242_v40  ;;  %v3999_v41 = vld [vmem:[%s6787_s2 + $0x328] sm:$0xff]  ;;  %v4001_v40 = vld [vmem:[%s6787_s2 + $0x338] sm:$0xff] }
 0x17e   :  { %v1384_v12 = vadd.f32 %v1383_v58, %v1369_v55  ;;  %v1257_v32 = vmax.f32 %v1217_v4, %v1241_v38  ;;  %v1700_v0 = vmax.f32 %v1664_v52, %v1684_v37  ;;  %v1685_v43 = vmul.f32 0.01, %v6256_v57  ;;  %v4003_v4 = vld [vmem:[%s6787_s2 + $0x348] sm:$0xff] }
 0x17f   :  { %v1797_v62 = vpop.permute.xlu1 %1796  ;;  %v1792_v20 = vpop.permute.xlu0 %1791  ;;  %2680 = vperm.xlu1 %4557, %v3977_v31   ;;  %v1699_v59 = vmax.f32 %v1659_v50, %v1683_v27  ;;  %v1824_v46 = vadd.f32 %v1823_v14, %v1809_v54  ;;  %v1811_v29 = vmul.f32 %v1782_v13, %v1698_v39  ;;  %v1371_v42 = vmul.f32 %v6017_v5, %v1258_v6  ;;  %v4002_v13 = vld [vmem:[%s6787_s2 + $0x340] sm:$0xff]  ;;  %v4004_v54 = vld [vmem:[%s6787_s2 + $0x350] sm:$0xff]  ;;  %v4007_v6 = vld [vmem:[%s6787_s2 + $0x368] sm:$0xff] }
 0x180   :  { %2675 = vperm.xlu0 %4556, %v3976_v33   ;;  %v1370_v3 = vmul.f32 %v6002_v35, %v1257_v32  ;;  %v1813_v25 = vmul.f32 %v1792_v20, %v1700_v0  ;;  %v3997_v35 = vld [vmem:[%s6787_s2 + $0x318] sm:$0xff]  ;;  %v1701_v2 = vmax.f32 %v6256_v57, %v1685_v43  ;;  %v4008_v0 = vld [vmem:[%s6787_s2 + $0x370] sm:$0xff] }
 0x181   :  { %v1812_v17 = vmul.f32 %v1787_v23, %v1699_v59  ;;  %v1825_v1 = vadd.f32 %v1824_v46, %v1810_v61 }
 0x182   :  { %v1385_v51 = vadd.f32 %v1384_v12, %v1370_v3  ;;  %v1814_v19 = vmul.f32 %v1797_v62, %v1701_v2 }
 0x183   :  { %v6286_v18 = vpop.permute.xlu1 %1878  ;;  %v1874_v47 = vpop.permute.xlu0 %1873  ;;  %2762 = vperm.xlu1 %4557, %v3995_v8   ;;  %v1826_v45 = vadd.f32 %v1825_v1, %v1811_v29  ;;  %v4009_v8 = vld [vmem:[%s6787_s2 + $0x378] sm:$0xff] }
 0x184   :  { %2757 = vperm.xlu0 %4556, %v3994_v28   ;;  %v1386_v53 = vadd.f32 %v1385_v51, %v1371_v42 }
 0x185   :  { %v1827_v5 = vadd.f32 %v1826_v45, %v1812_v17 }
 0x186   :  { %v1387_v10 = vadd.f32 %v1386_v53, %v1372_v30  ;;  %v4005_v30 = vld [vmem:[%s6787_s2 + $0x358] sm:$0xff] }
 0x187   :  { %v1889_v60 = vpop.permute.xlu1 %1888  ;;  %v1884_v11 = vpop.permute.xlu0 %1883  ;;  %2772 = vperm.xlu1 %4557, %v3997_v35   ;;  %v1828_v56 = vadd.f32 %v1827_v5, %v1813_v25 }
 0x188   :  { %2767 = vperm.xlu0 %4556, %v3996_v44   ;;  %v1388_v24 = vrot.slane %v1387_v10, 4  ;;  %v4026_v44 = vld [vmem:[%s6788_s3 + $0x300] sm:$0xff] }
 0x189   :  { %v1829_v52 = vadd.f32 %v1828_v56, %v1814_v19 }
 0x18a   :  { %v1389_v63 = vadd.f32 %v1388_v24, %v1387_v10 }
 0x18b   :  { %v6301_v57 = vpop.permute.xlu1 %1898  ;;  %v6303_v49 = vpop.permute.xlu0 %1893  ;;  %2782 = vperm.xlu1 %4557, %v3999_v41   ;;  %v1830_v21 = vrot.slane %v1829_v52, 4 }
 0x18c   :  { %2777 = vperm.xlu0 %4556, %v3998_v7   ;;  %v1390_v9 = vrot.slane %v1389_v63, 2 }
 0x18d   :  { %v1831_v16 = vadd.f32 %v1830_v21, %v1829_v52  ;;  %v4029_v21 = vld [vmem:[%s6788_s3 + $0x318] sm:$0xff] }
 0x18e   :  { %v1391_v34 = vadd.f32 %v1390_v9, %v1389_v63 }
 0x18f   :  { %v1909_v55 = vpop.permute.xlu1 %1908  ;;  %v6311_v36 = vpop.permute.xlu0 %1903  ;;  %2792 = vperm.xlu1 %4557, %v4001_v40   ;;  %v1832_v26 = vrot.slane %v1831_v16, 2 }
 0x190   :  { %2787 = vperm.xlu0 %4556, %v4000_v15   ;;  %v1392_v23 = vrot.slane %v1391_v34, 1  ;;  %v4028_v15 = vld [vmem:[%s6788_s3 + $0x310] sm:$0xff] }
 0x191   :  { %v1833_v48 = vadd.f32 %v1832_v26, %v1831_v16 }
 0x192   :  { %v1393_v50 = vadd.f32 %v1392_v23, %v1391_v34 }
 0x193   :  { %v6319_v61 = vpop.permute.xlu1 %1918  ;;  %v6321_v31 = vpop.permute.xlu0 %1913  ;;  %2802 = vperm.xlu1 %4557, %v4003_v4   ;;  %v1834_v58 = vrot.slane %v1833_v48, 1 }
 0x194   :  { %2797 = vperm.xlu0 %4556, %v4002_v13   ;;  %v1394_v38 = vadd.f32 %v1393_v50, %v6077_v22  ;;  %v4006_v22 = vld [vmem:[%s6787_s2 + $0x360] sm:$0xff] }
 0x195   :  { %v1835_v33 = vadd.f32 %v1834_v58, %v1833_v48  ;;  %v4031_v58 = vld [vmem:[%s6788_s3 + $0x328] sm:$0xff] }
 0x197   :  { %v6330_v37 = vpop.permute.xlu1 %1928  ;;  %v6332_v39 = vpop.permute.xlu0 %1923  ;;  %2812 = vperm.xlu1 %4557, %v4005_v30   ;;  %v6334_v27 = vadd.f32 %v1835_v33, %v1394_v38  ;;  %v4030_v33 = vld [vmem:[%s6788_s3 + $0x320] sm:$0xff] }
 0x198   :  { %2807 = vperm.xlu0 %4556, %v4004_v54   ;;  %v4380_v14 = vpop.f32.mrb[32].mxu0 }
 0x199   :  { %v2049_v12 = vpop.f32.mrb[33].mxu0  ;;  %v2058_v17 = vadd.f32 %v4380_v14, %v1884_v11 }
 0x19a   :  { %v2050_v32 = vadd.f32 %v2049_v12, %v1874_v47  ;;  %v4381_v62 = vpop.f32.mrb[34].mxu0 }
 0x19b   :  { %v6342_v20 = vadd.f32 %v4381_v62, %v1889_v60  ;;  %v6344_v59 = vpop.permute.xlu1 %1938  ;;  %v6346_v46 = vpop.permute.xlu0 %1933  ;;  %2822 = vperm.xlu1 %4557, %v4007_v6   ;;  %v2114_v2 = vmul.f32 0.01, %v2058_v17 }
 0x19c   :  { %v2052_v29 = vpop.f32.mrb[35].mxu0  ;;  %2817 = vperm.xlu0 %4556, %v4006_v22   ;;  %v6351_v3 = vpop.f32.mrb[32].mxu1  ;;  %v2112_v1 = vmul.f32 0.01, %v2050_v32 }
 0x19d   :  { %v2053_v28 = vadd.f32 %v2052_v29, %v6286_v18  ;;  %v6357_v43 = vpop.f32.mrb[33].mxu1  ;;  %v4027_v18 = vld [vmem:[%s6788_s3 + $0x308] sm:$0xff]  ;;  %v2115_v24 = vmul.f32 0.01, %v6342_v20  ;;  %v2130_v34 = vmax.f32 %v2058_v17, %v2114_v2 }
 0x19e   :  { %v6359_v42 = vpop.f32.mrb[34].mxu1  ;;  %v2128_v5 = vmax.f32 %v2050_v32, %v2112_v1 }
 0x19f   :  { %v2113_v51 = vmul.f32 0.01, %v2053_v28  ;;  %v6361_v47 = vpop.permute.xlu1 %1948  ;;  %v6363_v45 = vpop.permute.xlu0 %1943  ;;  %2832 = vperm.xlu1 %4557, %v4009_v8   ;;  %v2131_v48 = vmax.f32 %v6342_v20, %v2115_v24 }
 0x1a0   :  { %2827 = vperm.xlu0 %4556, %v4008_v0   ;;  %v4384_v25 = vpop.f32.mrb[36].mxu0  ;;  %v6368_v35 = vpop.f32.mrb[35].mxu1 }
 0x1a1   :  { %v2065_v53 = vpop.f32.mrb[37].mxu0  ;;  %v2129_v10 = vmax.f32 %v2053_v28, %v2113_v51  ;;  %v4033_v51 = vld [vmem:[%s6788_s3 + $0x338] sm:$0xff] }
 0x1a2   :  { %v2066_v60 = vadd.f32 %v2065_v53, %v6303_v49  ;;  %v4385_v11 = vpop.f32.mrb[38].mxu0  ;;  %v2074_v49 = vadd.f32 %v4384_v25, %v6311_v36 }
 0x1a3   :  { %v6374_v19 = vadd.f32 %v4385_v11, %v1909_v55  ;;  %v2169_v56 = vpop.permute.xlu1 %2168  ;;  %v2164_v41 = vpop.permute.xlu0 %2163  ;;  %3052 = vperm.xlu1 %4557, %v4027_v18   ;;  %v4032_v18 = vld [vmem:[%s6788_s3 + $0x330] sm:$0xff] }
 0x1a4   :  { %v2242_v7 = vmul.f32 %v2169_v56, %v2129_v10  ;;  %v2241_v52 = vmul.f32 %v2164_v41, %v2128_v5  ;;  %v2068_v63 = vpop.f32.mrb[39].mxu0  ;;  %3047 = vperm.xlu0 %4556, %v4026_v44   ;;  %v6380_v40 = vpop.f32.mrb[36].mxu1  ;;  %v2116_v55 = vmul.f32 0.01, %v2066_v60  ;;  %v2118_v38 = vmul.f32 0.01, %v2074_v49 }
 0x1a5   :  { %v2069_v9 = vadd.f32 %v2068_v63, %v6301_v57  ;;  %v6387_v16 = vpop.f32.mrb[37].mxu1  ;;  %v2119_v8 = vmul.f32 0.01, %v6374_v19 }
 0x1a6   :  { %v2257_v26 = vadd.f32 %v2242_v7, %v2241_v52  ;;  %v6389_v4 = vpop.f32.mrb[38].mxu1  ;;  %v2132_v14 = vmax.f32 %v2066_v60, %v2116_v55  ;;  %v2134_v44 = vmax.f32 %v2074_v49, %v2118_v38  ;;  %v4058_v52 = vld [vmem:[%s6787_s2 + $0x380] sm:$0xff] }
 0x1a7   :  { %v2179_v23 = vpop.permute.xlu1 %2178  ;;  %v2174_v13 = vpop.permute.xlu0 %2173  ;;  %3062 = vperm.xlu1 %4557, %v4029_v21   ;;  %v2117_v50 = vmul.f32 0.01, %v2069_v9  ;;  %v2135_v41 = vmax.f32 %v6374_v19, %v2119_v8 }
 0x1a8   :  { %v2243_v36 = vmul.f32 %v2174_v13, %v2130_v34  ;;  %3057 = vperm.xlu0 %4556, %v4028_v15   ;;  %v4388_v57 = vpop.f32.mrb[40].mxu0  ;;  %v6395_v30 = vpop.f32.mrb[39].mxu1  ;;  %v2244_v6 = vmul.f32 %v2179_v23, %v2131_v48 }
 0x1a9   :  { %v2081_v54 = vpop.f32.mrb[41].mxu0  ;;  %v2133_v28 = vmax.f32 %v2069_v9, %v2117_v50  ;;  %v4034_v9 = vld [vmem:[%s6788_s3 + $0x340] sm:$0xff] }
 0x1aa   :  { %v2258_v12 = vadd.f32 %v2257_v26, %v2243_v36  ;;  %v2082_v22 = vadd.f32 %v2081_v54, %v6321_v31  ;;  %v4389_v32 = vpop.f32.mrb[42].mxu0  ;;  %v2090_v31 = vadd.f32 %v4388_v57, %v6332_v39  ;;  %v4060_v54 = vld [vmem:[%s6787_s2 + $0x390] sm:$0xff] }
 0x1ab   :  { %v6402_v62 = vadd.f32 %v4389_v32, %v6330_v37  ;;  %v2189_v20 = vpop.permute.xlu1 %2188  ;;  %v2184_v29 = vpop.permute.xlu0 %2183  ;;  %3072 = vperm.xlu1 %4557, %v4031_v58  }
 0x1ac   :  { %v2245_v0 = vmul.f32 %v2184_v29, %v2132_v14  ;;  %v2259_v17 = vadd.f32 %v2258_v12, %v2244_v6  ;;  %v2084_v1 = vpop.f32.mrb[43].mxu0  ;;  %3067 = vperm.xlu0 %4556, %v4030_v33   ;;  %v6408_v25 = vpop.f32.mrb[40].mxu1  ;;  %v2120_v2 = vmul.f32 0.01, %v2082_v22  ;;  %v2246_v5 = vmul.f32 %v2189_v20, %v2133_v28  ;;  %v4059_v14 = vld [vmem:[%s6787_s2 + $0x388] sm:$0xff] }
 0x1ad   :  { %v2085_v37 = vadd.f32 %v2084_v1, %v6319_v61  ;;  %v6415_v53 = vpop.f32.mrb[41].mxu1  ;;  %v2122_v21 = vmul.f32 0.01, %v2090_v31  ;;  %v2123_v50 = vmul.f32 0.01, %v6402_v62  ;;  %v4062_v1 = vld [vmem:[%s6787_s2 + $0x3a0] sm:$0xff] }
 0x1ae   :  { %v2260_v10 = vadd.f32 %v2259_v17, %v2245_v0  ;;  %v6417_v60 = vpop.f32.mrb[42].mxu1  ;;  %v2136_v15 = vmax.f32 %v2082_v22, %v2120_v2 }
 0x1af   :  { %v2199_v11 = vpop.permute.xlu1 %2198  ;;  %v2194_v56 = vpop.permute.xlu0 %2193  ;;  %3082 = vperm.xlu1 %4557, %v4033_v51   ;;  %v2121_v39 = vmul.f32 0.01, %v2085_v37  ;;  %v2138_v12 = vmax.f32 %v2090_v31, %v2122_v21  ;;  %v2139_v0 = vmax.f32 %v6402_v62, %v2123_v50 }
 0x1b0   :  { %v2247_v24 = vmul.f32 %v2194_v56, %v2134_v44  ;;  %v2261_v61 = vadd.f32 %v2260_v10, %v2246_v5  ;;  %3077 = vperm.xlu0 %4556, %v4032_v18   ;;  %v4392_v7 = vpop.f32.mrb[44].mxu0  ;;  %v6423_v63 = vpop.f32.mrb[43].mxu1  ;;  %v2248_v34 = vmul.f32 %v2199_v11, %v2135_v41 }
 0x1b1   :  { %v2097_v49 = vpop.f32.mrb[45].mxu0  ;;  %v2137_v36 = vmax.f32 %v2085_v37, %v2121_v39  ;;  %v4061_v37 = vld [vmem:[%s6787_s2 + $0x398] sm:$0xff]  ;;  %v4091_v39 = vld [vmem:[%s6788_s3 + $0x388] sm:$0xff] }
 0x1b2   :  { %v2262_v19 = vadd.f32 %v2261_v61, %v2247_v24  ;;  %v2098_v55 = vadd.f32 %v2097_v49, %v6346_v46  ;;  %v4393_v26 = vpop.f32.mrb[46].mxu0  ;;  %v2106_v46 = vadd.f32 %v4392_v7, %v6363_v45  ;;  %v4090_v24 = vld [vmem:[%s6788_s3 + $0x380] sm:$0xff] }
 0x1b3   :  { %v2109_v23 = vadd.f32 %v4393_v26, %v6361_v47  ;;  %v2209_v13 = vpop.permute.xlu1 %2208  ;;  %v2204_v48 = vpop.permute.xlu0 %2203  ;;  %3199 = vperm.xlu1 %4557, %v4058_v52   ;;  %v4063_v26 = vld [vmem:[%s6787_s2 + $0x3a8] sm:$0xff] }
 0x1b4   :  { %v2249_v57 = vmul.f32 %v2204_v48, %v2136_v15  ;;  %v2263_v58 = vadd.f32 %v2262_v19, %v2248_v34  ;;  %v2100_v38 = vpop.f32.mrb[47].mxu0  ;;  %3087 = vperm.xlu0 %4556, %v4034_v9   ;;  %v6434_v33 = vpop.f32.mrb[44].mxu1  ;;  %v2124_v22 = vmul.f32 0.01, %v2098_v55  ;;  %v2250_v32 = vmul.f32 %v2209_v13, %v2137_v36 }
 0x1b5   :  { %v2101_v47 = vadd.f32 %v2100_v38, %v6344_v59  ;;  %v6441_v6 = vpop.f32.mrb[45].mxu1  ;;  %v2126_v31 = vmul.f32 0.01, %v2106_v46  ;;  %v2127_v44 = vmul.f32 0.01, %v2109_v23  ;;  %v4064_v38 = vld [vmem:[%s6787_s2 + $0x3b0] sm:$0xff] }
 0x1b6   :  { %v2264_v20 = vadd.f32 %v2263_v58, %v2249_v57  ;;  %v6443_v29 = vpop.f32.mrb[46].mxu1  ;;  %v2140_v18 = vmax.f32 %v2098_v55, %v2124_v22  ;;  %v4092_v55 = vld [vmem:[%s6788_s3 + $0x390] sm:$0xff]  ;;  %v4093_v58 = vld [vmem:[%s6788_s3 + $0x398] sm:$0xff] }
 0x1b7   :  { %v2219_v8 = vpop.permute.xlu1 %2218  ;;  %v2214_v28 = vpop.permute.xlu0 %2213  ;;  %3209 = vperm.xlu1 %4557, %v4060_v54   ;;  %v2125_v45 = vmul.f32 0.01, %v2101_v47  ;;  %v2143_v52 = vmax.f32 %v2109_v23, %v2127_v44  ;;  %v2142_v21 = vmax.f32 %v2106_v46, %v2126_v31  ;;  %v4065_v22 = vld [vmem:[%s6787_s2 + $0x3b8] sm:$0xff] }
 0x1b8   :  { %v2251_v17 = vmul.f32 %v2214_v28, %v2138_v12  ;;  %v2265_v59 = vadd.f32 %v2264_v20, %v2250_v32  ;;  %3204 = vperm.xlu0 %4556, %v4059_v14   ;;  %v6449_v51 = vpop.f32.mrb[47].mxu1  ;;  %v2252_v2 = vmul.f32 %v2219_v8, %v2139_v0  ;;  %v4094_v12 = vld [vmem:[%s6788_s3 + $0x3a0] sm:$0xff]  ;;  %v4095_v0 = vld [vmem:[%s6788_s3 + $0x3a8] sm:$0xff] }
 0x1b9   :  { %v2141_v11 = vmax.f32 %v2101_v47, %v2125_v45  ;;  %v4066_v45 = vld [vmem:[%s6787_s2 + $0x3c0] sm:$0xff] }
 0x1ba   :  { %v2266_v5 = vadd.f32 %v2265_v59, %v2251_v17 }
 0x1bb   :  { %v2229_v62 = vpop.permute.xlu1 %2228  ;;  %v2224_v10 = vpop.permute.xlu0 %2223  ;;  %3219 = vperm.xlu1 %4557, %v4062_v1  }
 0x1bc   :  { %v2253_v56 = vmul.f32 %v2224_v10, %v2140_v18  ;;  %v2267_v41 = vadd.f32 %v2266_v5, %v2252_v2  ;;  %3214 = vperm.xlu0 %4556, %v4061_v37   ;;  %v2254_v61 = vmul.f32 %v2229_v62, %v2141_v11  ;;  %v4096_v37 = vld [vmem:[%s6788_s3 + $0x3b0] sm:$0xff]  ;;  %v4067_v18 = vld [vmem:[%s6787_s2 + $0x3c8] sm:$0xff]  ;;  %v4097_v62 = vld [vmem:[%s6788_s3 + $0x3b8] sm:$0xff] }
 0x1bd   :  { %v4068_v10 = vld [vmem:[%s6787_s2 + $0x3d0] sm:$0xff] }
 0x1be   :  { %v2268_v7 = vadd.f32 %v2267_v41, %v2253_v56 }
 0x1bf   :  { %v2239_v49 = vpop.permute.xlu1 %2238  ;;  %v2234_v9 = vpop.permute.xlu0 %2233  ;;  %3494 = vperm.xlu1 %4557, %v4091_v39   ;;  %v4035_v39 = vld [vmem:[%s6788_s3 + $0x348] sm:$0xff] }
 0x1c0   :  { %v2256_v15 = vmul.f32 %v2239_v49, %v2143_v52  ;;  %v2255_v34 = vmul.f32 %v2234_v9, %v2142_v21  ;;  %v2269_v19 = vadd.f32 %v2268_v7, %v2254_v61  ;;  %3489 = vperm.xlu0 %4556, %v4090_v24   ;;  %v4036_v21 = vld [vmem:[%s6788_s3 + $0x350] sm:$0xff] }
 0x1c2   :  { %v2270_v13 = vadd.f32 %v2269_v19, %v2255_v34 }
 0x1c3   :  { %v2321_v48 = vpop.permute.xlu1 %2320  ;;  %v2316_v50 = vpop.permute.xlu0 %2315  ;;  %3499 = vperm.xlu1 %4557, %v4092_v55  }
 0x1c4   :  { %v2271_v23 = vadd.f32 %v2270_v13, %v2256_v15  ;;  %v6467_v36 = vadd.f32 %v6357_v43, %v2316_v50  ;;  %v6470_v57 = vadd.f32 %v6368_v35, %v2321_v48  ;;  %3224 = vperm.xlu0 %4556, %v4063_v26   ;;  %v4098_v15 = vld [vmem:[%s6788_s3 + $0x3c0] sm:$0xff]  ;;  %v4099_v50 = vld [vmem:[%s6788_s3 + $0x3c8] sm:$0xff] }
 0x1c6   :  { %v2272_v54 = vrot.slane %v2271_v23, 4 }
 0x1c7   :  { %v2331_v46 = vpop.permute.xlu1 %2330  ;;  %v2326_v47 = vpop.permute.xlu0 %2325  ;;  %3504 = vperm.xlu1 %4557, %v4093_v58  }
 0x1c8   :  { %v2273_v14 = vadd.f32 %v2272_v54, %v2271_v23  ;;  %v6479_v43 = vadd.f32 %v6359_v42, %v2331_v46  ;;  %v6482_v35 = vadd.f32 %v6351_v3, %v2326_v47  ;;  %3229 = vperm.xlu0 %4556, %v4064_v38   ;;  %v4070_v38 = vld [vmem:[%s6787_s2 + $0x3e0] sm:$0xff] }
 0x1ca   :  { %v2274_v32 = vrot.slane %v2273_v14, 2 }
 0x1cb   :  { %v2341_v20 = vpop.permute.xlu1 %2340  ;;  %v2336_v8 = vpop.permute.xlu0 %2335  ;;  %3509 = vperm.xlu1 %4557, %v4094_v12  }
 0x1cc   :  { %v2275_v28 = vadd.f32 %v2274_v32, %v2273_v14  ;;  %v6491_v42 = vadd.f32 %v6387_v16, %v2336_v8  ;;  %v6494_v3 = vadd.f32 %v6395_v30, %v2341_v20  ;;  %3234 = vperm.xlu0 %4556, %v4065_v22   ;;  %v4071_v8 = vld [vmem:[%s6787_s2 + $0x3e8] sm:$0xff] }
 0x1ce   :  { %v2276_v17 = vrot.slane %v2275_v28, 1 }
 0x1cf   :  { %v2351_v59 = vpop.permute.xlu1 %2350  ;;  %v2346_v1 = vpop.permute.xlu0 %2345  ;;  %3514 = vperm.xlu1 %4557, %v4095_v0  }
 0x1d0   :  { %v2277_v31 = vadd.f32 %v2276_v17, %v2275_v28  ;;  %v6503_v16 = vadd.f32 %v6389_v4, %v2351_v59  ;;  %v6506_v30 = vadd.f32 %v6380_v40, %v2346_v1  ;;  %3239 = vperm.xlu0 %4556, %v4066_v45   ;;  %v2558_v17 = vmul.f32 0.01, %v6491_v42 }
 0x1d2   :  { %v6515_v44 = vadd.f32 %v2277_v31, %v6334_v27 }
 0x1d3   :  { %v2361_v2 = vpop.permute.xlu1 %2360  ;;  %v2356_v5 = vpop.permute.xlu0 %2355  ;;  %3519 = vperm.xlu1 %4557, %v4096_v37  }
 0x1d4   :  { %v6518_v4 = vadd.f32 %v6415_v53, %v2356_v5  ;;  %v6521_v40 = vadd.f32 %v6423_v63, %v2361_v2  ;;  %3244 = vperm.xlu0 %4556, %v4067_v18   ;;  %v4069_v63 = vld [vmem:[%s6787_s2 + $0x3d8] sm:$0xff] }
 0x1d7   :  { %v2371_v27 = vpop.permute.xlu1 %2370  ;;  %v2366_v11 = vpop.permute.xlu0 %2365  ;;  %3524 = vperm.xlu1 %4557, %v4097_v62  }
 0x1d8   :  { %v6530_v56 = vadd.f32 %v6417_v60, %v2371_v27  ;;  %v6533_v53 = vadd.f32 %v6408_v25, %v2366_v11  ;;  %3249 = vperm.xlu0 %4556, %v4068_v10   ;;  %v6538_v41 = vpop.f32.mrb[48].mxu0  ;;  %v4038_v10 = vld [vmem:[%s6788_s3 + $0x360] sm:$0xff] }
 0x1d9   :  { %v6543_v24 = vpop.f32.mrb[49].mxu0 }
 0x1da   :  { %v6545_v61 = vpop.f32.mrb[50].mxu0 }
 0x1db   :  { %v2381_v60 = vpop.permute.xlu1 %2380  ;;  %v2376_v7 = vpop.permute.xlu0 %2375  ;;  %3254 = vperm.xlu1 %4557, %v4069_v63  }
 0x1dc   :  { %v6548_v25 = vadd.f32 %v6441_v6, %v2376_v7  ;;  %v6551_v52 = vadd.f32 %v6449_v51, %v2381_v60  ;;  %3092 = vperm.xlu0 %4556, %v4035_v39   ;;  %v6556_v49 = vpop.f32.mrb[51].mxu0  ;;  %v6558_v9 = vpop.f32.mrb[48].mxu1  ;;  %v2554_v6 = vmul.f32 0.01, %v6467_v36  ;;  %v2555_v51 = vmul.f32 0.01, %v6470_v57 }
 0x1dd   :  { %v6563_v34 = vpop.f32.mrb[49].mxu1  ;;  %v2561_v39 = vmul.f32 0.01, %v6503_v16  ;;  %v2560_v60 = vmul.f32 0.01, %v6506_v30 }
 0x1de   :  { %v6567_v19 = vpop.f32.mrb[50].mxu1  ;;  %v2571_v46 = vmax.f32 %v6470_v57, %v2555_v51  ;;  %v2570_v47 = vmax.f32 %v6467_v36, %v2554_v6  ;;  %v2559_v57 = vmul.f32 0.01, %v6494_v3  ;;  %v4037_v36 = vld [vmem:[%s6788_s3 + $0x358] sm:$0xff] }
 0x1df   :  { %v2391_v55 = vpop.permute.xlu1 %2390  ;;  %v2386_v26 = vpop.permute.xlu0 %2385  ;;  %3097 = vperm.xlu1 %4557, %v4036_v21   ;;  %v2574_v21 = vmax.f32 %v6491_v42, %v2558_v17  ;;  %v4072_v42 = vld [vmem:[%s6787_s2 + $0x3f0] sm:$0xff] }
 0x1e0   :  { %v6570_v13 = vadd.f32 %v6443_v29, %v2391_v55  ;;  %v6573_v48 = vadd.f32 %v6434_v33, %v2386_v26  ;;  %3529 = vperm.xlu0 %4556, %v4098_v15   ;;  %v6578_v23 = vpop.f32.mrb[52].mxu0  ;;  %v6580_v58 = vpop.f32.mrb[51].mxu1  ;;  %v2557_v29 = vmul.f32 0.01, %v6479_v43  ;;  %v2556_v33 = vmul.f32 0.01, %v6482_v35 }
 0x1e1   :  { %v6585_v54 = vpop.f32.mrb[53].mxu0 }
 0x1e2   :  { %v6591_v14 = vpop.f32.mrb[54].mxu0  ;;  %v2573_v1 = vmax.f32 %v6479_v43, %v2557_v29  ;;  %v2572_v31 = vmax.f32 %v6482_v35, %v2556_v33  ;;  %v2575_v43 = vmax.f32 %v6494_v3, %v2559_v57  ;;  %v4100_v35 = vld [vmem:[%s6788_s3 + $0x3d0] sm:$0xff]  ;;  %v2563_v33 = vmul.f32 0.01, %v6521_v40 }
 0x1e3   :  { %v2611_v12 = vpop.permute.xlu1 %2610  ;;  %v2606_v22 = vpop.permute.xlu0 %2605  ;;  %3534 = vperm.xlu1 %4557, %v4099_v50   ;;  %v4101_v50 = vld [vmem:[%s6788_s3 + $0x3d8] sm:$0xff] }
 0x1e4   :  { %v2684_v32 = vmul.f32 %v2611_v12, %v2571_v46  ;;  %v2683_v20 = vmul.f32 %v2606_v22, %v2570_v47  ;;  %3259 = vperm.xlu0 %4556, %v4070_v38   ;;  %v6596_v28 = vpop.f32.mrb[55].mxu0  ;;  %v6598_v0 = vpop.f32.mrb[52].mxu1  ;;  %v2562_v47 = vmul.f32 0.01, %v6518_v4  ;;  %v2577_v22 = vmax.f32 %v6503_v16, %v2561_v39 }
 0x1e5   :  { %v6604_v45 = vpop.f32.mrb[53].mxu1  ;;  %v2579_v16 = vmax.f32 %v6521_v40, %v2563_v33 }
 0x1e6   :  { %v2699_v59 = vadd.f32 %v2684_v32, %v2683_v20  ;;  %v6609_v37 = vpop.f32.mrb[54].mxu1  ;;  %v2576_v32 = vmax.f32 %v6506_v30, %v2560_v60  ;;  %v4039_v30 = vld [vmem:[%s6788_s3 + $0x368] sm:$0xff] }
 0x1e7   :  { %v2621_v18 = vpop.permute.xlu1 %2620  ;;  %v2616_v2 = vpop.permute.xlu0 %2615  ;;  %3264 = vperm.xlu1 %4557, %v4071_v8  }
 0x1e8   :  { %v2686_v5 = vmul.f32 %v2621_v18, %v2573_v1  ;;  %v2685_v62 = vmul.f32 %v2616_v2, %v2572_v31  ;;  %3102 = vperm.xlu0 %4556, %v4037_v36   ;;  %v6614_v27 = vpop.f32.mrb[56].mxu0  ;;  %v6616_v11 = vpop.f32.mrb[55].mxu1  ;;  %v4073_v1 = vld [vmem:[%s6787_s2 + $0x3f8] sm:$0xff] }
 0x1e9   :  { %v6622_v63 = vpop.f32.mrb[57].mxu0 }
 0x1ea   :  { %v2700_v7 = vadd.f32 %v2699_v59, %v2685_v62  ;;  %v6627_v15 = vpop.f32.mrb[58].mxu0  ;;  %v2564_v62 = vmul.f32 0.01, %v6533_v53 }
 0x1eb   :  { %v2631_v6 = vpop.permute.xlu1 %2630  ;;  %v2626_v51 = vpop.permute.xlu0 %2625  ;;  %3107 = vperm.xlu1 %4557, %v4038_v10  }
 0x1ec   :  { %v2688_v55 = vmul.f32 %v2631_v6, %v2575_v43  ;;  %v2687_v3 = vmul.f32 %v2626_v51, %v2574_v21  ;;  %v2701_v26 = vadd.f32 %v2700_v7, %v2686_v5  ;;  %3539 = vperm.xlu0 %4556, %v4100_v35   ;;  %v6632_v38 = vpop.f32.mrb[59].mxu0  ;;  %v6634_v29 = vpop.f32.mrb[56].mxu1  ;;  %v2565_v5 = vmul.f32 0.01, %v6530_v56  ;;  %v4040_v6 = vld [vmem:[%s6788_s3 + $0x370] sm:$0xff] }
 0x1ed   :  { %v6640_v46 = vpop.f32.mrb[57].mxu1  ;;  %v2578_v43 = vmax.f32 %v6518_v4, %v2562_v47  ;;  %v4102_v4 = vld [vmem:[%s6788_s3 + $0x3e0] sm:$0xff]  ;;  %v2580_v47 = vmax.f32 %v6533_v53, %v2564_v62  ;;  %v2569_v53 = vmul.f32 0.01, %v6570_v13 }
 0x1ee   :  { %v2702_v12 = vadd.f32 %v2701_v26, %v2687_v3  ;;  %v6645_v20 = vpop.f32.mrb[58].mxu1  ;;  %v2567_v3 = vmul.f32 0.01, %v6551_v52 }
 0x1ef   :  { %v2641_v8 = vpop.permute.xlu1 %2640  ;;  %v2636_v57 = vpop.permute.xlu0 %2635  ;;  %3544 = vperm.xlu1 %4557, %v4101_v50   ;;  %v2566_v50 = vmul.f32 0.01, %v6548_v25 }
 0x1f0   :  { %v2690_v36 = vmul.f32 %v2641_v8, %v2577_v22  ;;  %v2689_v17 = vmul.f32 %v2636_v57, %v2576_v32  ;;  %v2703_v59 = vadd.f32 %v2702_v12, %v2688_v55  ;;  %3269 = vperm.xlu0 %4556, %v4072_v42   ;;  %v6650_v31 = vpop.f32.mrb[60].mxu0  ;;  %v6652_v18 = vpop.f32.mrb[59].mxu1  ;;  %v2581_v42 = vmax.f32 %v6530_v56, %v2565_v5  ;;  %v4103_v56 = vld [vmem:[%s6788_s3 + $0x3e8] sm:$0xff] }
 0x1f1   :  { %v6658_v2 = vpop.f32.mrb[61].mxu0  ;;  %v2582_v5 = vmax.f32 %v6548_v25, %v2566_v50 }
 0x1f2   :  { %v2704_v10 = vadd.f32 %v2703_v59, %v2689_v17  ;;  %v6663_v35 = vpop.f32.mrb[62].mxu0  ;;  %v4041_v17 = vld [vmem:[%s6788_s3 + $0x378] sm:$0xff] }
 0x1f3   :  { %v2651_v39 = vpop.permute.xlu1 %2650  ;;  %v2646_v60 = vpop.permute.xlu0 %2645  ;;  %3274 = vperm.xlu1 %4557, %v4073_v1   ;;  %v2583_v1 = vmax.f32 %v6551_v52, %v2567_v3  ;;  %v4105_v52 = vld [vmem:[%s6788_s3 + $0x3f8] sm:$0xff] }
 0x1f4   :  { %v2692_v7 = vmul.f32 %v2651_v39, %v2579_v16  ;;  %v2691_v40 = vmul.f32 %v2646_v60, %v2578_v43  ;;  %v2705_v21 = vadd.f32 %v2704_v10, %v2690_v36  ;;  %3112 = vperm.xlu0 %4556, %v4039_v30   ;;  %v6668_v51 = vpop.f32.mrb[63].mxu0  ;;  %v6670_v55 = vpop.f32.mrb[60].mxu1  ;;  %v2568_v16 = vmul.f32 0.01, %v6573_v48 }
 0x1f5   :  { %v6676_v26 = vpop.f32.mrb[61].mxu1 }
 0x1f6   :  { %v2706_v33 = vadd.f32 %v2705_v21, %v2691_v40  ;;  %v6681_v12 = vpop.f32.mrb[62].mxu1  ;;  %v2585_v21 = vmax.f32 %v6570_v13, %v2569_v53  ;;  %v2584_v25 = vmax.f32 %v6573_v48, %v2568_v16 }
 0x1f7   :  { %v2661_v22 = vpop.permute.xlu1 %2660  ;;  %v2656_v32 = vpop.permute.xlu0 %2655  ;;  %3117 = vperm.xlu1 %4557, %v4040_v6  }
 0x1f8   :  { %v2694_v8 = vmul.f32 %v2661_v22, %v2581_v42  ;;  %v2693_v57 = vmul.f32 %v2656_v32, %v2580_v47  ;;  %v2707_v36 = vadd.f32 %v2706_v33, %v2692_v7  ;;  %3549 = vperm.xlu0 %4556, %v4102_v4   ;;  %v6686_v59 = vpop.f32.mrb[63].mxu1  ;;  %v4104_v7 = vld [vmem:[%s6788_s3 + $0x3f0] sm:$0xff] }
 0x1fa   :  { %v2708_v30 = vadd.f32 %v2707_v36, %v2693_v57 }
 0x1fb   :  { %v2671_v62 = vpop.permute.xlu1 %2670  ;;  %v2666_v10 = vpop.permute.xlu0 %2665  ;;  %3122 = vperm.xlu1 %4557, %v4041_v17  }
 0x1fc   :  { %v2696_v43 = vmul.f32 %v2671_v62, %v2583_v1  ;;  %v2695_v39 = vmul.f32 %v2666_v10, %v2582_v5  ;;  %v2709_v60 = vadd.f32 %v2708_v30, %v2694_v8  ;;  %3554 = vperm.xlu0 %4556, %v4103_v56  }
 0x1fe   :  { %v2710_v40 = vadd.f32 %v2709_v60, %v2695_v39 }
 0x1ff   :  { %v2681_v6 = vpop.permute.xlu1 %2680  ;;  %v2676_v3 = vpop.permute.xlu0 %2675  ;;  %3564 = vperm.xlu1 %4557, %v4105_v52  }
 0x200   :  { %v2698_v4 = vmul.f32 %v2681_v6, %v2585_v21  ;;  %v2697_v50 = vmul.f32 %v2676_v3, %v2584_v25  ;;  %v2711_v33 = vadd.f32 %v2710_v40, %v2696_v43  ;;  %3559 = vperm.xlu0 %4556, %v4104_v7  }
 0x202   :  { %v2712_v42 = vadd.f32 %v2711_v33, %v2697_v50 }
 0x203   :  { %v2763_v47 = vpop.permute.xlu1 %2762  ;;  %v2758_v22 = vpop.permute.xlu0 %2757 }
 0x204   :  { %v2713_v32 = vadd.f32 %v2712_v42, %v2698_v4  ;;  %v2934_v8 = vadd.f32 %v6543_v24, %v2758_v22  ;;  %v2937_v57 = vadd.f32 %v6556_v49, %v2763_v47 }
 0x206   :  { %v2714_v36 = vrot.slane %v2713_v32, 4  ;;  %v2997_v4 = vmul.f32 0.01, %v2937_v57 }
 0x207   :  { %v2773_v17 = vpop.permute.xlu1 %2772  ;;  %v2768_v13 = vpop.permute.xlu0 %2767 }
 0x208   :  { %v2715_v1 = vadd.f32 %v2714_v36, %v2713_v32  ;;  %v2945_v48 = vadd.f32 %v6545_v61, %v2773_v17  ;;  %v2942_v56 = vadd.f32 %v6538_v41, %v2768_v13  ;;  %v3013_v42 = vmax.f32 %v2937_v57, %v2997_v4 }
 0x20a   :  { %v2716_v53 = vrot.slane %v2715_v1, 2 }
 0x20b   :  { %v2783_v16 = vpop.permute.xlu1 %2782  ;;  %v2778_v30 = vpop.permute.xlu0 %2777 }
 0x20c   :  { %v2717_v5 = vadd.f32 %v2716_v53, %v2715_v1  ;;  %v2950_v62 = vadd.f32 %v6585_v54, %v2778_v30  ;;  %v2953_v10 = vadd.f32 %v6596_v28, %v2783_v16 }
 0x20e   :  { %v2718_v43 = vrot.slane %v2717_v5, 1  ;;  %v3001_v30 = vmul.f32 0.01, %v2953_v10 }
 0x20f   :  { %v2793_v24 = vpop.permute.xlu1 %2792  ;;  %v2788_v39 = vpop.permute.xlu0 %2787 }
 0x210   :  { %v2719_v49 = vadd.f32 %v2718_v43, %v2717_v5  ;;  %v2961_v60 = vadd.f32 %v6591_v14, %v2793_v24  ;;  %v2958_v52 = vadd.f32 %v6578_v23, %v2788_v39 }
 0x212   :  { %v6712_v61 = vadd.f32 %v2719_v49, %v6515_v44  ;;  %v3002_v43 = vmul.f32 0.01, %v2958_v52 }
 0x213   :  { %v2803_v41 = vpop.permute.xlu1 %2802  ;;  %v2798_v7 = vpop.permute.xlu0 %2797 }
 0x214   :  { %v2966_v40 = vadd.f32 %v6622_v63, %v2798_v7  ;;  %v6716_v21 = vadd.f32 %v6632_v38, %v2803_v41  ;;  %v2996_v63 = vmul.f32 0.01, %v2934_v8  ;;  %v3017_v41 = vmax.f32 %v2953_v10, %v3001_v30 }
 0x216   :  { %v3012_v47 = vmax.f32 %v2934_v8, %v2996_v63  ;;  %v3003_v8 = vmul.f32 0.01, %v2961_v60  ;;  %v3018_v63 = vmax.f32 %v2958_v52, %v3002_v43 }
 0x217   :  { %v2813_v54 = vpop.permute.xlu1 %2812  ;;  %v2808_v28 = vpop.permute.xlu0 %2807 }
 0x218   :  { %v6719_v25 = vadd.f32 %v6627_v15, %v2813_v54  ;;  %v6722_v6 = vadd.f32 %v6614_v27, %v2808_v28  ;;  %v2998_v27 = vmul.f32 0.01, %v2942_v56  ;;  %v3004_v28 = vmul.f32 0.01, %v2966_v40 }
 0x21a   :  { %v3014_v1 = vmax.f32 %v2942_v56, %v2998_v27 }
 0x21b   :  { %v2823_v14 = vpop.permute.xlu1 %2822  ;;  %v2818_v23 = vpop.permute.xlu0 %2817 }
 0x21c   :  { %v6725_v44 = vadd.f32 %v6658_v2, %v2818_v23  ;;  %v6728_v3 = vadd.f32 %v6668_v51, %v2823_v14  ;;  %v2999_v2 = vmul.f32 0.01, %v2945_v48  ;;  %v3000_v51 = vmul.f32 0.01, %v2950_v62 }
 0x21e   :  { %v3015_v5 = vmax.f32 %v2945_v48, %v2999_v2  ;;  %v3016_v39 = vmax.f32 %v2950_v62, %v3000_v51 }
 0x21f   :  { %v2833_v38 = vpop.permute.xlu1 %2832  ;;  %v2828_v50 = vpop.permute.xlu0 %2827 }
 0x220   :  { %v6731_v33 = vadd.f32 %v6663_v35, %v2833_v38  ;;  %v6734_v15 = vadd.f32 %v6650_v31, %v2828_v50  ;;  %v3019_v38 = vmax.f32 %v2961_v60, %v3003_v8 }
 0x223   :  { %v3053_v22 = vpop.permute.xlu1 %3052  ;;  %v3048_v32 = vpop.permute.xlu0 %3047 }
 0x224   :  { %v3126_v36 = vmul.f32 %v3053_v22, %v3013_v42  ;;  %v3125_v17 = vmul.f32 %v3048_v32, %v3012_v47  ;;  %v3020_v47 = vmax.f32 %v2966_v40, %v3004_v28 }
 0x226   :  { %v3141_v13 = vadd.f32 %v3126_v36, %v3125_v17 }
 0x227   :  { %v3063_v53 = vpop.permute.xlu1 %3062  ;;  %v3058_v16 = vpop.permute.xlu0 %3057 }
 0x228   :  { %v3127_v35 = vmul.f32 %v3058_v16, %v3014_v1  ;;  %v3128_v24 = vmul.f32 %v3063_v53, %v3015_v5 }
 0x22a   :  { %v3142_v31 = vadd.f32 %v3141_v13, %v3127_v35 }
 0x22b   :  { %v3073_v49 = vpop.permute.xlu1 %3072  ;;  %v3068_v57 = vpop.permute.xlu0 %3067 }
 0x22c   :  { %v3129_v7 = vmul.f32 %v3068_v57, %v3016_v39  ;;  %v3143_v54 = vadd.f32 %v3142_v31, %v3128_v24  ;;  %v3130_v14 = vmul.f32 %v3073_v49, %v3017_v41 }
 0x22e   :  { %v3144_v23 = vadd.f32 %v3143_v54, %v3129_v7 }
 0x22f   :  { %v3083_v56 = vpop.permute.xlu1 %3082  ;;  %v3078_v4 = vpop.permute.xlu0 %3077 }
 0x230   :  { %v3131_v50 = vmul.f32 %v3078_v4, %v3018_v63  ;;  %v3145_v48 = vadd.f32 %v3144_v23, %v3130_v14  ;;  %v3132_v27 = vmul.f32 %v3083_v56, %v3019_v38 }
 0x232   :  { %v3146_v42 = vadd.f32 %v3145_v48, %v3131_v50 }
 0x233   :  { %v3200_v22 = vpop.permute.xlu1 %3199  ;;  %v3088_v62 = vpop.permute.xlu0 %3087 }
 0x234   :  { %v3133_v32 = vmul.f32 %v3088_v62, %v3020_v47  ;;  %v3147_v2 = vadd.f32 %v3146_v42, %v3132_v27  ;;  %v3376_v10 = vadd.f32 %v6563_v34, %v3200_v22 }
 0x236   :  { %v6736_v36 = vadd.f32 %v3147_v2, %v3133_v32  ;;  %v3438_v13 = vmul.f32 0.01, %v3376_v10 }
 0x237   :  { %v3210_v17 = vpop.permute.xlu1 %3209  ;;  %v3205_v51 = vpop.permute.xlu0 %3204 }
 0x238   :  { %v3379_v52 = vadd.f32 %v6580_v58, %v3205_v51  ;;  %v3384_v60 = vadd.f32 %v6558_v9, %v3210_v17  ;;  %v3454_v35 = vmax.f32 %v3376_v10, %v3438_v13 }
 0x23a   :  { %v3439_v1 = vmul.f32 0.01, %v3379_v52  ;;  %v3440_v30 = vmul.f32 0.01, %v3384_v60 }
 0x23b   :  { %v3220_v53 = vpop.permute.xlu1 %3219  ;;  %v3215_v16 = vpop.permute.xlu0 %3214 }
 0x23c   :  { %v3387_v40 = vadd.f32 %v6567_v19, %v3215_v16  ;;  %v3455_v5 = vmax.f32 %v3379_v52, %v3439_v1  ;;  %v3392_v49 = vadd.f32 %v6604_v45, %v3220_v53  ;;  %v3456_v58 = vmax.f32 %v3384_v60, %v3440_v30 }
 0x23e   :  { %v3441_v34 = vmul.f32 0.01, %v3387_v40  ;;  %v3442_v7 = vmul.f32 0.01, %v3392_v49 }
 0x23f   :  { %v3495_v43 = vpop.permute.xlu1 %3494  ;;  %v3490_v24 = vpop.permute.xlu0 %3489 }
 0x240   :  { %v3568_v31 = vmul.f32 %v3495_v43, %v3455_v5  ;;  %v3567_v39 = vmul.f32 %v3490_v24, %v3454_v35  ;;  %v3457_v14 = vmax.f32 %v3387_v40, %v3441_v34  ;;  %v3458_v50 = vmax.f32 %v3392_v49, %v3442_v7 }
 0x241   :  { %v3006_v35 = vmul.f32 0.01, %v6722_v6 }
 0x242   :  { %v3583_v57 = vadd.f32 %v3568_v31, %v3567_v39 }
 0x243   :  { %v3500_v8 = vpop.permute.xlu1 %3499  ;;  %v3225_v41 = vpop.permute.xlu0 %3224 }
 0x244   :  { %v3569_v9 = vmul.f32 %v3500_v8, %v3456_v58  ;;  %v3395_v28 = vadd.f32 %v6616_v11, %v3225_v41 }
 0x246   :  { %v3584_v54 = vadd.f32 %v3583_v57, %v3569_v9  ;;  %v3443_v56 = vmul.f32 0.01, %v3395_v28 }
 0x247   :  { %v3505_v19 = vpop.permute.xlu1 %3504  ;;  %v3230_v23 = vpop.permute.xlu0 %3229 }
 0x248   :  { %v3570_v63 = vmul.f32 %v3505_v19, %v3457_v14  ;;  %v3400_v38 = vadd.f32 %v6598_v0, %v3230_v23  ;;  %v3459_v62 = vmax.f32 %v3395_v28, %v3443_v56  ;;  %v3005_v0 = vmul.f32 0.01, %v6716_v21 }
 0x24a   :  { %v3585_v4 = vadd.f32 %v3584_v54, %v3570_v63  ;;  %v3444_v42 = vmul.f32 0.01, %v3400_v38 }
 0x24b   :  { %v3510_v48 = vpop.permute.xlu1 %3509  ;;  %v3235_v45 = vpop.permute.xlu0 %3234 }
 0x24c   :  { %v3571_v27 = vmul.f32 %v3510_v48, %v3458_v50  ;;  %v3403_v22 = vadd.f32 %v6609_v37, %v3235_v45  ;;  %v3460_v51 = vmax.f32 %v3400_v38, %v3444_v42  ;;  %v3021_v37 = vmax.f32 %v6716_v21, %v3005_v0 }
 0x24d   :  { %v3007_v21 = vmul.f32 0.01, %v6719_v25  ;;  %v3010_v0 = vmul.f32 0.01, %v6734_v15 }
 0x24e   :  { %v3586_v47 = vadd.f32 %v3585_v4, %v3571_v27  ;;  %v3445_v10 = vmul.f32 0.01, %v3403_v22 }
 0x24f   :  { %v3515_v32 = vpop.permute.xlu1 %3514  ;;  %v3240_v2 = vpop.permute.xlu0 %3239  ;;  %v3023_v4 = vmax.f32 %v6719_v25, %v3007_v21  ;;  %v3009_v25 = vmul.f32 0.01, %v6728_v3 }
 0x250   :  { %v3572_v11 = vmul.f32 %v3515_v32, %v3459_v62  ;;  %v3408_v1 = vadd.f32 %v6640_v46, %v3240_v2  ;;  %v3461_v16 = vmax.f32 %v3403_v22, %v3445_v10  ;;  %v3022_v46 = vmax.f32 %v6722_v6, %v3006_v35 }
 0x252   :  { %v3587_v17 = vadd.f32 %v3586_v47, %v3572_v11  ;;  %v3446_v43 = vmul.f32 0.01, %v3408_v1 }
 0x253   :  { %v3520_v52 = vpop.permute.xlu1 %3519  ;;  %v3245_v13 = vpop.permute.xlu0 %3244 }
 0x254   :  { %v3573_v60 = vmul.f32 %v3520_v52, %v3460_v51  ;;  %v3411_v24 = vadd.f32 %v6652_v18, %v3245_v13  ;;  %v3462_v8 = vmax.f32 %v3408_v1, %v3446_v43 }
 0x256   :  { %v3588_v53 = vadd.f32 %v3587_v17, %v3573_v60  ;;  %v3447_v57 = vmul.f32 0.01, %v3411_v24 }
 0x257   :  { %v3525_v30 = vpop.permute.xlu1 %3524  ;;  %v3250_v40 = vpop.permute.xlu0 %3249 }
 0x258   :  { %v3574_v5 = vmul.f32 %v3525_v30, %v3461_v16  ;;  %v3416_v28 = vadd.f32 %v6634_v29, %v3250_v40  ;;  %v3463_v19 = vmax.f32 %v3411_v24, %v3447_v57  ;;  %v3025_v16 = vmax.f32 %v6728_v3, %v3009_v25 }
 0x25a   :  { %v3589_v31 = vadd.f32 %v3588_v53, %v3574_v5  ;;  %v3448_v6 = vmul.f32 0.01, %v3416_v28 }
 0x25b   :  { %v3255_v39 = vpop.permute.xlu1 %3254  ;;  %v3093_v34 = vpop.permute.xlu0 %3092 }
 0x25c   :  { %v3134_v49 = vmul.f32 %v3093_v34, %v3021_v37  ;;  %v3419_v38 = vadd.f32 %v6645_v20, %v3255_v39  ;;  %v3464_v22 = vmax.f32 %v3416_v28, %v3448_v6  ;;  %v3011_v37 = vmul.f32 0.01, %v6731_v33 }
 0x25e   :  { %v3149_v58 = vadd.f32 %v6736_v36, %v3134_v49  ;;  %v3008_v36 = vmul.f32 0.01, %v6725_v44  ;;  %v3449_v42 = vmul.f32 0.01, %v3419_v38  ;;  %v3027_v3 = vmax.f32 %v6731_v33, %v3011_v37 }
 0x25f   :  { %v3098_v41 = vpop.permute.xlu1 %3097  ;;  %v3530_v9 = vpop.permute.xlu0 %3529 }
 0x260   :  { %v3135_v7 = vmul.f32 %v3098_v41, %v3022_v46  ;;  %v3575_v54 = vmul.f32 %v3530_v9, %v3462_v8  ;;  %v3024_v29 = vmax.f32 %v6725_v44, %v3008_v36  ;;  %v3465_v20 = vmax.f32 %v3419_v38, %v3449_v42 }
 0x262   :  { %v3150_v14 = vadd.f32 %v3149_v58, %v3135_v7  ;;  %v3590_v18 = vadd.f32 %v3589_v31, %v3575_v54 }
 0x263   :  { %v3535_v23 = vpop.permute.xlu1 %3534  ;;  %v3260_v63 = vpop.permute.xlu0 %3259 }
 0x264   :  { %v3576_v56 = vmul.f32 %v3535_v23, %v3463_v19  ;;  %v3424_v10 = vadd.f32 %v6676_v26, %v3260_v63  ;;  %v3026_v26 = vmax.f32 %v6734_v15, %v3010_v0 }
 0x266   :  { %v3591_v50 = vadd.f32 %v3590_v18, %v3576_v56  ;;  %v3450_v1 = vmul.f32 0.01, %v3424_v10 }
 0x267   :  { %v3265_v48 = vpop.permute.xlu1 %3264  ;;  %v3103_v45 = vpop.permute.xlu0 %3102 }
 0x268   :  { %v3136_v27 = vmul.f32 %v3103_v45, %v3023_v4  ;;  %v3427_v44 = vadd.f32 %v6686_v59, %v3265_v48  ;;  %v3466_v31 = vmax.f32 %v3424_v10, %v3450_v1 }
 0x26a   :  { %v3151_v47 = vadd.f32 %v3150_v14, %v3136_v27  ;;  %v3451_v35 = vmul.f32 0.01, %v3427_v44 }
 0x26b   :  { %v3108_v62 = vpop.permute.xlu1 %3107  ;;  %v3540_v32 = vpop.permute.xlu0 %3539 }
 0x26c   :  { %v3137_v2 = vmul.f32 %v3108_v62, %v3024_v29  ;;  %v3577_v11 = vmul.f32 %v3540_v32, %v3464_v22  ;;  %v3467_v41 = vmax.f32 %v3427_v44, %v3451_v35  ;;  %v3606_v32 = vstv %s6789_s4  ;;  %s3634_s4 = sshll.u32 %s4651_s9, 4  ;;  %s3635_s4 = int_to_ptr.vmem [resolvable:$true] %s3634_s4 }
 0x26d   :  { %s4626_s0 = scalar_lea.vmem %s3635_s4, 32  ;;  %p4631_p1 = scmp.lt.s32.totalorder %s3635_s4, %s3635_s4 }
 0x26e   :  { %v3152_v17 = vadd.f32 %v3151_v47, %v3137_v2  ;;  %v3592_v51 = vadd.f32 %v3591_v50, %v3577_v11  ;;  %p4627_p0 = scmp.ne.s32.totalorder %s3635_s4, %s4626_s0  ;;  %p4632_p2 = scmp.lt.s32.totalorder %s4626_s0, %s4626_s0 }
 0x26f   :  { %v3545_v52 = vpop.permute.xlu1 %3544  ;;  %v3270_v13 = vpop.permute.xlu0 %3269 }
 0x270   :  { %v3578_v60 = vmul.f32 %v3545_v52, %v3465_v20  ;;  %v3432_v43 = vadd.f32 %v6670_v55, %v3270_v13  ;;  %p4633_p3 = por %p4632_p2, %p4631_p1 }
 0x272   :  { %v3593_v53 = vadd.f32 %v3592_v51, %v3578_v60  ;;  %v3452_v58 = vmul.f32 0.01, %v3432_v43  ;;  %p4634_p4 = pnand %p4633_p3, %p4627_p0 }
 0x273   :  { %v3275_v30 = vpop.permute.xlu1 %3274  ;;  %v3113_v40 = vpop.permute.xlu0 %3112 }
 0x274   :  { %v3138_v5 = vmul.f32 %v3113_v40, %v3025_v16  ;;  %v3435_v49 = vadd.f32 %v6681_v12, %v3275_v30  ;;  %v3468_v14 = vmax.f32 %v3432_v43, %v3452_v58 }
 0x276   :  { %v3153_v24 = vadd.f32 %v3152_v17, %v3138_v5  ;;  %v3453_v15 = vmul.f32 0.01, %v3435_v49 }
 0x277   :  { %v3118_v39 = vpop.permute.xlu1 %3117  ;;  %v3550_v34 = vpop.permute.xlu0 %3549 }
 0x278   :  { %v3139_v59 = vmul.f32 %v3118_v39, %v3026_v26  ;;  %v3579_v57 = vmul.f32 %v3550_v34, %v3466_v31  ;;  %v3469_v12 = vmax.f32 %v3435_v49, %v3453_v15 }
 0x27a   :  { %v3154_v46 = vadd.f32 %v3153_v24, %v3139_v59  ;;  %v3594_v8 = vadd.f32 %v3593_v53, %v3579_v57 }
 0x27b   :  { %v3123_v9 = vpop.permute.xlu1 %3122  ;;  %v3555_v7 = vpop.permute.xlu0 %3554 }
 0x27c   :  { %v3140_v54 = vmul.f32 %v3123_v9, %v3027_v3  ;;  %v3580_v21 = vmul.f32 %v3555_v7, %v3467_v41 }
 0x27e   :  { %v3155_v55 = vadd.f32 %v3154_v46, %v3140_v54  ;;  %v3595_v28 = vadd.f32 %v3594_v8, %v3580_v21 }
 0x27f   :  { %v3565_v18 = vpop.permute.xlu1 %3564  ;;  %v3560_v19 = vpop.permute.xlu0 %3559 }
 0x280   :  { %v3156_v23 = vrot.slane %v3155_v55, 4  ;;  %v3581_v63 = vmul.f32 %v3560_v19, %v3468_v14  ;;  %v3582_v4 = vmul.f32 %v3565_v18, %v3469_v12 }
 0x282   :  { %v3157_v56 = vadd.f32 %v3156_v23, %v3155_v55  ;;  %v3596_v33 = vadd.f32 %v3595_v28, %v3581_v63 }
 0x284   :  { %v3158_v36 = vrot.slane %v3157_v56, 2  ;;  %v3597_v6 = vadd.f32 %v3596_v33, %v3582_v4 }
 0x286   :  { %v3159_v38 = vadd.f32 %v3158_v36, %v3157_v56  ;;  %v3598_v50 = vrot.slane %v3597_v6, 4 }
 0x288   :  { %v3160_v48 = vrot.slane %v3159_v38, 1  ;;  %v3599_v45 = vadd.f32 %v3598_v50, %v3597_v6 }
 0x28a   :  { %v3161_v27 = vadd.f32 %v3160_v48, %v3159_v38  ;;  %v3600_v42 = vrot.slane %v3599_v45, 2 }
 0x28c   :  { %v3162_v47 = vadd.f32 %v3161_v27, %v6712_v61  ;;  %v3601_v29 = vadd.f32 %v3600_v42, %v3599_v45 }
 0x28e   :  { %v3602_v22 = vrot.slane %v3601_v29, 1 }
 0x290   :  { %v3603_v62 = vadd.f32 %v3602_v22, %v3601_v29 }
 0x292   :  { %v3604_v2 = vadd.f32 %v3603_v62, %v3162_v47 }
 0x294   :  { %v3607_v11 = vadd.f32 %v3606_v32, %v3604_v2 }
 0x296   :  { %v3609_v25 = vand.u32 2147483647, %v3607_v11  ;;  %v3608_v44 = vmax.f32 %v3607_v11, 0.0  ;;  %v3625_v30 = vmul.f32 0.0, %v3607_v11 }
 0x298   :  { %v3610_v10 = vsub.f32 0.0, %v3609_v25 }
 0x29a   :  { %v3611_v17 = vmul.f32 1.442695, %v3610_v10 }
 0x29c   :  { %4622 = vpow2.f32 %v3611_v17 }
 0x2a6   :  { %v4623_v51 = vpop.eup %4622 }
 0x2a7   :  { %v3613_v20 = vadd.f32 1.0, %v4623_v51  ;;  %v3616_v52 = vmul.f32 -0.5, %v4623_v51  ;;  %v3619_v60 = vand.u32 2147483647, %v4623_v51 }
 0x2a9   :  { %4624 = vlog2.f32 %v3613_v20  ;;  %v3617_v13 = vadd.f32 1.0, %v3616_v52  ;;  %vm3620_vm1 = vcmp.lt.f32.partialorder %v3619_v60, 0.0004427343 }
 0x2ab   :  { %v3618_v1 = vmul.f32 %v4623_v51, %v3617_v13 }
 0x2b3   :  { %v4625_v61 = vpop.eup %4624 }
 0x2b4   :  { %v3615_v0 = vmul.f32 0.6931472, %v4625_v61 }
 0x2b6   :  { %v3621_v53 = vsel %vm3620_vm1, %v3618_v1, %v3615_v0 }
 0x2b7   :  { %v3622_v16 = vadd.f32 %v3621_v53, %v3608_v44 }
 0x2b9   :  { %v3623_v40 = vsub.f32 %v3622_v16, %v3607_v11  ;;  %v3626_v5 = vsub.f32 %v3622_v16, %v3625_v30 }
 0x2bb   :  { %3624 = vst [vmem:[#allocation3] sm:$0x1] %v3623_v40  ;;  %3627 = vst [vmem:[#allocation3 + $0x1] sm:$0x1] %v3626_v5 }
 0x2bc   :  { %4637 = shalt.err (!%p4634_p4)
}
 0x2bd   :  { %s4638_s12 = scalar_lea.hbm %s6790_s5, 32 }
 0x2be   :  { %p4639_p5 = scmp.ne.s32.totalorder %s6790_s5, %s4638_s12  ;;  %p4642_p6 = scmp.lt.u32.totalorder %s4638_s12, %s6790_s5 }
 0x2c0   :  { %p4644_p7 = pnand %p4642_p6, %p4639_p5 }
 0x2c2   :  { %4647 = shalt.err (!%p4644_p7)
}
 0x2c3   :  { %3637 = dma.vmem_to_hbm [thread:$0]  %s3635_s4, 32, %s6790_s5, [#allocation4]  }
 0x2c4   :  { %4648 = dma.done.wait [#allocation4], 32  }
 0x2c5   :  { %4649 = vsyncadd [#allocation4], 4294967264 }
 0x2c6   :  { %3641 = vsyncpa [#allocation4], 1 }

</bundles_post_ra>
